<compile_context>
chip_gen: v5e
topology: v5e:2x2
jax: 0.10.0
libtpu: 0.0.40
codegen_flags: <defaults>
</compile_context>

<pallas_src>
import functools

import numpy as np

import jax
import jax.numpy as jnp
from jax.experimental import pallas as pl
from jax.experimental.pallas import tpu as pltpu

FEATURE_DIM = 512                 # self.featureDim
GRID_H = 42                       # hard-coded 42x42 map in GCNet.forward
GRID_HW = GRID_H * GRID_H         # 1764 pixels
HW_PAD = 1792                     # 1764 padded up to a multiple of 896
TILE_HW = 896                     # pixel tile for kernel 1 (2 tiles / image)
SEG_OUT = FEATURE_DIM // 2        # 256 (SegmentationNet num_class)
GCN_HIDDEN = 128                  # GCNConv(3 -> 128)
GCN_OUT = FEATURE_DIM // 2        # 256 (GCNConv(128 -> 256))
FMAP_CIN = 3                      # feature-map channels
FMAP_CIN_PAD = 8                  # zero-pad channel dim for clean tiling
TP = 256                          # pair tile for kernel 2
KC_MAX = 8                        # classes per class tile (v7x VMEM budget)


# ---------------------------------------------------------------------------
# Pallas kernel 1: SegmentationNet + GCNet over the flattened feature map
#   grid = (B * HW_PAD // TILE_HW,)   -- batch folded into the pixel axis
# ---------------------------------------------------------------------------
def _fmap_kernel(x_ref, wsg_ref, bsg_ref, wg2_ref, bg2_ref, o_ref):
    x = x_ref[...]                                                 # (TILE_HW, 8) bf16
    # TODO(synk): SegmentationNet / GCNConv internals are not defined in the
    # reference source; modeled as per-pixel linear layers (graph aggregation
    # dropped). Seg 1x1-conv and GCNConv-1 share one fused (8, 384) matmul;
    # K=8 underfills the MXU but the FLOPs are negligible (kernel is
    # store/overhead bound), so it is intentionally left as-is.
    y = jnp.dot(x, wsg_ref[...], preferred_element_type=jnp.float32) + bsg_ref[...]
    seg = y[:, :SEG_OUT]                                           # (TILE_HW, 256)
    h1 = y[:, SEG_OUT:].astype(jnp.bfloat16)                       # (TILE_HW, 128)
    g = (jnp.dot(h1, wg2_ref[...], preferred_element_type=jnp.float32)
         + bg2_ref[...])                                           # (TILE_HW, 256)
    # single fused bf16 output slab: cols 0:256 = seg, cols 256:512 = gcn
    o_ref[:, :SEG_OUT] = seg.astype(o_ref.dtype)
    o_ref[:, SEG_OUT:] = g.astype(o_ref.dtype)


def featuremap_nets(fmap_flat, params):
    """fmap_flat: [B*HW_PAD, FMAP_CIN_PAD] bf16 pixel-major.

    Returns [B*HW_PAD, 512] bf16 (seg | gcn) fused slab.
    """
    N = fmap_flat.shape[0]
    out = pl.pallas_call(
        _fmap_kernel,
        grid=(N // TILE_HW,),
        in_specs=[
            pl.BlockSpec((TILE_HW, FMAP_CIN_PAD), lambda i: (i, 0)),
            pl.BlockSpec((FMAP_CIN_PAD, SEG_OUT + GCN_HIDDEN), lambda i: (0, 0)),
            pl.BlockSpec((1, SEG_OUT + GCN_HIDDEN), lambda i: (0, 0)),
            pl.BlockSpec((GCN_HIDDEN, GCN_OUT), lambda i: (0, 0)),
            pl.BlockSpec((1, GCN_OUT), lambda i: (0, 0)),
        ],
        out_specs=pl.BlockSpec((TILE_HW, SEG_OUT + GCN_OUT), lambda i: (i, 0)),
        out_shape=jax.ShapeDtypeStruct((N, SEG_OUT + GCN_OUT), jnp.bfloat16),
        compiler_params=pltpu.CompilerParams(
            dimension_semantics=("parallel",),
            vmem_limit_bytes=32 << 20),
    )(fmap_flat, params["w_seggcn1"], params["b_seggcn1"],
      params["w_gcn2"], params["b_gcn2"])
    return out


# ---------------------------------------------------------------------------
# Pallas kernel 2a: head/tail Linear + tanh fusion (one pass over pair tiles)
# ---------------------------------------------------------------------------
def _zproj_kernel(head_ref, tail_ref, pair_ref, wh_ref, bh_ref,
                  wt_ref, bt_ref, zs_ref, zo_ref):
    pair = pair_ref[...].astype(jnp.float32)
    zs = jnp.tanh(jnp.dot(head_ref[...], wh_ref[...],
                          preferred_element_type=jnp.float32)
                  + bh_ref[...] + pair)
    zo = jnp.tanh(jnp.dot(tail_ref[...], wt_ref[...],
                          preferred_element_type=jnp.float32)
                  + bt_ref[...] + pair)
    zs_ref[...] = zs.astype(zs_ref.dtype)
    zo_ref[...] = zo.astype(zo_ref.dtype)


# ---------------------------------------------------------------------------
# Pallas kernel 2b: fused Bilinear classifier
#   grid = (class tiles [OUTER, "parallel"], pair tiles [inner, "parallel"])
#   -> the (F, KC*F) weight slab (index_map depends only on the class axis)
#      is DMA'd once per class tile and stays VMEM-resident across all pair
#      tiles; the per-class matmul is interleaved with its lane reduction so
#      the largest live intermediate is (TP, F) f32.
# ---------------------------------------------------------------------------
def _bilinear_kernel(zs_ref, zo_ref, wb_ref, bb_ref, out_ref, *, kc, fdim):
    zs = zs_ref[...]                                               # (TP, F) bf16
    zo = zo_ref[...].astype(jnp.float32)                           # (TP, F) f32
    cols = []
    for k in range(kc):                                            # static unroll
        wk = wb_ref[:, k * fdim:(k + 1) * fdim]                    # (F, F) bf16
        tk = jnp.dot(zs, wk, preferred_element_type=jnp.float32)   # (TP, F) f32
        cols.append(jnp.sum(tk * zo, axis=-1, keepdims=True))      # (TP, 1)
    part = jnp.concatenate(cols, axis=-1)                          # (TP, kc)
    out_ref[0] = (part + bb_ref[0]).astype(out_ref.dtype)


def pair_head(head_embs, tail_embs, pair_embs, params, num_class):
    P, H = head_embs.shape
    F = FEATURE_DIM
    wb2 = params["w_bilinear_packed"]                              # (F, K_pad*F) bf16
    bb = params["b_bilinear_tiled"]                                # (n_ct, 1, KC) f32
    n_ct, _, KC = bb.shape
    K_pad = n_ct * KC

    P_pad = ((P + TP - 1) // TP) * TP
    n_pt = P_pad // TP

    def pad_rows(x):
        return jnp.pad(x, ((0, P_pad - P), (0, 0))).astype(jnp.bfloat16)

    head_p = pad_rows(head_embs)
    tail_p = pad_rows(tail_embs)
    pair_p = pad_rows(pair_embs)

    # kernel 2a: zs / zo projections, one pass over pairs.
    zs, zo = pl.pallas_call(
        _zproj_kernel,
        grid=(n_pt,),
        in_specs=[
            pl.BlockSpec((TP, H), lambda p: (p, 0)),               # head
            pl.BlockSpec((TP, H), lambda p: (p, 0)),               # tail
            pl.BlockSpec((TP, F), lambda p: (p, 0)),               # pair emb
            pl.BlockSpec((H, F), lambda p: (0, 0)),                # w_head
            pl.BlockSpec((1, F), lambda p: (0, 0)),                # b_head
            pl.BlockSpec((H, F), lambda p: (0, 0)),                # w_tail
            pl.BlockSpec((1, F), lambda p: (0, 0)),                # b_tail
        ],
        out_specs=[pl.BlockSpec((TP, F), lambda p: (p, 0)),
                   pl.BlockSpec((TP, F), lambda p: (p, 0))],
        out_shape=[jax.ShapeDtypeStruct((P_pad, F), jnp.bfloat16),
                   jax.ShapeDtypeStruct((P_pad, F), jnp.bfloat16)],
        compiler_params=pltpu.CompilerParams(
            dimension_semantics=("parallel",),
            vmem_limit_bytes=32 << 20),
    )(head_p, tail_p, pair_p,
      params["w_head"], params["b_head"], params["w_tail"], params["b_tail"])

    # kernel 2b: class-outer bilinear classifier.
    kernel = functools.partial(_bilinear_kernel, kc=KC, fdim=F)
    out = pl.pallas_call(
        kernel,
        grid=(n_ct, n_pt),
        in_specs=[
            pl.BlockSpec((TP, F), lambda c, p: (p, 0)),            # zs
            pl.BlockSpec((TP, F), lambda c, p: (p, 0)),            # zo
            pl.BlockSpec((F, KC * F), lambda c, p: (0, c)),        # bilinear slab
            pl.BlockSpec((1, 1, KC), lambda c, p: (c, 0, 0)),      # bilinear bias
        ],
        out_specs=pl.BlockSpec((1, TP, KC), lambda c, p: (c, p, 0)),
        out_shape=jax.ShapeDtypeStruct((n_ct, P_pad, KC), jnp.float32),
        compiler_params=pltpu.CompilerParams(
            dimension_semantics=("parallel", "parallel"),
            vmem_limit_bytes=32 << 20),
    )(zs, zo, wb2, bb)

    # small (n_ct, P_pad, KC) -> (P_pad, K_pad) relayout; output bytes are
    # tiny compared to the now-single weight stream, so this stays on host.
    logits = jnp.transpose(out, (1, 0, 2)).reshape(P_pad, K_pad)
    return logits[:P, :num_class]


# ---------------------------------------------------------------------------
# Plain-JAX glue (encoder stub, entity pooling, feature-map build, gathers)
# ---------------------------------------------------------------------------
def encode_stub(params, input_ids, masks):
    # TODO(synk): the real encoder is an external pretrained BERT (self.bert);
    # stubbed as a deterministic embedding lookup. The attention tensor
    # returned by Encode is unused downstream and therefore not materialized.
    return params["embed"][input_ids] * masks[..., None]            # [B,L,768]


def build_entity_indices(entity_pos):
    B = len(entity_pos)
    e_max = max(len(ents) for ents in entity_pos)
    m_max = max(max(len(m) for m in ents) for ents in entity_pos)
    pos = np.zeros((B, e_max, m_max), np.int32)
    mask = np.zeros((B, e_max, m_max), np.float32)
    for b, ents in enumerate(entity_pos):
        for e, mentions in enumerate(ents):
            pos[b, e, :len(mentions)] = mentions
            mask[b, e, :len(mentions)] = 1.0
    return jnp.asarray(pos), jnp.asarray(mask)


def get_entity_embeddings(sequence_output, pos_idx, pos_mask):
    # TODO(synk): getEntityEmbeddings is not defined in the reference source;
    # ATLOP-style logsumexp pooling over mention token positions, vectorized
    # via padded index tensors + masked reduction (no per-mention Python ops).
    B = sequence_output.shape[0]
    toks = sequence_output[jnp.arange(B)[:, None, None], pos_idx]    # [B,E,M,H]
    toks = jnp.where(pos_mask[..., None] > 0, toks, -1e30)
    ent = jax.nn.logsumexp(toks, axis=2)                             # [B,E,H]
    ent_valid = jnp.sum(pos_mask, axis=-1, keepdims=True) > 0
    return jnp.where(ent_valid, ent, 0.0)


def build_pair_indices(head_tail_pairs):
    b_list, h_list, t_list = [], [], []
    for i, pairs in enumerate(head_tail_pairs):
        for h, t in pairs:
            b_list.append(i)
            h_list.append(h)
            t_list.append(t)
    return (jnp.asarray(np.asarray(b_list, np.int32)),
            jnp.asarray(np.asarray(h_list, np.int32)),
            jnp.asarray(np.asarray(t_list, np.int32)))


def get_feature_map(sequence_output, batch_entity_emb, params):
    # TODO(synk): getFeatureMap is not defined in the reference source; builds
    # a deterministic [B, 3, 42, 42] entity-pair interaction map (NCHW).
    B, E, H = batch_entity_emb.shape
    pair = batch_entity_emb[:, :, None, :] * batch_entity_emb[:, None, :, :]
    feat = jnp.einsum("bxyh,hc->bxyc", pair, params["w_fmap"])       # [B,E,E,3]
    fmap = jnp.zeros((B, GRID_H, GRID_H, FMAP_CIN), jnp.float32)
    fmap = fmap.at[:, :E, :E, :].set(feat)
    return jnp.transpose(fmap, (0, 3, 1, 2))                         # NCHW


def docre_forward(params, input_ids, masks, entity_pos, head_tail_pairs,
                  num_class):
    sequence_output = encode_stub(params, input_ids, masks)
    pos_idx, pos_mask = build_entity_indices(entity_pos)
    batch_entity_emb = get_entity_embeddings(sequence_output, pos_idx, pos_mask)
    feature_map = get_feature_map(sequence_output, batch_entity_emb, params)

    B = feature_map.shape[0]
    # GCNet: permute (C,H,W)->(H,W,C) then flatten -> pixel-major (HW, C),
    # padded to (HW_PAD, 8) bf16 and batch-folded for the Pallas kernel.
    fmap_flat = jnp.transpose(feature_map, (0, 2, 3, 1)).reshape(
        B, GRID_HW, FMAP_CIN)
    fmap_flat = jnp.pad(fmap_flat, ((0, 0), (0, HW_PAD - GRID_HW),
                                    (0, FMAP_CIN_PAD - FMAP_CIN)))
    fmap_flat = fmap_flat.astype(jnp.bfloat16).reshape(
        B * HW_PAD, FMAP_CIN_PAD)

    sg = featuremap_nets(fmap_flat, params).reshape(
        B, HW_PAD, SEG_OUT + GCN_OUT)[:, :GRID_HW, :]                # [B,1764,512]
    s_flat = sg[:, :, :SEG_OUT]                                      # seg, pixel-major
    g_flat = sg[:, :, SEG_OUT:]                                      # gcn, pixel-major
    # GCNet does torch.reshape((H*W, C) -> (C, 42, 42)): a raw row-major
    # reinterpretation (NOT a transpose) -- reproduce exactly, then bring the
    # reinterpreted channels back to pixel-major so pairs are row gathers.
    g_pix = jnp.transpose(g_flat.reshape(B, GCN_OUT, GRID_HW), (0, 2, 1))
    fused_pix = jnp.concatenate([s_flat, g_pix], axis=-1)            # [B,1764,512]

    # Vectorized pair gather (index arrays built once from the Python pairs).
    # TODO(synk): a fully in-kernel scalar-prefetch/DMA gather was not done;
    # the GCN raw-reshape layout makes per-pair in-kernel gathers awkward.
    b_idx, h_idx, t_idx = build_pair_indices(head_tail_pairs)
    pair_embs = fused_pix[b_idx, h_idx * GRID_H + t_idx]             # [P,512] bf16
    head_embs = batch_entity_emb[b_idx, h_idx]                       # [P,768]
    tail_embs = batch_entity_emb[b_idx, t_idx]                       # [P,768]

    return pair_head(head_embs, tail_embs, pair_embs, params, num_class)


# ---------------------------------------------------------------------------
# Deterministic parameter init (shapes from DocREModel.__init__) + host-side
# weight prepacking (fused seg/gcn1 weight, class-major packed bilinear).
# ---------------------------------------------------------------------------
def init_params(key, vocab, hidden, num_class):
    ks = jax.random.split(key, 16)
    s = 0.02
    nrm = jax.random.normal

    # SegmentationNet (1x1 conv, 3->256) and GCNConv(3->128): channel dim
    # zero-padded to 8, then fused along the output axis -> one (8, 384) matmul.
    w_seg = jnp.pad(s * nrm(ks[2], (FMAP_CIN, SEG_OUT), jnp.float32),
                    ((0, FMAP_CIN_PAD - FMAP_CIN), (0, 0)))
    w_gcn1 = jnp.pad(s * nrm(ks[4], (FMAP_CIN, GCN_HIDDEN), jnp.float32),
                     ((0, FMAP_CIN_PAD - FMAP_CIN), (0, 0)))
    b_seg = s * nrm(ks[3], (1, SEG_OUT), jnp.float32)
    b_gcn1 = s * nrm(ks[5], (1, GCN_HIDDEN), jnp.float32)

    # Bilinear(512, 512 -> numClass): weight [K, 512, 512], bias [K].
    # Pre-pack class-major: Wb2[i, k*F + j] = W[k, i, j], padded to KC tiles.
    KC = min(KC_MAX, num_class)
    n_ct = -(-num_class // KC)
    K_pad = n_ct * KC
    wb = s * nrm(ks[12], (num_class, FEATURE_DIM, FEATURE_DIM), jnp.float32)
    wb_pad = jnp.pad(wb, ((0, K_pad - num_class), (0, 0), (0, 0)))
    wb_packed = jnp.transpose(wb_pad, (1, 0, 2)).reshape(
        FEATURE_DIM, K_pad * FEATURE_DIM).astype(jnp.bfloat16)
    bb = s * nrm(ks[13], (1, num_class), jnp.float32)
    bb_tiled = jnp.pad(bb, ((0, 0), (0, K_pad - num_class))).reshape(n_ct, 1, KC)

    params = {
        "embed": nrm(ks[0], (vocab, hidden), jnp.float32),
        "w_fmap": s * nrm(ks[1], (hidden, FMAP_CIN), jnp.float32),
        # fused Seg + GCNConv-1 weight/bias (bf16 weight, f32 bias)
        "w_seggcn1": jnp.concatenate([w_seg, w_gcn1], axis=1).astype(jnp.bfloat16),
        "b_seggcn1": jnp.concatenate([b_seg, b_gcn1], axis=1),
        # GCNConv(128->256)
        "w_gcn2": (s * nrm(ks[6], (GCN_HIDDEN, GCN_OUT), jnp.float32)
                   ).astype(jnp.bfloat16),
        "b_gcn2": s * nrm(ks[7], (1, GCN_OUT), jnp.float32),
        # headLinear / tailLinear: Linear(768 -> 512) (stored as [in, out]).
        "w_head": (s * nrm(ks[8], (hidden, FEATURE_DIM), jnp.float32)
                   ).astype(jnp.bfloat16),
        "b_head": s * nrm(ks[9], (1, FEATURE_DIM), jnp.float32),
        "w_tail": (s * nrm(ks[10], (hidden, FEATURE_DIM), jnp.float32)
                   ).astype(jnp.bfloat16),
        "b_tail": s * nrm(ks[11], (1, FEATURE_DIM), jnp.float32),
        # packed bilinear classifier
        "w_bilinear_packed": wb_packed,
        "b_bilinear_tiled": bb_tiled,
    }
    return params


if __name__ == "__main__":
    key = jax.random.PRNGKey(0)
    B, L, VOCAB, HIDDEN = 2, 16, 32, 768
    NUM_CLASS = 8

    k_param, k_ids = jax.random.split(key)
    params = init_params(k_param, VOCAB, HIDDEN, NUM_CLASS)

    input_ids = jax.random.randint(k_ids, (B, L), 0, VOCAB, dtype=jnp.int32)
    masks = jnp.ones((B, L), jnp.float32)

    # entityPos[b][e] = token positions of entity e's mentions.
    entity_pos = [
        [[0, 1], [3, 4], [6], [9, 10]],
        [[1], [4, 5], [7, 8], [11]],
    ]
    # headTailPairs[b] = list of (head_entity, tail_entity) index pairs.
    head_tail_pairs = [
        [(0, 1), (1, 2), (2, 3), (3, 0)],
        [(0, 2), (1, 3), (2, 0), (3, 1)],
    ]

    logits = docre_forward(params, input_ids, masks, entity_pos,
                           head_tail_pairs, NUM_CLASS)
    jax.block_until_ready(logits)
    assert logits.shape == (sum(len(p) for p in head_tail_pairs), NUM_CLASS)
    assert bool(jnp.all(jnp.isfinite(logits)))
    print("KERNEL_OK")
</pallas_src>

<mosaic_0001>
module attributes {stable_mosaic.version = 11 : i64} {
  func.func @_fmap_kernel(%arg0: i32, %arg1: memref<896x8xbf16, #tpu.memory_space<vmem>>, %arg2: memref<8x384xbf16, #tpu.memory_space<vmem>>, %arg3: memref<1x384xf32, #tpu.memory_space<vmem>>, %arg4: memref<128x256xbf16, #tpu.memory_space<vmem>>, %arg5: memref<1x256xf32, #tpu.memory_space<vmem>>, %arg6: memref<896x512xbf16, #tpu.memory_space<vmem>>) attributes {dimension_semantics = [#tpu.dimension_semantics<parallel>], iteration_bounds = array<i64: 4>, scalar_prefetch = 0 : i64, scratch_operands = 0 : i64, tpu.core_type = #tpu.core_type<tc>, window_params = [{transform_indices = @transform_0, window_bounds = array<i64: 896, 8>}, {pipeline_mode = #tpu.pipeline_mode<synchronous>, transform_indices = @transform_1, window_bounds = array<i64: 8, 384>}, {pipeline_mode = #tpu.pipeline_mode<synchronous>, transform_indices = @transform_2, window_bounds = array<i64: 1, 384>}, {pipeline_mode = #tpu.pipeline_mode<synchronous>, transform_indices = @transform_3, window_bounds = array<i64: 128, 256>}, {pipeline_mode = #tpu.pipeline_mode<synchronous>, transform_indices = @transform_4, window_bounds = array<i64: 1, 256>}, {transform_indices = @transform_5, window_bounds = array<i64: 896, 512>}]} {
    %c0 = arith.constant 0 : index
    %c0_0 = arith.constant 0 : index
    %0 = vector.load %arg1[%c0, %c0_0] : memref<896x8xbf16, #tpu.memory_space<vmem>>, vector<896x8xbf16>
    %c0_1 = arith.constant 0 : index
    %c0_2 = arith.constant 0 : index
    %1 = vector.load %arg2[%c0_1, %c0_2] : memref<8x384xbf16, #tpu.memory_space<vmem>>, vector<8x384xbf16>
    %cst = arith.constant dense<0.000000e+00> : vector<896x384xf32>
    %2 = tpu.matmul %0, %1, %cst {dimension_numbers = #tpu.dot_dimension_numbers<[1], [0], [0], [1], [0, 0, 1, 1], [], []>} : vector<896x8xbf16>, vector<8x384xbf16>, vector<896x384xf32> -> vector<896x384xf32>
    %c0_3 = arith.constant 0 : index
    %c0_4 = arith.constant 0 : index
    %3 = vector.load %arg3[%c0_3, %c0_4] : memref<1x384xf32, #tpu.memory_space<vmem>>, vector<1x384xf32>
    %4 = vector.broadcast %3 : vector<1x384xf32> to vector<896x384xf32>
    %5 = arith.addf %2, %4 : vector<896x384xf32>
    %6 = vector.extract_strided_slice %5 {offsets = [0, 0], sizes = [896, 256], strides = [1, 1]} : vector<896x384xf32> to vector<896x256xf32>
    %7 = vector.extract_strided_slice %5 {offsets = [0, 256], sizes = [896, 128], strides = [1, 1]} : vector<896x384xf32> to vector<896x128xf32>
    %8 = arith.truncf %7 : vector<896x128xf32> to vector<896x128xbf16>
    %c0_5 = arith.constant 0 : index
    %c0_6 = arith.constant 0 : index
    %9 = vector.load %arg4[%c0_5, %c0_6] : memref<128x256xbf16, #tpu.memory_space<vmem>>, vector<128x256xbf16>
    %cst_7 = arith.constant dense<0.000000e+00> : vector<896x256xf32>
    %10 = tpu.matmul %8, %9, %cst_7 {dimension_numbers = #tpu.dot_dimension_numbers<[1], [0], [0], [1], [0, 0, 1, 1], [], []>} : vector<896x128xbf16>, vector<128x256xbf16>, vector<896x256xf32> -> vector<896x256xf32>
    %c0_8 = arith.constant 0 : index
    %c0_9 = arith.constant 0 : index
    %11 = vector.load %arg5[%c0_8, %c0_9] : memref<1x256xf32, #tpu.memory_space<vmem>>, vector<1x256xf32>
    %12 = vector.broadcast %11 : vector<1x256xf32> to vector<896x256xf32>
    %13 = arith.addf %10, %12 : vector<896x256xf32>
    %14 = arith.truncf %6 : vector<896x256xf32> to vector<896x256xbf16>
    %c0_10 = arith.constant 0 : index
    %c0_11 = arith.constant 0 : index
    %15 = vector.load %arg6[%c0_10, %c0_11] : memref<896x512xbf16, #tpu.memory_space<vmem>>, vector<896x256xbf16>
    tpu.vector_store %arg6[%c0_10, %c0_11], %14 {strides = array<i32>} : memref<896x512xbf16, #tpu.memory_space<vmem>>, vector<896x256xbf16>,
    %16 = arith.truncf %13 : vector<896x256xf32> to vector<896x256xbf16>
    %c0_12 = arith.constant 0 : index
    %c256 = arith.constant 256 : index
    %17 = vector.load %arg6[%c0_12, %c256] : memref<896x512xbf16, #tpu.memory_space<vmem>>, vector<896x256xbf16>
    tpu.vector_store %arg6[%c0_12, %c256], %16 {strides = array<i32>} : memref<896x512xbf16, #tpu.memory_space<vmem>>, vector<896x256xbf16>,
    return
  }
  func.func @transform_0(%arg0: i32) -> (i32, i32) {
    %c0_i32 = arith.constant 0 : i32
    %c0_i32_0 = arith.constant 0 : i32
    return %arg0, %c0_i32 : i32, i32
  }
  func.func @transform_1(%arg0: i32) -> (i32, i32) {
    %c0_i32 = arith.constant 0 : i32
    %c0_i32_0 = arith.constant 0 : i32
    %c0_i32_1 = arith.constant 0 : i32
    return %c0_i32, %c0_i32_0 : i32, i32
  }
  func.func @transform_2(%arg0: i32) -> (i32, i32) {
    %c0_i32 = arith.constant 0 : i32
    %c0_i32_0 = arith.constant 0 : i32
    %c0_i32_1 = arith.constant 0 : i32
    return %c0_i32, %c0_i32_0 : i32, i32
  }
  func.func @transform_3(%arg0: i32) -> (i32, i32) {
    %c0_i32 = arith.constant 0 : i32
    %c0_i32_0 = arith.constant 0 : i32
    %c0_i32_1 = arith.constant 0 : i32
    return %c0_i32, %c0_i32_0 : i32, i32
  }
  func.func @transform_4(%arg0: i32) -> (i32, i32) {
    %c0_i32 = arith.constant 0 : i32
    %c0_i32_0 = arith.constant 0 : i32
    %c0_i32_1 = arith.constant 0 : i32
    return %c0_i32, %c0_i32_0 : i32, i32
  }
  func.func @transform_5(%arg0: i32) -> (i32, i32) {
    %c0_i32 = arith.constant 0 : i32
    %c0_i32_0 = arith.constant 0 : i32
    return %arg0, %c0_i32 : i32, i32
  }
}

</mosaic_0001>

<bundles_post_ra>
// kernel: tpu_custom_call.1
= control target key start
LH: loop header
LB: loop body
LE: loop exit
PB: predicated region body
PF: predicated region fallthrough
CT: control target
= control target key end

     0   :  { %s5613_s0 = inlined_call_operand.vmem [shape: bf16[3584,8], index: 0, kind: input, shape index: {}]   ;;  %s5614_s1 = inlined_call_operand.hbm [shape: bf16[8,384], index: 1, kind: input, shape index: {}]   ;;  %s5615_s2 = inlined_call_operand.hbm [shape: f32[1,384], index: 2, kind: input, shape index: {}]   ;;  %s5616_s3 = inlined_call_operand.hbm [shape: bf16[128,256], index: 3, kind: input, shape index: {}]   ;;  %s5617_s4 = inlined_call_operand.hbm [shape: f32[1,256], index: 4, kind: input, shape index: {}]   ;;  %s5618_s5 = inlined_call_operand.hbm [shape: bf16[3584,512], index: 5, kind: output, shape index: {}]  }
   0x1   :  { %5619 = sst [smem:[#allocation68_spill]] %s5614_s1 }
   0x2   :  { %10 = vsyncpa [#allocation3], 0 }
   0x3   :  { %11 = vsyncpa [#allocation6], 0 }
   0x4   :  { %12 = vsyncpa [#allocation9], 0 }
   0x5   :  { %13 = vsyncpa [#allocation4], 0 }
   0x6   :  { %15 = vsyncpa [#allocation4 + $0x1], 0  ;;  %s3964_s18 = smov 0   ;;  %s3966_s19 = smov 0  }
   0x7   :  { %s3968_s20 = smov 0   ;;  %s3970_s21 = smov 0  }
   0x8 LB: > { %s3985_s22 = sadd.s32 4294967295, %s3924_s21   ;;  %s3048_s23 = sadd.s32 4294967294, %s3924_s21   ;;  %s3924_s21 = sphi %s3970_s21, %s5734_s21   ;;  %s3920_s20 = sphi %s3968_s20, %s5733_s20   ;;  %s3916_s19 = sphi %s3966_s19, %s5732_s19   ;;  %s3912_s18 = sphi %s3964_s18, %s5731_s18  }
   0x9   : > { %s3989_s24 = sadd.s32 1, %s3924_s21   ;;  %s138_s25 = sadd.s32 1, %s3920_s20 }
   0xa   : > { %s135_s26 = ssub.s32 %s3924_s21, %s3989_s24  ;;  %p148_p0 = scmp.ne.s32.totalorder %s3920_s20, %s3916_s19 }
   0xb   : > { %p136_p1 = scmp.eq.s32.totalorder %s135_s26, 0  ;;  %p149_p2 = scmp.eq.s32.totalorder %s3985_s22, 3 }
   0xc   : > { %p154_p3 = scmp.ne.s32.totalorder %s3916_s19, %s3912_s18  ;;  %p155_p4 = scmp.eq.s32.totalorder %s3048_s23, 3 }
   0xd   : > { %s4000_s27 = scalar_select %p136_p1, %s3920_s20, %s138_s25  }
   0xe   : > { %p4002_p5 = por %p149_p2, %p148_p0  ;;  %p4006_p6 = por %p155_p4, %p154_p3 }
   0xf   : > { %p3049_p7 = scmp.ge.s32.totalorder %s3924_s21, 1  ;;  %p162_p8 = scmp.lt.s32.totalorder %s3924_s21, 5 }
  0x10   : > { %p3643_p9 = scmp.eq.s32.totalorder %s3985_s22, 0  ;;  %s186_s8 = sshll.u32 %s5615_s2, 4  ;;  %s187_s8 = int_to_ptr.hbm [resolvable:$true] %s186_s8 }
  0x11   : > { %p4013_p10 = pnand %p3049_p7, %p162_p8  ;;  %s3926_s9 = smov [#allocation5]  }
  0x12   : > { %s188_s10 = sshll.u32 %s3926_s9, 4  ;;  %s5623_s1 = sld [smem:[#allocation68_spill]]  ;;  %s189_s10 = int_to_ptr.vmem [resolvable:$true] %s188_s10 }
  0x13   : > { %p3626_p11 = pneg %p4013_p10  ;;  %s197_s17 = sshll.u32 %s5616_s3, 4  ;;  %s198_s17 = int_to_ptr.hbm [resolvable:$true] %s197_s17 }
  0x14   : > { %s3927_s23 = smov [#allocation2]   ;;  %s3928_s26 = smov [#allocation7]  }
  0x15   : > { %p4027_p12 = pnand %p3643_p9, %p3626_p11  ;;  %s176_s25 = sshll.u32 %s3927_s23, 4  ;;  %s177_s25 = int_to_ptr.vmem [resolvable:$true] %s176_s25 }
  0x16   : > { %s199_s6 = sshll.u32 %s3928_s26, 4  ;;  %s212_s11 = sshll.u32 %s5617_s4, 4  ;;  %s200_s6 = int_to_ptr.vmem [resolvable:$true] %s199_s6  ;;  %s213_s11 = int_to_ptr.hbm [resolvable:$true] %s212_s11 }
  0x17   : > { %3632 = dma.hbm_to_vmem [thread:$0]  (!%p4027_p12), %s187_s8, 48, %s189_s10, [#allocation6]  }
  0x18   : > { %s174_s13 = sshll.u32 %s5623_s1, 4  ;;  %s3929_s12 = smov 128   ;;  %s175_s13 = int_to_ptr.hbm [resolvable:$true] %s174_s13 }
  0x19   : > { %3629 = dma.hbm_to_vmem [thread:$0]  (!%p4027_p12), %s175_s13, 192, %s177_s25, [#allocation3]  }
  0x1a   : > { %s3930_s1 = smov 8   ;;  %s3931_s15 = smov [#allocation8]  }
  0x1b   : > { %3635 = dma.hbm_to_vmem [thread:$0]  (!%p4027_p12), %s198_s17, 2048, %s200_s6, [#allocation6], %s3929_s12, %s3929_s12, %s3930_s1  }
  0x1c   : > { %s214_s16 = sshll.u32 %s3931_s15, 4  ;;  %236 = sbr.rel (%p4013_p10) target bundleno = 1460 (0x5b4), region = 40  ;;  %s215_s16 = int_to_ptr.vmem [resolvable:$true] %s214_s16 }
  0x1d   : > { %3638 = dma.hbm_to_vmem [thread:$0]  (!%p4027_p12), %s213_s11, 32, %s215_s16, [#allocation9]  }
  0x21   : > { %3895 = dma.done.wait (%p3643_p9), [#allocation3], 192  }
  0x22   : > { %3897 = vsyncadd (%p3643_p9), [#allocation3], 4294967104 }
  0x23   : > { %3899 = dma.done.wait (%p3643_p9), [#allocation6], 2096  }
  0x24   : > { %3901 = vsyncadd (%p3643_p9), [#allocation6], 4294965200 }
  0x25   : > { %3903 = dma.done.wait (%p3643_p9), [#allocation9], 32  }
  0x26   : > { %3905 = vsyncadd (%p3643_p9), [#allocation9], 4294967264  ;;  %s280_s1 = smul.u32 112, %s3985_s22  ;;  %v400_v0 = vld [vmem:[#allocation2] sm:$0xff]  ;;  %v401_v1 = vld [vmem:[#allocation2 + $0x8] sm:$0xf] }
  0x27   : > { %v692_v2 = vunpack.c.l.b16 %v400_v0  ;;  %v694_v3 = vunpack.c.l.b16 %v401_v1  ;;  %vm867_vm0 = vcmask 1043456   ;;  %vm698_vm1 = vcmask 64512   ;;  %v3591_v35 = vld [vmem:[#allocation7 + $0x74] sm:$0xf]  ;;  %v3513_v36 = vld [vmem:[#allocation7 + $0x78] sm:$0xf0] }
  0x28   : > { %p281_p13 = scmp.lt.s32.totalorder %s280_s1, 447  ;;  %v693_v26 = vunpack.c.h.b16 %v400_v0  ;;  %v4138_v38 = vor.u32 %v3591_v35, %v3513_v36  ;;  %v3511_v44 = vld [vmem:[#allocation7 + $0x70] sm:$0xf]  ;;  %v3592_v45 = vld [vmem:[#allocation7 + $0x74] sm:$0xf0]  ;;  %s277_s14 = sand.u32 1, %s3916_s19  }
  0x29   : > { %v695_v4 = vpack.c.b16 %v692_v2, %v692_v2  ;;  %v697_v5 = vpack.c.b16 %v694_v3, %v694_v3  ;;  %v3512_v46 = vor.u32 %v3592_v45, %v3511_v44  ;;  %v3589_v56 = vld [vmem:[#allocation7 + $0x64] sm:$0xf]  ;;  %v3505_v57 = vld [vmem:[#allocation7 + $0x68] sm:$0xf0]  ;;  %v3503_v61 = vld [vmem:[#allocation7 + $0x60] sm:$0xf] }
  0x2a   : > { %s5736_s1 = smov (!%p281_p13, %s280_s1), 447  ;;  %v696_v27 = vpack.c.b16 %v693_v26, %v693_v26  ;;  %v4178_v59 = vor.u32 %v3589_v56, %v3505_v57  ;;  %v3590_v62 = vld [vmem:[#allocation7 + $0x64] sm:$0xf0]  ;;  %v3487_v44 = vld [vmem:[#allocation7 + $0x40] sm:$0xf]  ;;  %s3607_s17 = smul.u32 1792, %s277_s14 }
  0x2b   : > { %s3060_s30 = sshll.u32 %s5736_s1, 2  ;;  %v869_v6 = vsel %vm867_vm0, %v695_v4, 0  ;;  %v875_v9 = vsel %vm867_vm0, %v697_v5, 0  ;;  %v3504_v63 = vor.u32 %v3590_v62, %v3503_v61  ;;  %v3586_v45 = vld [vmem:[#allocation7 + $0x44] sm:$0xf0]  ;;  %s3595_s25 = smul.u32 1792, %s3985_s22 }
  0x2c   : > { %s4063_s13 = scalar_lea.vmem %s5613_s0, %s3060_s30  ;;  %3596 = vmatpush.bf16.msra.mxu1 %v869_v6  ;;  %3597 = vmatpush.bf16.msra.mxu2 %v869_v6  ;;  %v872_v28 = vsel %vm867_vm0, %v696_v27, 0  ;;  %v3489_v61 = vld [vmem:[#allocation7 + $0x48] sm:$0xf0]  ;;  %s4483_s23 = scalar_lea.vmem [#allocation10], %s3607_s17 }
  0x2d   : > { %v4067_v7 = vld [vmem:[%s4063_s13 + $0x78] sm:$0xff]  ;;  %v3551_v8 = vld [vmem:[%s4063_s13 + $0xf0] sm:$0xff]  ;;  %884 = vmatpush.bf16.msra.mxu0 %v869_v6  ;;  %3598 = vmatpush.bf16.msra.mxu3 %v869_v6  ;;  %v4075_v10 = vld [vmem:[%s4063_s13 + $0x80] sm:$0xff]  ;;  %s2941_s7 = scalar_lea.hbm %s5618_s5, %s3595_s25  ;;  %s2942_s9 = sshll.u32 %s4483_s23, 4  ;;  %s2943_s9 = int_to_ptr.vmem [resolvable:$true] %s2942_s9 }
  0x2e   : > { %v3552_v11 = vld [vmem:[%s4063_s13 + $0xf8] sm:$0xff]  ;;  %v4082_v12 = vld [vmem:[%s4063_s13 + $0x88] sm:$0xff]  ;;  %v3553_v13 = vld [vmem:[%s4063_s13 + $0x100] sm:$0xff]  ;;  %s2944_s11 = sshll.u32 %s2941_s7, 4  ;;  %s2929_s22 = scalar_lea.sflag [#allocation4], %s277_s14  ;;  %s2945_s11 = int_to_ptr.hbm [resolvable:$true] %s2944_s11 }
  0x2f   : > { %3300 = vmatmul.msk.bf16.vlgmr.msra.gmra.mxu1 %vm698_vm1, %v4067_v7  ;;  %3315 = vmatmul.msk.bf16.vlgmr.msra.gmra.mxu2 %vm698_vm1, %v3551_v8  ;;  %v4089_v14 = vld [vmem:[%s4063_s13 + $0x90] sm:$0xff]  ;;  %v3554_v15 = vld [vmem:[%s4063_s13 + $0x108] sm:$0xff]  ;;  %v3540_v16 = vld [vmem:[%s4063_s13 + $0x98] sm:$0xff]  ;;  %s3864_s12 = sshra.s32 %s2945_s11, 4  ;;  %s3870_s30 = scalar_lea.hbm %s5618_s5, 7168  ;;  %s3865_s12 = int_to_ptr.hbm [resolvable:$true] %s3864_s12 }
  0x30   : > { %1462 = vmatpush.bf16.msrb.mxu2 %v875_v9  ;;  %v3555_v17 = vld [vmem:[%s4063_s13 + $0x110] sm:$0xff]  ;;  %v3541_v18 = vld [vmem:[%s4063_s13 + $0xa0] sm:$0xff]  ;;  %v3556_v19 = vld [vmem:[%s4063_s13 + $0x118] sm:$0xff]  ;;  %1173 = vmatpush.bf16.msrb.mxu1 %v872_v28  ;;  %s3866_s15 = scalar_lea.hbm %s3865_s12, 1792  ;;  %p3871_p3 = scmp.lt.s32.totalorder %s3865_s12, %s5618_s5 }
  0x31   : > { %v3542_v20 = vld [vmem:[%s4063_s13 + $0xa8] sm:$0xff]  ;;  %v3557_v21 = vld [vmem:[%s4063_s13 + $0x120] sm:$0xff]  ;;  %v3543_v23 = vld [vmem:[%s4063_s13 + $0xb0] sm:$0xff]  ;;  %2191 = vmatpush.bf16.msrb.mxu0 %v4138_v38  ;;  %1902 = vmatpush.bf16.msrb.mxu3 %v3512_v46  ;;  %v3488_v46 = vor.u32 %v3586_v45, %v3487_v44  ;;  %p3867_p0 = scmp.ne.s32.totalorder %s3865_s12, %s3866_s15  ;;  %p3872_p4 = scmp.lt.s32.totalorder %s3870_s30, %s3866_s15 }
  0x32   : > { %v4106_v22 = vld [vmem:[%s4063_s13] sm:$0xff]  ;;  %v3558_v24 = vld [vmem:[%s4063_s13 + $0x128] sm:$0xff]  ;;  %v3544_v29 = vld [vmem:[%s4063_s13 + $0xb8] sm:$0xff] }
  0x33   : > { %3285 = vmatmul.msk.bf16.vlgmr.msra.gmra.mxu0 %vm698_vm1, %v4106_v22  ;;  %v4115_v25 = vld [vmem:[%s4063_s13 + $0x8] sm:$0xff]  ;;  %v3559_v30 = vld [vmem:[%s4063_s13 + $0x130] sm:$0xff]  ;;  %v3565_v37 = vld [vmem:[%s4063_s13 + $0x160] sm:$0xff]  ;;  %p3868_p1 = pnand %p3867_p0, %p4002_p5  ;;  %p3873_p7 = por %p3872_p4, %p3871_p3 }
  0x34   : > { %v4127_v32 = vld [vmem:[%s4063_s13 + $0x10] sm:$0xff]  ;;  %3329 = vmatmul.msk.bf16.vlgmr.msra.gmra.mxu3 %vm698_vm1, %v3565_v37  ;;  %v3545_v40 = vld [vmem:[%s4063_s13 + $0xc0] sm:$0xff]  ;;  %v3560_v41 = vld [vmem:[%s4063_s13 + $0x138] sm:$0xff] }
  0x35   : > { %v4149_v43 = vld [vmem:[%s4063_s13 + $0x18] sm:$0xff]  ;;  %v3566_v49 = vld [vmem:[%s4063_s13 + $0x168] sm:$0xff]  ;;  %v3561_v52 = vld [vmem:[%s4063_s13 + $0x140] sm:$0xff]  ;;  %2192 = vmatpush.bf16.msrb.mxu0 %v4178_v59  ;;  %1903 = vmatpush.bf16.msrb.mxu3 %v3504_v63  ;;  %p3869_p2 = pneg %p3868_p1 }
  0x36   : > { %v3546_v51 = vld [vmem:[%s4063_s13 + $0xc8] sm:$0xff]  ;;  %v4168_v54 = vld [vmem:[%s4063_s13 + $0x20] sm:$0xff]  ;;  %v3567_v60 = vld [vmem:[%s4063_s13 + $0x170] sm:$0xff] }
  0x37   : > { %v3547_v1 = vld [vmem:[%s4063_s13 + $0xd0] sm:$0xff]  ;;  %v3562_v2 = vld [vmem:[%s4063_s13 + $0x148] sm:$0xff]  ;;  %v3568_v8 = vld [vmem:[%s4063_s13 + $0x178] sm:$0xff]  ;;  %p3874_p8 = pnand %p3873_p7, %p3869_p2 }
  0x38   : > { %v4190_v4 = vld [vmem:[%s4063_s13 + $0x28] sm:$0xff]  ;;  %v3569_v27 = vld [vmem:[%s4063_s13 + $0x180] sm:$0xff]  ;;  %v4231_v36 = vld [vmem:[%s4063_s13 + $0x38] sm:$0xff] }
  0x39   : > { %v4251_v57 = vld [vmem:[%s4063_s13 + $0x40] sm:$0xff] }
  0x3f   : > { %3301 = vmatmul.msk.bf16.gmra.mxu1 %vm698_vm1, %v4075_v10  ;;  %3316 = vmatmul.msk.bf16.gmra.mxu2 %vm698_vm1, %v3552_v11  ;;  %v3548_v11 = vld [vmem:[%s4063_s13 + $0xd8] sm:$0xff] }
  0x43   : > { %3286 = vmatmul.msk.bf16.gmra.mxu0 %vm698_vm1, %v4115_v25 }
  0x44   : > { %3330 = vmatmul.msk.bf16.gmra.mxu3 %vm698_vm1, %v3566_v49 }
  0x4f   : > { %3302 = vmatmul.msk.bf16.gmra.mxu1 %vm698_vm1, %v4082_v12  ;;  %3317 = vmatmul.msk.bf16.gmra.mxu2 %vm698_vm1, %v3553_v13  ;;  %v3563_v13 = vld [vmem:[%s4063_s13 + $0x150] sm:$0xff] }
  0x53   : > { %3287 = vmatmul.msk.bf16.gmra.mxu0 %vm698_vm1, %v4127_v32 }
  0x54   : > { %3331 = vmatmul.msk.bf16.gmra.mxu3 %vm698_vm1, %v3567_v60  ;;  %v3585_v60 = vld [vmem:[#allocation7 + $0x44] sm:$0xf] }
  0x55   : > { %v4258_v62 = vor.u32 %v3585_v60, %v3489_v61  ;;  %v4299_v60 = vld [vmem:[%s4063_s13 + $0x50] sm:$0xff] }
  0x5f   : > { %3303 = vmatmul.msk.bf16.gmra.mxu1 %vm698_vm1, %v4089_v14  ;;  %3318 = vmatmul.msk.bf16.gmra.mxu2 %vm698_vm1, %v3554_v15 }
  0x63   : > { %3288 = vmatmul.msk.bf16.gmra.mxu0 %vm698_vm1, %v4149_v43 }
  0x64   : > { %3332 = vmatmul.msk.bf16.gmra.mxu3 %vm698_vm1, %v3568_v8  ;;  %v3571_v8 = vld [vmem:[%s4063_s13 + $0x190] sm:$0xff] }
  0x6f   : > { %3304 = vmatmul.msk.bf16.gmra.mxu1 %vm698_vm1, %v3540_v16  ;;  %3319 = vmatmul.msk.bf16.gmra.mxu2 %vm698_vm1, %v3555_v17  ;;  %v4209_v16 = vld [vmem:[%s4063_s13 + $0x30] sm:$0xff]  ;;  %v3495_v17 = vld [vmem:[#allocation7 + $0x50] sm:$0xf] }
  0x73   : > { %3289 = vmatmul.msk.bf16.gmra.mxu0 %vm698_vm1, %v4168_v54 }
  0x74   : > { %3333 = vmatmul.msk.bf16.gmra.mxu3 %vm698_vm1, %v3569_v27 }
  0x7f   : > { %3305 = vmatmul.msk.bf16.gmra.mxu1 %vm698_vm1, %v3541_v18  ;;  %3320 = vmatmul.msk.bf16.gmra.mxu2 %vm698_vm1, %v3556_v19  ;;  %v3588_v18 = vld [vmem:[#allocation7 + $0x54] sm:$0xf0]  ;;  %v3587_v19 = vld [vmem:[#allocation7 + $0x54] sm:$0xf] }
  0x83   : > { %3290 = vmatmul.msk.bf16.gmra.mxu0 %vm698_vm1, %v4190_v4 }
  0x8f   : > { %3306 = vmatmul.msk.bf16.gmra.mxu1 %vm698_vm1, %v3542_v20  ;;  %3321 = vmatmul.msk.bf16.gmra.mxu2 %vm698_vm1, %v3557_v21  ;;  %v3496_v20 = vor.u32 %v3588_v18, %v3495_v17  ;;  %v3497_v21 = vld [vmem:[#allocation7 + $0x58] sm:$0xf0] }
  0x90   : > { %v4276_v18 = vld [vmem:[%s4063_s13 + $0x48] sm:$0xff] }
  0x91   : > { %1904 = vmatpush.bf16.msrb.mxu3 %v3496_v20  ;;  %v3584_v20 = vld [vmem:[#allocation7 + $0x34] sm:$0xf0] }
  0x93   : > { %3291 = vmatmul.msk.bf16.gmra.mxu0 %vm698_vm1, %v4209_v16 }
  0x95   : > { %1905 = vmatpush.bf16.msrb.mxu3 %v3488_v46  ;;  %v3583_v46 = vld [vmem:[#allocation7 + $0x34] sm:$0xf] }
  0x9f   : > { %3307 = vmatmul.msk.bf16.gmra.mxu1 %vm698_vm1, %v3543_v23  ;;  %3322 = vmatmul.msk.bf16.gmra.mxu2 %vm698_vm1, %v3558_v24  ;;  %v4215_v23 = vor.u32 %v3587_v19, %v3497_v21  ;;  %v3479_v19 = vld [vmem:[#allocation7 + $0x30] sm:$0xf] }
  0xa0   : > { %v3480_v21 = vor.u32 %v3584_v20, %v3479_v19 }
  0xa1   : > { %2193 = vmatpush.bf16.msrb.mxu0 %v4215_v23 }
  0xa2   : > { %1906 = vmatpush.bf16.msrb.mxu3 %v3480_v21  ;;  %v3573_v21 = vld [vmem:[%s4063_s13 + $0x1a0] sm:$0xff] }
  0xa3   : > { %3292 = vmatmul.msk.bf16.gmra.mxu0 %vm698_vm1, %v4231_v36 }
  0xa5   : > { %2194 = vmatpush.bf16.msrb.mxu0 %v4258_v62 }
  0xac   : > { %v4124_v31 = vpop.f32.mrf.mxu1 }
  0xaf   : > { %3308 = vmatmul.msk.bf16.gmra.mxu1 %vm698_vm1, %v3544_v29  ;;  %3323 = vmatmul.msk.bf16.gmra.mxu2 %vm698_vm1, %v3559_v30  ;;  %v3549_v29 = vld [vmem:[%s4063_s13 + $0xe0] sm:$0xff]  ;;  %v3564_v30 = vld [vmem:[%s4063_s13 + $0x158] sm:$0xff] }
  0xb0   : > { %v4248_v56 = vpop.f32.mrf.mxu0 }
  0xb2   : > { %v4133_v33 = vpop.f32.mrf.mxu2 }
  0xb3   : > { %5625 = vst [vmem:[#allocation15_spill] sm:$0xff] %v4133_v33  ;;  %3293 = vmatmul.msk.bf16.gmra.mxu0 %vm698_vm1, %v4251_v57 }
  0xb4   : > { %v4135_v34 = vpop.f32.mrf.mxu1 }
  0xba   : > { %v4142_v39 = vpop.f32.mrf.mxu2 }
  0xbb   : > { %5626 = vst [vmem:[#allocation16_spill] sm:$0xff] %v4142_v39  ;;  %v3465_v39 = vld [vmem:[#allocation7 + $0x18] sm:$0xf0] }
  0xbc   : > { %v4146_v42 = vpop.f32.mrf.mxu1 }
  0xbf   : > { %3309 = vmatmul.msk.bf16.gmra.mxu1 %vm698_vm1, %v3545_v40  ;;  %3324 = vmatmul.msk.bf16.gmra.mxu2 %vm698_vm1, %v3560_v41  ;;  %v3570_v41 = vld [vmem:[%s4063_s13 + $0x188] sm:$0xff] }
  0xc0   : > { %3334 = vmatmul.msk.bf16.gmra.mxu3 %vm698_vm1, %v3570_v41  ;;  %v3572_v41 = vld [vmem:[%s4063_s13 + $0x198] sm:$0xff] }
  0xc2   : > { %v4155_v47 = vpop.f32.mrf.mxu2 }
  0xc3   : > { %5627 = vst [vmem:[#allocation17_spill] sm:$0xff] %v4155_v47  ;;  %3294 = vmatmul.msk.bf16.gmra.mxu0 %vm698_vm1, %v4276_v18  ;;  %v3579_v47 = vld [vmem:[#allocation7 + $0x14] sm:$0xf] }
  0xc4   : > { %v4157_v48 = vpop.f32.mrf.mxu1  ;;  %v3468_v33 = vor.u32 %v3579_v47, %v3465_v39 }
  0xca   : > { %v4161_v50 = vpop.f32.mrf.mxu2 }
  0xcb   : > { %5628 = vst [vmem:[#allocation18_spill] sm:$0xff] %v4161_v50 }
  0xcc   : > { %v4165_v53 = vpop.f32.mrf.mxu1 }
  0xcf   : > { %3310 = vmatmul.msk.bf16.gmra.mxu1 %vm698_vm1, %v3546_v51  ;;  %3325 = vmatmul.msk.bf16.gmra.mxu2 %vm698_vm1, %v3561_v52  ;;  %v3550_v51 = vld [vmem:[%s4063_s13 + $0xe8] sm:$0xff] }
  0xd0   : > { %3335 = vmatmul.msk.bf16.gmra.mxu3 %vm698_vm1, %v3571_v8 }
  0xd2   : > { %v4174_v55 = vpop.f32.mrf.mxu2 }
  0xd3   : > { %5629 = vst [vmem:[#allocation19_spill] sm:$0xff] %v4174_v55  ;;  %3295 = vmatmul.msk.bf16.gmra.mxu0 %vm698_vm1, %v4299_v60  ;;  %v3578_v55 = vld [vmem:[#allocation7 + $0x4] sm:$0xf0] }
  0xd4   : > { %v4176_v58 = vpop.f32.mrf.mxu1 }
  0xda   : > { %v4183_v0 = vpop.f32.mrf.mxu2 }
  0xdb   : > { %5630 = vst [vmem:[#allocation20_spill] sm:$0xff] %v4183_v0 }
  0xdc   : > { %v4187_v3 = vpop.f32.mrf.mxu1 }
  0xdf   : > { %3311 = vmatmul.msk.bf16.gmra.mxu1 %vm698_vm1, %v3547_v1  ;;  %3326 = vmatmul.msk.bf16.gmra.mxu2 %vm698_vm1, %v3562_v2  ;;  %v4265_v2 = vpop.f32.mrf.mxu0 }
  0xe0   : > { %3336 = vmatmul.msk.bf16.gmra.mxu3 %vm698_vm1, %v3572_v41  ;;  %v3471_v41 = vld [vmem:[#allocation7 + $0x20] sm:$0xf] }
  0xe2   : > { %v4196_v5 = vpop.f32.mrf.mxu2 }
  0xe3   : > { %5631 = vst [vmem:[#allocation21_spill] sm:$0xff] %v4196_v5 }
  0xe4   : > { %v4198_v6 = vpop.f32.mrf.mxu1 }
  0xe7   : > { %v4273_v17 = vpop.f32.mrf.mxu0 }
  0xea   : > { %v4202_v9 = vpop.f32.mrf.mxu2 }
  0xeb   : > { %5632 = vst [vmem:[#allocation22_spill] sm:$0xff] %v4202_v9 }
  0xec   : > { %v4206_v15 = vpop.f32.mrf.mxu1 }
  0xef   : > { %3312 = vmatmul.msk.bf16.gmra.mxu1 %vm698_vm1, %v3548_v11  ;;  %3327 = vmatmul.msk.bf16.gmra.mxu2 %vm698_vm1, %v3563_v13 }
  0xf0   : > { %3337 = vmatmul.msk.bf16.gmra.mxu3 %vm698_vm1, %v3573_v21 }
  0xf2   : > { %v4217_v24 = vpop.f32.mrf.mxu2 }
  0xf3   : > { %5633 = vst [vmem:[#allocation23_spill] sm:$0xff] %v4217_v24 }
  0xf4   : > { %v4220_v26 = vpop.f32.mrf.mxu1 }
  0xfa   : > { %v4224_v28 = vpop.f32.mrf.mxu2 }
  0xfb   : > { %5634 = vst [vmem:[#allocation24_spill] sm:$0xff] %v4224_v28 }
  0xfc   : > { %v4228_v35 = vpop.f32.mrf.mxu1 }
  0xff   : > { %3313 = vmatmul.msk.bf16.gmra.mxu1 %vm698_vm1, %v3549_v29  ;;  %3328 = vmatmul.msk.bf16.gmra.mxu2 %vm698_vm1, %v3564_v30  ;;  %v4288_v30 = vpop.f32.mrf.mxu0 }
 0x102   : > { %v4237_v37 = vpop.f32.mrf.mxu2 }
 0x103   : > { %5635 = vst [vmem:[#allocation25_spill] sm:$0xff] %v4237_v37 }
 0x104   : > { %v4239_v40 = vpop.f32.mrf.mxu1 }
 0x107   : > { %v4296_v45 = vpop.f32.mrf.mxu0 }
 0x10a   : > { %v4243_v49 = vpop.f32.mrf.mxu2 }
 0x10b   : > { %5636 = vst [vmem:[#allocation26_spill] sm:$0xff] %v4243_v49  ;;  %v3473_v49 = vld [vmem:[#allocation7 + $0x28] sm:$0xf0] }
 0x10c   : > { %v4246_v52 = vpop.f32.mrf.mxu1 }
 0x10f   : > { %3314 = vmatmul.msk.bf16.gmra.mxu1 %vm698_vm1, %v3550_v51  ;;  %3397 = vmatmul.msk.bf16.vlgmr.msrb.gmra.mxu2 %vm698_vm1, %v4106_v22  ;;  %v3481_v51 = vld [vmem:[#allocation7 + $0x38] sm:$0xf0]  ;;  %v4314_v20 = vpop.f32.mrf.mxu0 }
 0x110   : > { %v4301_v61 = vor.u32 %v3583_v46, %v3481_v51  ;;  %v3582_v46 = vld [vmem:[#allocation7 + $0x24] sm:$0xf0] }
 0x112   : > { %v4260_v63 = vpop.f32.mrf.mxu2  ;;  %2195 = vmatpush.bf16.msrb.mxu0 %v4301_v61 }
 0x113   : > { %5637 = vst [vmem:[#allocation27_spill] sm:$0xff] %v4260_v63  ;;  %v3581_v63 = vld [vmem:[#allocation7 + $0x24] sm:$0xf] }
 0x114   : > { %v4263_v1 = vpop.f32.mrf.mxu1  ;;  %v3476_v28 = vor.u32 %v3581_v63, %v3473_v49 }
 0x116   : > { %2196 = vmatpush.bf16.msrb.mxu0 %v3476_v28 }
 0x11a   : > { %v4269_v11 = vpop.f32.mrf.mxu2  ;;  %2197 = vmatpush.bf16.msrb.mxu0 %v3468_v33 }
 0x11b   : > { %5638 = vst [vmem:[#allocation28_spill] sm:$0xff] %v4269_v11  ;;  %v4324_v11 = vpop.f32.mrf.mxu0 }
 0x11c   : > { %v4271_v13 = vpop.f32.mrf.mxu1 }
 0x11f   : > { %3341 = vmatmul.msk.bf16.vlgmr.msrb.gmra.mxu1 %vm698_vm1, %v4106_v22  ;;  %3398 = vmatmul.msk.bf16.gmra.mxu2 %vm698_vm1, %v4115_v25 }
 0x122   : > { %v4284_v27 = vpop.f32.mrf.mxu2 }
 0x123   : > { %5639 = vst [vmem:[#allocation29_spill] sm:$0xff] %v4284_v27 }
 0x124   : > { %v4286_v29 = vpop.f32.mrf.mxu1 }
 0x12a   : > { %v4292_v22 = vpop.f32.mrf.mxu2 }
 0x12b   : > { %5640 = vst [vmem:[#allocation30_spill] sm:$0xff] %v4292_v22  ;;  %v4320_v22 = vpop.f32.mrf.mxu3 }
 0x12c   : > { %v4294_v44 = vpop.f32.mrf.mxu1  ;;  %5643 = vst [vmem:[#allocation33_spill] sm:$0xff] %v4320_v22  ;;  %v3574_v22 = vld [vmem:[%s4063_s13 + $0x1a8] sm:$0xff] }
 0x12d   : > { %3338 = vmatmul.msk.bf16.gmra.mxu3 %vm698_vm1, %v3574_v22  ;;  %v3463_v22 = vld [vmem:[#allocation7 + $0x10] sm:$0xf] }
 0x12f   : > { %3342 = vmatmul.msk.bf16.gmra.mxu1 %vm698_vm1, %v4115_v25  ;;  %3399 = vmatmul.msk.bf16.gmra.mxu2 %vm698_vm1, %v4127_v32  ;;  %v3472_v25 = vor.u32 %v3582_v46, %v3471_v41 }
 0x131   : > { %1907 = vmatpush.bf16.msrb.mxu3 %v3472_v25  ;;  %v4341_v25 = vpop.f32.mrf.mxu0 }
 0x132   : > { %v4310_v8 = vpop.f32.mrf.mxu2 }
 0x133   : > { %5641 = vst [vmem:[#allocation31_spill] sm:$0xff] %v4310_v8  ;;  %v4327_v8 = vld [vmem:[%s4063_s13 + $0x58] sm:$0xff]  ;;  %v4337_v41 = vpop.f32.mrf.mxu3 }
 0x134   : > { %v4312_v19 = vpop.f32.mrf.mxu1  ;;  %3296 = vmatmul.msk.bf16.gmra.mxu0 %vm698_vm1, %v4327_v8  ;;  %5645 = vst [vmem:[#allocation35_spill] sm:$0xff] %v4337_v41  ;;  %v4354_v41 = vld [vmem:[%s4063_s13 + $0x60] sm:$0xff] }
 0x13a   : > { %v4318_v51 = vpop.f32.mrf.mxu2 }
 0x13b   : > { %5642 = vst [vmem:[#allocation32_spill] sm:$0xff] %v4318_v51 }
 0x13c   : > { %v4322_v27 = vpop.f32.mrf.mxu1 }
 0x13f   : > { %3343 = vmatmul.msk.bf16.gmra.mxu1 %vm698_vm1, %v4127_v32  ;;  %3400 = vmatmul.msk.bf16.gmra.mxu2 %vm698_vm1, %v4149_v43  ;;  %v4347_v32 = vpop.f32.mrf.mxu3 }
 0x140   : > { %5647 = vst [vmem:[#allocation37_spill] sm:$0xff] %v4347_v32  ;;  %v3580_v32 = vld [vmem:[#allocation7 + $0x14] sm:$0xf0] }
 0x142   : > { %v4335_v21 = vpop.f32.mrf.mxu2 }
 0x143   : > { %5644 = vst [vmem:[#allocation34_spill] sm:$0xff] %v4335_v21  ;;  %v4351_v21 = vpop.f32.mrf.mxu0 }
 0x144   : > { %v4339_v46 = vpop.f32.mrf.mxu1  ;;  %3297 = vmatmul.msk.bf16.gmra.mxu0 %vm698_vm1, %v4354_v41 }
 0x147   : > { %v4364_v49 = vpop.f32.mrf.mxu3 }
 0x148   : > { %5649 = vst [vmem:[#allocation39_spill] sm:$0xff] %v4364_v49 }
 0x14a   : > { %v4345_v51 = vpop.f32.mrf.mxu2 }
 0x14b   : > { %5646 = vst [vmem:[#allocation36_spill] sm:$0xff] %v4345_v51  ;;  %v3464_v51 = vor.u32 %v3580_v32, %v3463_v22  ;;  %v4368_v9 = vpop.f32.mrf.mxu0 }
 0x14c   : > { %v4349_v37 = vpop.f32.mrf.mxu1 }
 0x14d   : > { %1908 = vmatpush.bf16.msrb.mxu3 %v3464_v51 }
 0x14f   : > { %3344 = vmatmul.msk.bf16.gmra.mxu1 %vm698_vm1, %v4149_v43  ;;  %3401 = vmatmul.msk.bf16.gmra.mxu2 %vm698_vm1, %v4168_v54  ;;  %v3575_v43 = vld [vmem:[%s4063_s13 + $0x1b0] sm:$0xff]  ;;  %v4376_v32 = vpop.f32.mrf.mxu3 }
 0x150   : > { %3339 = vmatmul.msk.bf16.gmra.mxu3 %vm698_vm1, %v3575_v43  ;;  %5653 = vst [vmem:[#allocation43_spill] sm:$0xff] %v4376_v32  ;;  %v3576_v32 = vld [vmem:[%s4063_s13 + $0x1b8] sm:$0xff] }
 0x152   : > { %v4362_v24 = vpop.f32.mrf.mxu2 }
 0x153   : > { %5648 = vst [vmem:[#allocation38_spill] sm:$0xff] %v4362_v24  ;;  %v4378_v22 = vpop.f32.mrf.mxu0  ;;  %v4381_v24 = vld [vmem:[%s4063_s13 + $0x68] sm:$0xff] }
 0x154   : > { %v4366_v63 = vpop.f32.mrf.mxu1  ;;  %3298 = vmatmul.msk.bf16.gmra.mxu0 %vm698_vm1, %v4381_v24 }
 0x155   : > { %5650 = vst [vmem:[#allocation40_spill] sm:$0xff] %v4366_v63  ;;  %v4407_v63 = vld [vmem:[%s4063_s13 + $0x70] sm:$0xff] }
 0x15a   : > { %v4372_v5 = vpop.f32.mrf.mxu2 }
 0x15b   : > { %5651 = vst [vmem:[#allocation41_spill] sm:$0xff] %v4372_v5  ;;  %v4393_v49 = vpop.f32.mrf.mxu0  ;;  %v3455_v5 = vld [vmem:[#allocation7] sm:$0xf] }
 0x15c   : > { %v4374_v0 = vpop.f32.mrf.mxu1  ;;  %v3456_v50 = vor.u32 %v3578_v55, %v3455_v5  ;;  %v3577_v55 = vld [vmem:[#allocation7 + $0x4] sm:$0xf] }
 0x15d   : > { %5652 = vst [vmem:[#allocation42_spill] sm:$0xff] %v4374_v0 }
 0x15e   : > { %1909 = vmatpush.bf16.msrb.mxu3 %v3456_v50 }
 0x15f   : > { %3345 = vmatmul.msk.bf16.gmra.mxu1 %vm698_vm1, %v4168_v54  ;;  %3402 = vmatmul.msk.bf16.gmra.mxu2 %vm698_vm1, %v4190_v4  ;;  %v4396_v54 = vpop.f32.mrf.mxu3 }
 0x160   : > { %5656 = vst [vmem:[#allocation46_spill] sm:$0xff] %v4396_v54  ;;  %3340 = vmatmul.msk.bf16.gmra.mxu3 %vm698_vm1, %v3576_v32 }
 0x162   : > { %v4389_v51 = vpop.f32.mrf.mxu2  ;;  %3599 = vmatpush.bf16.msra.mxu3 %v4138_v38 }
 0x163   : > { %5654 = vst [vmem:[#allocation44_spill] sm:$0xff] %v4389_v51  ;;  %v4404_v0 = vpop.f32.mrf.mxu0 }
 0x164   : > { %v4391_v43 = vpop.f32.mrf.mxu1  ;;  %3299 = vmatmul.msk.bf16.gmra.mxu0 %vm698_vm1, %v4407_v63 }
 0x165   : > { %5655 = vst [vmem:[#allocation45_spill] sm:$0xff] %v4391_v43 }
 0x166   : > { %3600 = vmatpush.bf16.msra.mxu3 %v4178_v59  ;;  %v3457_v59 = vld [vmem:[#allocation7 + $0x8] sm:$0xf0] }
 0x167   : > { %v4414_v39 = vpop.f32.mrf.mxu3  ;;  %v3460_v5 = vor.u32 %v3577_v55, %v3457_v59 }
 0x168   : > { %5659 = vst [vmem:[#allocation49_spill] sm:$0xff] %v4414_v39 }
 0x169   : > { %2198 = vmatpush.bf16.msrb.mxu0 %v3460_v5 }
 0x16a   : > { %v4400_v51 = vpop.f32.mrf.mxu2  ;;  %3601 = vmatpush.bf16.msra.mxu3 %v4215_v23 }
 0x16b   : > { %5657 = vst [vmem:[#allocation47_spill] sm:$0xff] %v4400_v51  ;;  %v4423_v50 = vpop.f32.mrf.mxu0 }
 0x16c   : > { %v4402_v43 = vpop.f32.mrf.mxu1 }
 0x16d   : > { %5658 = vst [vmem:[#allocation48_spill] sm:$0xff] %v4402_v43 }
 0x16e   : > { %3602 = vmatpush.bf16.msra.mxu3 %v4258_v62 }
 0x16f   : > { %3346 = vmatmul.msk.bf16.gmra.mxu1 %vm698_vm1, %v4190_v4  ;;  %3403 = vmatmul.msk.bf16.gmra.mxu2 %vm698_vm1, %v4209_v16  ;;  %v4429_v32 = vpop.f32.mrf.mxu3 }
 0x170   : > { %5663 = vst [vmem:[#allocation53_spill] sm:$0xff] %v4429_v32 }
 0x172   : > { %v4419_v38 = vpop.f32.mrf.mxu2  ;;  %3603 = vmatpush.bf16.msra.mxu3 %v4301_v61 }
 0x173   : > { %5660 = vst [vmem:[#allocation50_spill] sm:$0xff] %v4419_v38  ;;  %v4433_v23 = vpop.f32.mrf.mxu0 }
 0x174   : > { %v4421_v47 = vpop.f32.mrf.mxu1 }
 0x175   : > { %5661 = vst [vmem:[#allocation51_spill] sm:$0xff] %v4421_v47 }
 0x176   : > { %3604 = vmatpush.bf16.msra.mxu3 %v3476_v28 }
 0x177   : > { %v4443_v55 = vpop.f32.mrf.mxu3 }
 0x178   : > { %5667 = vst [vmem:[#allocation57_spill] sm:$0xff] %v4443_v55 }
 0x17a   : > { %v4427_v4 = vpop.f32.mrf.mxu2  ;;  %3605 = vmatpush.bf16.msra.mxu3 %v3468_v33 }
 0x17b   : > { %5662 = vst [vmem:[#allocation52_spill] sm:$0xff] %v4427_v4  ;;  %v4445_v59 = vpop.f32.mrf.mxu0 }
 0x17c   : > { %v4431_v39 = vpop.f32.mrf.mxu1 }
 0x17d   : > { %5664 = vst [vmem:[#allocation54_spill] sm:$0xff] %v4431_v39 }
 0x17e   : > { %3606 = vmatpush.bf16.msra.mxu3 %v3460_v5  ;;  %v402_v5 = vld [vmem:[#allocation5] sm:$0x7] }
 0x17f   : > { %3347 = vmatmul.msk.bf16.gmra.mxu1 %vm698_vm1, %v4209_v16  ;;  %3404 = vmatmul.msk.bf16.gmra.mxu2 %vm698_vm1, %v4231_v36  ;;  %v4455_v33 = vpop.f32.mrf.mxu3 }
 0x180   : > { %5670 = vst [vmem:[#allocation60_spill] sm:$0xff] %v4455_v33 }
 0x182   : > { %v4439_v62 = vpop.f32.mrf.mxu2 }
 0x183   : > { %5665 = vst [vmem:[#allocation55_spill] sm:$0xff] %v4439_v62  ;;  %v4457_v16 = vpop.f32.mrf.mxu0  ;;  %v4461_v62 = vperm.slane %v402_v5, 2 }
 0x184   : > { %v4441_v61 = vpop.f32.mrf.mxu1 }
 0x185   : > { %5666 = vst [vmem:[#allocation56_spill] sm:$0xff] %v4441_v61 }
 0x187   : > { %v4466_v4 = vpop.f32.mrf.mxu3 }
 0x188   : > { %5672 = vst [vmem:[#allocation62_spill] sm:$0xff] %v4466_v4 }
 0x18a   : > { %v4447_v32 = vpop.f32.mrf.mxu2 }
 0x18b   : > { %5668 = vst [vmem:[#allocation58_spill] sm:$0xff] %v4447_v32  ;;  %v4464_v32 = vperm.slane %v402_v5, 1 }
 0x18c   : > { %v4449_v28 = vpop.f32.mrf.mxu1 }
 0x18d   : > { %5669 = vst [vmem:[#allocation59_spill] sm:$0xff] %v4449_v28  ;;  %v4474_v28 = vpop.f32.mrf.mxu0 }
 0x18f   : > { %3348 = vmatmul.msk.bf16.gmra.mxu1 %vm698_vm1, %v4231_v36  ;;  %3405 = vmatmul.msk.bf16.gmra.mxu2 %vm698_vm1, %v4251_v57  ;;  %v4470_v36 = vperm.slane %v402_v5, 0 }
 0x191   : > { %v887_v61 = vadd.f32 %v4248_v56, %v4470_v36  ;;  %v892_v5 = vadd.f32 %v4273_v17, %v4470_v36 }
 0x192   : > { %v1464_v54 = vpop.f32.mrf.mxu2 }
 0x193   : > { %v1465_v33 = vadd.f32 %v1464_v54, %v4461_v62 }
 0x194   : > { %v4459_v55 = vpop.f32.mrf.mxu1 }
 0x195   : > { %5671 = vst [vmem:[#allocation61_spill] sm:$0xff] %v4459_v55 }
 0x19a   : > { %v1466_v38 = vpop.f32.mrf.mxu2 }
 0x19b   : > { %v1467_v51 = vadd.f32 %v1466_v38, %v4461_v62  ;;  %v4486_v38 = vpop.f32.mrf.mxu3 }
 0x19c   : > { %v1175_v55 = vpop.f32.mrf.mxu1  ;;  %5673 = vst [vmem:[#allocation63_spill] sm:$0xff] %v4486_v38 }
 0x19d   : > { %v1744_v39 = vpack.c.bf16 %v1467_v51, %v1465_v33  ;;  %v1176_v47 = vadd.f32 %v1175_v55, %v4464_v32  ;;  %v889_v51 = vadd.f32 %v4265_v2, %v4470_v36 }
 0x19f   : > { %v2480_v43 = vpack.c.bf16 %v1176_v47, %v887_v61  ;;  %3349 = vmatmul.msk.bf16.gmra.mxu1 %vm698_vm1, %v4251_v57  ;;  %3406 = vmatmul.msk.bf16.gmra.mxu2 %vm698_vm1, %v4276_v18  ;;  %v4491_v57 = vpop.f32.mrf.mxu0 }
 0x1a0   : > { %1910 = vmatmul.bf16.vlgmr.msrb.gmra.mxu3 %v1744_v39  ;;  %2199 = vmatmul.bf16.vlgmr.msrb.gmra.mxu0 %v1744_v39 }
 0x1a1   : > { %2592 = vst [vmem:[%s4483_s23] sm:$0xff] %v2480_v43 }
 0x1a2   : > { %v1469_v54 = vpop.f32.mrf.mxu2 }
 0x1a3   : > { %v1470_v55 = vadd.f32 %v1469_v54, %v4461_v62  ;;  %v4499_v4 = vpop.f32.mrf.mxu3 }
 0x1a4   : > { %v1177_v56 = vpop.f32.mrf.mxu1 }
 0x1a5   : > { %v1178_v47 = vadd.f32 %v1177_v56, %v4464_v32 }
 0x1a7   : > { %v2481_v61 = vpack.c.bf16 %v1178_v47, %v889_v51  ;;  %v4505_v54 = vpop.f32.mrf.mxu0  ;;  %v894_v47 = vadd.f32 %v4288_v30, %v4470_v36 }
 0x1a9   : > { %2593 = vst [vmem:[%s4483_s23 + $0x10] sm:$0xff] %v2481_v61 }
 0x1aa   : > { %v1471_v39 = vpop.f32.mrf.mxu2 }
 0x1ab   : > { %v1472_v33 = vadd.f32 %v1471_v39, %v4461_v62 }
 0x1ac   : > { %v1180_v43 = vpop.f32.mrf.mxu1 }
 0x1ad   : > { %v1745_v38 = vpack.c.bf16 %v1472_v33, %v1470_v55  ;;  %v1181_v2 = vadd.f32 %v1180_v43, %v4464_v32  ;;  %v4511_v55 = vpop.f32.mrf.mxu3 }
 0x1af   : > { %v2482_v56 = vpack.c.bf16 %v1181_v2, %v892_v5  ;;  %3350 = vmatmul.msk.bf16.gmra.mxu1 %vm698_vm1, %v4276_v18  ;;  %3407 = vmatmul.msk.bf16.gmra.mxu2 %vm698_vm1, %v4299_v60  ;;  %v4514_v18 = vpop.f32.mrf.mxu0  ;;  %v897_v2 = vadd.f32 %v4296_v45, %v4470_v36 }
 0x1b0   : > { %1915 = vmatmul.bf16.gmra.mxu3 %v1745_v38  ;;  %2204 = vmatmul.bf16.gmra.mxu0 %v1745_v38 }
 0x1b1   : > { %2594 = vst [vmem:[%s4483_s23 + $0x20] sm:$0xff] %v2482_v56 }
 0x1b2   : > { %v1474_v51 = vpop.f32.mrf.mxu2 }
 0x1b3   : > { %v1475_v43 = vadd.f32 %v1474_v51, %v4461_v62 }
 0x1b4   : > { %v1182_v17 = vpop.f32.mrf.mxu1 }
 0x1b5   : > { %v1183_v61 = vadd.f32 %v1182_v17, %v4464_v32  ;;  %v4526_v51 = vpop.f32.mrf.mxu3 }
 0x1b6   : > { %5674 = vst [vmem:[#allocation64_spill] sm:$0xff] %v4526_v51 }
 0x1b7   : > { %v2483_v39 = vpack.c.bf16 %v1183_v61, %v894_v47  ;;  %v4528_v61 = vpop.f32.mrf.mxu0 }
 0x1b9   : > { %2595 = vst [vmem:[%s4483_s23 + $0x30] sm:$0xff] %v2483_v39  ;;  %v899_v39 = vadd.f32 %v4314_v20, %v4470_v36 }
 0x1ba   : > { %v1476_v33 = vpop.f32.mrf.mxu2 }
 0x1bb   : > { %v1477_v38 = vadd.f32 %v1476_v33, %v4461_v62 }
 0x1bc   : > { %v1185_v5 = vpop.f32.mrf.mxu1 }
 0x1bd   : > { %v1746_v30 = vpack.c.bf16 %v1477_v38, %v1475_v43  ;;  %v1186_v56 = vadd.f32 %v1185_v5, %v4464_v32 }
 0x1bf   : > { %v2484_v17 = vpack.c.bf16 %v1186_v56, %v897_v2  ;;  %3351 = vmatmul.msk.bf16.gmra.mxu1 %vm698_vm1, %v4299_v60  ;;  %3408 = vmatmul.msk.bf16.gmra.mxu2 %vm698_vm1, %v4327_v8  ;;  %v4536_v2 = vpop.f32.mrf.mxu3  ;;  %v902_v56 = vadd.f32 %v4324_v11, %v4470_v36  ;;  %v4541_v51 = vpop.f32.mrf.mxu0  ;;  %v904_v11 = vadd.f32 %v4341_v25, %v4470_v36 }
 0x1c0   : > { %1920 = vmatmul.bf16.gmra.mxu3 %v1746_v30  ;;  %2209 = vmatmul.bf16.gmra.mxu0 %v1746_v30 }
 0x1c1   : > { %2596 = vst [vmem:[%s4483_s23 + $0x40] sm:$0xff] %v2484_v17 }
 0x1c2   : > { %v1479_v47 = vpop.f32.mrf.mxu2 }
 0x1c3   : > { %v1480_v38 = vadd.f32 %v1479_v47, %v4461_v62 }
 0x1c4   : > { %v1187_v45 = vpop.f32.mrf.mxu1 }
 0x1c5   : > { %v1188_v33 = vadd.f32 %v1187_v45, %v4464_v32 }
 0x1c7   : > { %v2485_v43 = vpack.c.bf16 %v1188_v33, %v899_v39 }
 0x1c9   : > { %2597 = vst [vmem:[%s4483_s23 + $0x50] sm:$0xff] %v2485_v43  ;;  %v4551_v43 = vpop.f32.mrf.mxu3 }
 0x1ca   : > { %v1481_v60 = vpop.f32.mrf.mxu2 }
 0x1cb   : > { %v1482_v5 = vadd.f32 %v1481_v60, %v4461_v62 }
 0x1cc   : > { %v1190_v30 = vpop.f32.mrf.mxu1 }
 0x1cd   : > { %v1747_v17 = vpack.c.bf16 %v1482_v5, %v1480_v38  ;;  %v1191_v20 = vadd.f32 %v1190_v30, %v4464_v32  ;;  %v4553_v38 = vpop.f32.mrf.mxu0 }
 0x1cf   : > { %v2486_v45 = vpack.c.bf16 %v1191_v20, %v902_v56  ;;  %3352 = vmatmul.msk.bf16.gmra.mxu1 %vm698_vm1, %v4327_v8  ;;  %3409 = vmatmul.msk.bf16.gmra.mxu2 %vm698_vm1, %v4354_v41 }
 0x1d0   : > { %1925 = vmatmul.bf16.gmra.mxu3 %v1747_v17  ;;  %2214 = vmatmul.bf16.gmra.mxu0 %v1747_v17  ;;  %v907_v17 = vadd.f32 %v4351_v21, %v4470_v36 }
 0x1d1   : > { %2598 = vst [vmem:[%s4483_s23 + $0x60] sm:$0xff] %v2486_v45 }
 0x1d2   : > { %v1484_v47 = vpop.f32.mrf.mxu2 }
 0x1d3   : > { %v1485_v5 = vadd.f32 %v1484_v47, %v4461_v62 }
 0x1d4   : > { %v1192_v39 = vpop.f32.mrf.mxu1 }
 0x1d5   : > { %v1193_v33 = vadd.f32 %v1192_v39, %v4464_v32  ;;  %v4565_v39 = vpop.f32.mrf.mxu3  ;;  %v4568_v47 = vpop.f32.mrf.mxu0 }
 0x1d7   : > { %v2487_v60 = vpack.c.bf16 %v1193_v33, %v904_v11  ;;  %v909_v33 = vadd.f32 %v4368_v9, %v4470_v36 }
 0x1d9   : > { %2599 = vst [vmem:[%s4483_s23 + $0x70] sm:$0xff] %v2487_v60 }
 0x1da   : > { %v1486_v8 = vpop.f32.mrf.mxu2 }
 0x1db   : > { %v1487_v30 = vadd.f32 %v1486_v8, %v4461_v62 }
 0x1dc   : > { %v1195_v56 = vpop.f32.mrf.mxu1 }
 0x1dd   : > { %v1748_v25 = vpack.c.bf16 %v1487_v30, %v1485_v5  ;;  %v1196_v20 = vadd.f32 %v1195_v56, %v4464_v32 }
 0x1df   : > { %v2488_v45 = vpack.c.bf16 %v1196_v20, %v907_v17  ;;  %3353 = vmatmul.msk.bf16.gmra.mxu1 %vm698_vm1, %v4354_v41  ;;  %3410 = vmatmul.msk.bf16.gmra.mxu2 %vm698_vm1, %v4381_v24  ;;  %v4574_v41 = vpop.f32.mrf.mxu3  ;;  %v4578_v17 = vpop.f32.mrf.mxu0  ;;  %v912_v20 = vadd.f32 %v4378_v22, %v4470_v36  ;;  %v914_v22 = vadd.f32 %v4393_v49, %v4470_v36 }
 0x1e0   : > { %1930 = vmatmul.bf16.gmra.mxu3 %v1748_v25  ;;  %2219 = vmatmul.bf16.gmra.mxu0 %v1748_v25 }
 0x1e1   : > { %2600 = vst [vmem:[%s4483_s23 + $0x80] sm:$0xff] %v2488_v45 }
 0x1e2   : > { %v1489_v11 = vpop.f32.mrf.mxu2 }
 0x1e3   : > { %v1490_v30 = vadd.f32 %v1489_v11, %v4461_v62 }
 0x1e4   : > { %v1197_v21 = vpop.f32.mrf.mxu1 }
 0x1e5   : > { %v1198_v60 = vadd.f32 %v1197_v21, %v4464_v32 }
 0x1e7   : > { %v2489_v8 = vpack.c.bf16 %v1198_v60, %v909_v33  ;;  %v4588_v33 = vpop.f32.mrf.mxu3 }
 0x1e9   : > { %2601 = vst [vmem:[%s4483_s23 + $0x90] sm:$0xff] %v2489_v8 }
 0x1ea   : > { %v1491_v5 = vpop.f32.mrf.mxu2 }
 0x1eb   : > { %v1492_v56 = vadd.f32 %v1491_v5, %v4461_v62  ;;  %v4593_v5 = vpop.f32.mrf.mxu0 }
 0x1ec   : > { %v1200_v25 = vpop.f32.mrf.mxu1 }
 0x1ed   : > { %v1749_v9 = vpack.c.bf16 %v1492_v56, %v1490_v30  ;;  %v1201_v45 = vadd.f32 %v1200_v25, %v4464_v32 }
 0x1ef   : > { %v2490_v21 = vpack.c.bf16 %v1201_v45, %v912_v20  ;;  %3354 = vmatmul.msk.bf16.gmra.mxu1 %vm698_vm1, %v4381_v24  ;;  %3411 = vmatmul.msk.bf16.gmra.mxu2 %vm698_vm1, %v4407_v63  ;;  %v4600_v45 = vpop.f32.mrf.mxu3 }
 0x1f0   : > { %1935 = vmatmul.bf16.gmra.mxu3 %v1749_v9  ;;  %2224 = vmatmul.bf16.gmra.mxu0 %v1749_v9  ;;  %v917_v9 = vadd.f32 %v4404_v0, %v4470_v36 }
 0x1f1   : > { %2602 = vst [vmem:[%s4483_s23 + $0xa0] sm:$0xff] %v2490_v21 }
 0x1f2   : > { %v1494_v11 = vpop.f32.mrf.mxu2 }
 0x1f3   : > { %v1495_v56 = vadd.f32 %v1494_v11, %v4461_v62  ;;  %v4607_v11 = vpop.f32.mrf.mxu0 }
 0x1f4   : > { %v1202_v60 = vpop.f32.mrf.mxu1 }
 0x1f5   : > { %v1203_v8 = vadd.f32 %v1202_v60, %v4464_v32 }
 0x1f7   : > { %v2491_v30 = vpack.c.bf16 %v1203_v8, %v914_v22  ;;  %v919_v8 = vadd.f32 %v4423_v50, %v4470_v36 }
 0x1f9   : > { %2603 = vst [vmem:[%s4483_s23 + $0xb0] sm:$0xff] %v2491_v30 }
 0x1fa   : > { %v1496_v24 = vpop.f32.mrf.mxu2 }
 0x1fb   : > { %v1497_v25 = vadd.f32 %v1496_v24, %v4461_v62  ;;  %v4613_v24 = vpop.f32.mrf.mxu3 }
 0x1fc   : > { %v1205_v20 = vpop.f32.mrf.mxu1  ;;  %5675 = vst [vmem:[#allocation65_spill] sm:$0xff] %v4613_v24 }
 0x1fd   : > { %v1750_v49 = vpack.c.bf16 %v1497_v25, %v1495_v56  ;;  %v1206_v21 = vadd.f32 %v1205_v20, %v4464_v32 }
 0x1ff   : > { %v2492_v60 = vpack.c.bf16 %v1206_v21, %v917_v9  ;;  %3355 = vmatmul.msk.bf16.gmra.mxu1 %vm698_vm1, %v4407_v63  ;;  %3412 = vmatmul.msk.bf16.gmra.mxu2 %vm698_vm1, %v4067_v7  ;;  %v4616_v63 = vpop.f32.mrf.mxu0  ;;  %v922_v21 = vadd.f32 %v4433_v23, %v4470_v36 }
 0x200   : > { %1940 = vmatmul.bf16.gmra.mxu3 %v1750_v49  ;;  %2229 = vmatmul.bf16.gmra.mxu0 %v1750_v49 }
 0x201   : > { %2604 = vst [vmem:[%s4483_s23 + $0xc0] sm:$0xff] %v2492_v60 }
 0x202   : > { %v1499_v22 = vpop.f32.mrf.mxu2 }
 0x203   : > { %v1500_v20 = vadd.f32 %v1499_v22, %v4461_v62  ;;  %v4627_v22 = vpop.f32.mrf.mxu3 }
 0x204   : > { %v1207_v0 = vpop.f32.mrf.mxu1  ;;  %5676 = vst [vmem:[#allocation66_spill] sm:$0xff] %v4627_v22 }
 0x205   : > { %v1208_v30 = vadd.f32 %v1207_v0, %v4464_v32 }
 0x207   : > { %v2493_v56 = vpack.c.bf16 %v1208_v30, %v919_v8  ;;  %v4630_v30 = vpop.f32.mrf.mxu0 }
 0x209   : > { %2605 = vst [vmem:[%s4483_s23 + $0xd0] sm:$0xff] %v2493_v56  ;;  %v924_v56 = vadd.f32 %v4445_v59, %v4470_v36  ;;  %v1816_v59 = vld [vmem:[#allocation8] sm:$0x3] }
 0x20a   : > { %v1501_v25 = vpop.f32.mrf.mxu2 }
 0x20b   : > { %v1502_v9 = vadd.f32 %v1501_v25, %v4461_v62 }
 0x20c   : > { %v1210_v49 = vpop.f32.mrf.mxu1 }
 0x20d   : > { %v1751_v50 = vpack.c.bf16 %v1502_v9, %v1500_v20  ;;  %v1211_v60 = vadd.f32 %v1210_v49, %v4464_v32  ;;  %v4636_v9 = vpop.f32.mrf.mxu3 }
 0x20e   : > { %5677 = vst [vmem:[#allocation67_spill] sm:$0xff] %v4636_v9 }
 0x20f   : > { %v2494_v0 = vpack.c.bf16 %v1211_v60, %v922_v21  ;;  %3356 = vmatmul.msk.bf16.gmra.mxu1 %vm698_vm1, %v4067_v7  ;;  %3413 = vmatmul.msk.bf16.gmra.mxu2 %vm698_vm1, %v4075_v10  ;;  %v927_v60 = vadd.f32 %v4457_v16, %v4470_v36 }
 0x210   : > { %1945 = vmatmul.bf16.gmra.mxu3 %v1751_v50  ;;  %2234 = vmatmul.bf16.gmra.mxu0 %v1751_v50 }
 0x211   : > { %2606 = vst [vmem:[%s4483_s23 + $0xe0] sm:$0xff] %v2494_v0 }
 0x212   : > { %v1504_v8 = vpop.f32.mrf.mxu2 }
 0x213   : > { %v1505_v49 = vadd.f32 %v1504_v8, %v4461_v62  ;;  %v4647_v8 = vperm.slane %v1816_v59, 1 }
 0x214   : > { %v1212_v23 = vpop.f32.mrf.mxu1 }
 0x215   : > { %v1213_v25 = vadd.f32 %v1212_v23, %v4464_v32 }
 0x217   : > { %v2495_v20 = vpack.c.bf16 %v1213_v25, %v924_v56  ;;  %v4649_v56 = vperm.slane %v1816_v59, 0 }
 0x219   : > { %2607 = vst [vmem:[%s4483_s23 + $0xf0] sm:$0xff] %v2495_v20 }
 0x21a   : > { %v1506_v7 = vpop.f32.mrf.mxu2 }
 0x21b   : > { %v1507_v21 = vadd.f32 %v1506_v7, %v4461_v62 }
 0x21c   : > { %v1215_v50 = vpop.f32.mrf.mxu1 }
 0x21d   : > { %v1752_v0 = vpack.c.bf16 %v1507_v21, %v1505_v49  ;;  %v1216_v22 = vadd.f32 %v1215_v50, %v4464_v32  ;;  %v2200_v24 = vpop.f32.mrf.mxu0 }
 0x21e   : > { %v2201_v20 = vadd.f32 %v2200_v24, %v4647_v8 }
 0x21f   : > { %v2496_v23 = vpack.c.bf16 %v1216_v22, %v927_v60  ;;  %3357 = vmatmul.msk.bf16.gmra.mxu1 %vm698_vm1, %v4075_v10  ;;  %3414 = vmatmul.msk.bf16.gmra.mxu2 %vm698_vm1, %v4082_v12  ;;  %v929_v10 = vadd.f32 %v4474_v28, %v4470_v36 }
 0x220   : > { %1950 = vmatmul.bf16.gmra.mxu3 %v1752_v0  ;;  %2239 = vmatmul.bf16.gmra.mxu0 %v1752_v0 }
 0x221   : > { %2608 = vst [vmem:[%s4483_s23 + $0x100] sm:$0xff] %v2496_v23 }
 0x222   : > { %v1509_v16 = vpop.f32.mrf.mxu2 }
 0x223   : > { %v1911_v25 = vpop.f32.mrf.mxu3  ;;  %v1510_v59 = vadd.f32 %v1509_v16, %v4461_v62 }
 0x224   : > { %v1912_v22 = vadd.f32 %v1911_v25, %v4649_v56  ;;  %v1217_v7 = vpop.f32.mrf.mxu1 }
 0x225   : > { %v1218_v49 = vadd.f32 %v1217_v7, %v4464_v32  ;;  %v2202_v21 = vpop.f32.mrf.mxu0  ;;  %v932_v7 = vadd.f32 %v4491_v57, %v4470_v36 }
 0x226   : > { %v2704_v50 = vpack.c.bf16 %v2201_v20, %v1912_v22  ;;  %v2203_v25 = vadd.f32 %v2202_v21, %v4647_v8 }
 0x227   : > { %v2497_v60 = vpack.c.bf16 %v1218_v49, %v929_v10 }
 0x228   : > { %2816 = vst [vmem:[%s4483_s23 + $0x8] sm:$0xff] %v2704_v50 }
 0x229   : > { %2609 = vst [vmem:[%s4483_s23 + $0x110] sm:$0xff] %v2497_v60 }
 0x22a   : > { %v1511_v0 = vpop.f32.mrf.mxu2 }
 0x22b   : > { %v1512_v23 = vadd.f32 %v1511_v0, %v4461_v62  ;;  %v1913_v24 = vpop.f32.mrf.mxu3  ;;  %v934_v0 = vadd.f32 %v4505_v54, %v4470_v36 }
 0x22c   : > { %v1914_v9 = vadd.f32 %v1913_v24, %v4649_v56  ;;  %v1220_v28 = vpop.f32.mrf.mxu1 }
 0x22d   : > { %v1753_v20 = vpack.c.bf16 %v1512_v23, %v1510_v59  ;;  %v1221_v22 = vadd.f32 %v1220_v28, %v4464_v32  ;;  %v2205_v10 = vpop.f32.mrf.mxu0 }
 0x22e   : > { %v2705_v49 = vpack.c.bf16 %v2203_v25, %v1914_v9  ;;  %v2206_v21 = vadd.f32 %v2205_v10, %v4647_v8  ;;  %v937_v10 = vadd.f32 %v4514_v18, %v4470_v36 }
 0x22f   : > { %v2498_v50 = vpack.c.bf16 %v1221_v22, %v932_v7  ;;  %3358 = vmatmul.msk.bf16.gmra.mxu1 %vm698_vm1, %v4082_v12  ;;  %3415 = vmatmul.msk.bf16.gmra.mxu2 %vm698_vm1, %v4089_v14 }
 0x230   : > { %2817 = vst [vmem:[%s4483_s23 + $0x18] sm:$0xff] %v2705_v49  ;;  %1955 = vmatmul.bf16.gmra.mxu3 %v1753_v20  ;;  %2244 = vmatmul.bf16.gmra.mxu0 %v1753_v20 }
 0x231   : > { %2610 = vst [vmem:[%s4483_s23 + $0x120] sm:$0xff] %v2498_v50 }
 0x232   : > { %v1514_v16 = vpop.f32.mrf.mxu2 }
 0x233   : > { %v1916_v57 = vpop.f32.mrf.mxu3  ;;  %v1515_v25 = vadd.f32 %v1514_v16, %v4461_v62  ;;  %v3692_v16 = vld [vmem:[%s4063_s13 + $0x90] sm:$0xff] }
 0x234   : > { %v1917_v60 = vadd.f32 %v1916_v57, %v4649_v56  ;;  %v1222_v9 = vpop.f32.mrf.mxu1 }
 0x235   : > { %v1223_v12 = vadd.f32 %v1222_v9, %v4464_v32  ;;  %v2207_v59 = vpop.f32.mrf.mxu0  ;;  %v3693_v9 = vld [vmem:[%s4063_s13 + $0x98] sm:$0xff] }
 0x236   : > { %v2706_v23 = vpack.c.bf16 %v2206_v21, %v1917_v60  ;;  %v2208_v20 = vadd.f32 %v2207_v59, %v4647_v8 }
 0x237   : > { %v2499_v14 = vpack.c.bf16 %v1223_v12, %v934_v0 }
 0x238   : > { %2818 = vst [vmem:[%s4483_s23 + $0x28] sm:$0xff] %v2706_v23 }
 0x239   : > { %2611 = vst [vmem:[%s4483_s23 + $0x130] sm:$0xff] %v2499_v14  ;;  %v939_v14 = vadd.f32 %v4528_v61, %v4470_v36 }
 0x23a   : > { %v1516_v24 = vpop.f32.mrf.mxu2 }
 0x23b   : > { %v1517_v28 = vadd.f32 %v1516_v24, %v4461_v62  ;;  %v1918_v7 = vpop.f32.mrf.mxu3 }
 0x23c   : > { %v1919_v54 = vadd.f32 %v1918_v7, %v4649_v56  ;;  %v1225_v22 = vpop.f32.mrf.mxu1 }
 0x23d   : > { %v1754_v49 = vpack.c.bf16 %v1517_v28, %v1515_v25  ;;  %v1226_v50 = vadd.f32 %v1225_v22, %v4464_v32  ;;  %v2210_v57 = vpop.f32.mrf.mxu0 }
 0x23e   : > { %v2707_v21 = vpack.c.bf16 %v2208_v20, %v1919_v54  ;;  %v2211_v12 = vadd.f32 %v2210_v57, %v4647_v8  ;;  %v942_v57 = vadd.f32 %v4541_v51, %v4470_v36 }
 0x23f   : > { %v2500_v60 = vpack.c.bf16 %v1226_v50, %v937_v10  ;;  %3359 = vmatmul.msk.bf16.gmra.mxu1 %vm698_vm1, %v3692_v16  ;;  %3416 = vmatmul.msk.bf16.gmra.mxu2 %vm698_vm1, %v3693_v9 }
 0x240   : > { %2819 = vst [vmem:[%s4483_s23 + $0x38] sm:$0xff] %v2707_v21  ;;  %1960 = vmatmul.bf16.gmra.mxu3 %v1754_v49  ;;  %2249 = vmatmul.bf16.gmra.mxu0 %v1754_v49 }
 0x241   : > { %2612 = vst [vmem:[%s4483_s23 + $0x140] sm:$0xff] %v2500_v60 }
 0x242   : > { %v1519_v0 = vpop.f32.mrf.mxu2 }
 0x243   : > { %v1921_v18 = vpop.f32.mrf.mxu3  ;;  %v1520_v54 = vadd.f32 %v1519_v0, %v4461_v62  ;;  %v3694_v0 = vld [vmem:[%s4063_s13 + $0xa0] sm:$0xff] }
 0x244   : > { %v1922_v59 = vadd.f32 %v1921_v18, %v4649_v56  ;;  %v1227_v23 = vpop.f32.mrf.mxu1 }
 0x245   : > { %v1228_v24 = vadd.f32 %v1227_v23, %v4464_v32  ;;  %v2212_v25 = vpop.f32.mrf.mxu0 }
 0x246   : > { %v2708_v28 = vpack.c.bf16 %v2211_v12, %v1922_v59  ;;  %v2213_v49 = vadd.f32 %v2212_v25, %v4647_v8  ;;  %v944_v25 = vadd.f32 %v4553_v38, %v4470_v36 }
 0x247   : > { %v2501_v7 = vpack.c.bf16 %v1228_v24, %v939_v14 }
 0x248   : > { %2820 = vst [vmem:[%s4483_s23 + $0x48] sm:$0xff] %v2708_v28 }
 0x249   : > { %2613 = vst [vmem:[%s4483_s23 + $0x150] sm:$0xff] %v2501_v7 }
 0x24a   : > { %v1521_v20 = vpop.f32.mrf.mxu2 }
 0x24b   : > { %v1522_v22 = vadd.f32 %v1521_v20, %v4461_v62  ;;  %v1923_v10 = vpop.f32.mrf.mxu3 }
 0x24c   : > { %v1924_v61 = vadd.f32 %v1923_v10, %v4649_v56  ;;  %v1230_v50 = vpop.f32.mrf.mxu1 }
 0x24d   : > { %v1755_v21 = vpack.c.bf16 %v1522_v22, %v1520_v54  ;;  %v1231_v60 = vadd.f32 %v1230_v50, %v4464_v32  ;;  %v2215_v16 = vpop.f32.mrf.mxu0 }
 0x24e   : > { %v2709_v18 = vpack.c.bf16 %v2213_v49, %v1924_v61  ;;  %v2216_v51 = vadd.f32 %v2215_v16, %v4647_v8 }
 0x24f   : > { %v2502_v12 = vpack.c.bf16 %v1231_v60, %v942_v57  ;;  %3360 = vmatmul.msk.bf16.gmra.mxu1 %vm698_vm1, %v3693_v9  ;;  %3417 = vmatmul.msk.bf16.gmra.mxu2 %vm698_vm1, %v3694_v0  ;;  %v947_v57 = vadd.f32 %v4568_v47, %v4470_v36 }
 0x250   : > { %2821 = vst [vmem:[%s4483_s23 + $0x58] sm:$0xff] %v2709_v18  ;;  %1965 = vmatmul.bf16.gmra.mxu3 %v1755_v21  ;;  %2254 = vmatmul.bf16.gmra.mxu0 %v1755_v21 }
 0x251   : > { %2614 = vst [vmem:[%s4483_s23 + $0x160] sm:$0xff] %v2502_v12 }
 0x252   : > { %v1524_v59 = vpop.f32.mrf.mxu2 }
 0x253   : > { %v1926_v23 = vpop.f32.mrf.mxu3  ;;  %v1525_v22 = vadd.f32 %v1524_v59, %v4461_v62  ;;  %v3695_v59 = vld [vmem:[%s4063_s13 + $0xa8] sm:$0xff] }
 0x254   : > { %v1927_v14 = vadd.f32 %v1926_v23, %v4649_v56  ;;  %v1232_v24 = vpop.f32.mrf.mxu1 }
 0x255   : > { %v1233_v9 = vadd.f32 %v1232_v24, %v4464_v32  ;;  %v2217_v28 = vpop.f32.mrf.mxu0 }
 0x256   : > { %v2710_v7 = vpack.c.bf16 %v2216_v51, %v1927_v14  ;;  %v2218_v61 = vadd.f32 %v2217_v28, %v4647_v8 }
 0x257   : > { %v2503_v20 = vpack.c.bf16 %v1233_v9, %v944_v25  ;;  %v949_v25 = vadd.f32 %v4578_v17, %v4470_v36 }
 0x258   : > { %2822 = vst [vmem:[%s4483_s23 + $0x68] sm:$0xff] %v2710_v7 }
 0x259   : > { %2615 = vst [vmem:[%s4483_s23 + $0x170] sm:$0xff] %v2503_v20 }
 0x25a   : > { %v1526_v54 = vpop.f32.mrf.mxu2 }
 0x25b   : > { %v1527_v10 = vadd.f32 %v1526_v54, %v4461_v62  ;;  %v1928_v49 = vpop.f32.mrf.mxu3 }
 0x25c   : > { %v1929_v38 = vadd.f32 %v1928_v49, %v4649_v56  ;;  %v1235_v50 = vpop.f32.mrf.mxu1 }
 0x25d   : > { %v1756_v21 = vpack.c.bf16 %v1527_v10, %v1525_v22  ;;  %v1236_v60 = vadd.f32 %v1235_v50, %v4464_v32  ;;  %v2220_v16 = vpop.f32.mrf.mxu0 }
 0x25e   : > { %v2711_v18 = vpack.c.bf16 %v2218_v61, %v1929_v38  ;;  %v2221_v47 = vadd.f32 %v2220_v16, %v4647_v8  ;;  %v952_v38 = vadd.f32 %v4593_v5, %v4470_v36 }
 0x25f   : > { %v2504_v12 = vpack.c.bf16 %v1236_v60, %v947_v57  ;;  %3361 = vmatmul.msk.bf16.gmra.mxu1 %vm698_vm1, %v3694_v0  ;;  %3418 = vmatmul.msk.bf16.gmra.mxu2 %vm698_vm1, %v3695_v59 }
 0x260   : > { %2823 = vst [vmem:[%s4483_s23 + $0x78] sm:$0xff] %v2711_v18  ;;  %1970 = vmatmul.bf16.gmra.mxu3 %v1756_v21  ;;  %2259 = vmatmul.bf16.gmra.mxu0 %v1756_v21  ;;  %v3696_v18 = vld [vmem:[%s4063_s13 + $0xb0] sm:$0xff] }
 0x261   : > { %2616 = vst [vmem:[%s4483_s23 + $0x180] sm:$0xff] %v2504_v12 }
 0x262   : > { %v1529_v23 = vpop.f32.mrf.mxu2 }
 0x263   : > { %v1931_v51 = vpop.f32.mrf.mxu3  ;;  %v1530_v54 = vadd.f32 %v1529_v23, %v4461_v62 }
 0x264   : > { %v1932_v14 = vadd.f32 %v1931_v51, %v4649_v56  ;;  %v1237_v24 = vpop.f32.mrf.mxu1 }
 0x265   : > { %v1238_v0 = vadd.f32 %v1237_v24, %v4464_v32  ;;  %v2222_v9 = vpop.f32.mrf.mxu0 }
 0x266   : > { %v2712_v28 = vpack.c.bf16 %v2221_v47, %v1932_v14  ;;  %v2223_v49 = vadd.f32 %v2222_v9, %v4647_v8  ;;  %v954_v14 = vadd.f32 %v4607_v11, %v4470_v36 }
 0x267   : > { %v2505_v7 = vpack.c.bf16 %v1238_v0, %v949_v25 }
 0x268   : > { %2824 = vst [vmem:[%s4483_s23 + $0x88] sm:$0xff] %v2712_v28 }
 0x269   : > { %2617 = vst [vmem:[%s4483_s23 + $0x190] sm:$0xff] %v2505_v7 }
 0x26a   : > { %v1531_v20 = vpop.f32.mrf.mxu2 }
 0x26b   : > { %v1532_v22 = vadd.f32 %v1531_v20, %v4461_v62  ;;  %v1933_v10 = vpop.f32.mrf.mxu3 }
 0x26c   : > { %v1934_v17 = vadd.f32 %v1933_v10, %v4649_v56  ;;  %v1240_v61 = vpop.f32.mrf.mxu1  ;;  %v957_v10 = vadd.f32 %v4616_v63, %v4470_v36 }
 0x26d   : > { %v1757_v50 = vpack.c.bf16 %v1532_v22, %v1530_v54  ;;  %v1241_v57 = vadd.f32 %v1240_v61, %v4464_v32  ;;  %v2225_v21 = vpop.f32.mrf.mxu0 }
 0x26e   : > { %v2713_v60 = vpack.c.bf16 %v2223_v49, %v1934_v17  ;;  %v2226_v5 = vadd.f32 %v2225_v21, %v4647_v8 }
 0x26f   : > { %v2506_v16 = vpack.c.bf16 %v1241_v57, %v952_v38  ;;  %3362 = vmatmul.msk.bf16.gmra.mxu1 %vm698_vm1, %v3695_v59  ;;  %3419 = vmatmul.msk.bf16.gmra.mxu2 %vm698_vm1, %v3696_v18  ;;  %v3697_v57 = vld [vmem:[%s4063_s13 + $0xb8] sm:$0xff] }
 0x270   : > { %2825 = vst [vmem:[%s4483_s23 + $0x98] sm:$0xff] %v2713_v60  ;;  %1975 = vmatmul.bf16.gmra.mxu3 %v1757_v50  ;;  %2264 = vmatmul.bf16.gmra.mxu0 %v1757_v50 }
 0x271   : > { %2618 = vst [vmem:[%s4483_s23 + $0x1a0] sm:$0xff] %v2506_v16 }
 0x272   : > { %v1534_v12 = vpop.f32.mrf.mxu2 }
 0x273   : > { %v1936_v23 = vpop.f32.mrf.mxu3  ;;  %v1535_v28 = vadd.f32 %v1534_v12, %v4461_v62 }
 0x274   : > { %v1937_v51 = vadd.f32 %v1936_v23, %v4649_v56  ;;  %v1242_v47 = vpop.f32.mrf.mxu1  ;;  %v959_v23 = vadd.f32 %v4630_v30, %v4470_v36 }
 0x275   : > { %v1243_v59 = vadd.f32 %v1242_v47, %v4464_v32  ;;  %v2227_v24 = vpop.f32.mrf.mxu0 }
 0x276   : > { %v2714_v25 = vpack.c.bf16 %v2226_v5, %v1937_v51  ;;  %v2228_v54 = vadd.f32 %v2227_v24, %v4647_v8 }
 0x277   : > { %v2507_v0 = vpack.c.bf16 %v1243_v59, %v954_v14 }
 0x278   : > { %2826 = vst [vmem:[%s4483_s23 + $0xa8] sm:$0xff] %v2714_v25 }
 0x279   : > { %2619 = vst [vmem:[%s4483_s23 + $0x1b0] sm:$0xff] %v2507_v0 }
 0x27a   : > { %v1536_v9 = vpop.f32.mrf.mxu2 }
 0x27b   : > { %v1537_v7 = vadd.f32 %v1536_v9, %v4461_v62  ;;  %v1938_v20 = vpop.f32.mrf.mxu3 }
 0x27c   : > { %v1939_v11 = vadd.f32 %v1938_v20, %v4649_v56  ;;  %v1245_v22 = vpop.f32.mrf.mxu1 }
 0x27d   : > { %v1758_v49 = vpack.c.bf16 %v1537_v7, %v1535_v28  ;;  %v1246_v17 = vadd.f32 %v1245_v22, %v4464_v32  ;;  %v2230_v61 = vpop.f32.mrf.mxu0  ;;  %v962_v28 = vadd.f32 %v4124_v31, %v4470_v36 }
 0x27e   : > { %v2715_v38 = vpack.c.bf16 %v2228_v54, %v1939_v11  ;;  %v2231_v63 = vadd.f32 %v2230_v61, %v4647_v8 }
 0x27f   : > { %v2508_v50 = vpack.c.bf16 %v1246_v17, %v957_v10  ;;  %3363 = vmatmul.msk.bf16.gmra.mxu1 %vm698_vm1, %v3696_v18  ;;  %3420 = vmatmul.msk.bf16.gmra.mxu2 %vm698_vm1, %v3697_v57  ;;  %v3698_v10 = vld [vmem:[%s4063_s13 + $0xc0] sm:$0xff] }
 0x280   : > { %2827 = vst [vmem:[%s4483_s23 + $0xb8] sm:$0xff] %v2715_v38  ;;  %1980 = vmatmul.bf16.gmra.mxu3 %v1758_v49  ;;  %2269 = vmatmul.bf16.gmra.mxu0 %v1758_v49 }
 0x281   : > { %2620 = vst [vmem:[%s4483_s23 + $0x1c0] sm:$0xff] %v2508_v50  ;;  %v964_v50 = vadd.f32 %v4135_v34, %v4470_v36 }
 0x282   : > { %v1539_v21 = vpop.f32.mrf.mxu2 }
 0x283   : > { %v1941_v60 = vpop.f32.mrf.mxu3  ;;  %v1540_v59 = vadd.f32 %v1539_v21, %v4461_v62 }
 0x284   : > { %v1942_v16 = vadd.f32 %v1941_v60, %v4649_v56  ;;  %v1247_v12 = vpop.f32.mrf.mxu1 }
 0x285   : > { %v1248_v18 = vadd.f32 %v1247_v12, %v4464_v32  ;;  %v2232_v5 = vpop.f32.mrf.mxu0 }
 0x286   : > { %v2716_v51 = vpack.c.bf16 %v2231_v63, %v1942_v16  ;;  %v2233_v0 = vadd.f32 %v2232_v5, %v4647_v8 }
 0x287   : > { %v2509_v47 = vpack.c.bf16 %v1248_v18, %v959_v23 }
 0x288   : > { %2828 = vst [vmem:[%s4483_s23 + $0xc8] sm:$0xff] %v2716_v51 }
 0x289   : > { %2621 = vst [vmem:[%s4483_s23 + $0x1d0] sm:$0xff] %v2509_v47  ;;  %v967_v47 = vadd.f32 %v4146_v42, %v4470_v36 }
 0x28a   : > { %v1541_v14 = vpop.f32.mrf.mxu2 }
 0x28b   : > { %v1542_v24 = vadd.f32 %v1541_v14, %v4461_v62  ;;  %v1943_v25 = vpop.f32.mrf.mxu3 }
 0x28c   : > { %v1944_v30 = vadd.f32 %v1943_v25, %v4649_v56  ;;  %v1250_v9 = vpop.f32.mrf.mxu1 }
 0x28d   : > { %v1759_v7 = vpack.c.bf16 %v1542_v24, %v1540_v59  ;;  %v1251_v20 = vadd.f32 %v1250_v9, %v4464_v32  ;;  %v2235_v54 = vpop.f32.mrf.mxu0 }
 0x28e   : > { %v2717_v11 = vpack.c.bf16 %v2233_v0, %v1944_v30  ;;  %v2236_v31 = vadd.f32 %v2235_v54, %v4647_v8  ;;  %v3699_v30 = vld [vmem:[%s4063_s13 + $0xc8] sm:$0xff]  ;;  %v969_v54 = vadd.f32 %v4157_v48, %v4470_v36 }
 0x28f   : > { %v2510_v22 = vpack.c.bf16 %v1251_v20, %v962_v28  ;;  %3364 = vmatmul.msk.bf16.gmra.mxu1 %vm698_vm1, %v3697_v57  ;;  %3421 = vmatmul.msk.bf16.gmra.mxu2 %vm698_vm1, %v3698_v10 }
 0x290   : > { %2829 = vst [vmem:[%s4483_s23 + $0xd8] sm:$0xff] %v2717_v11  ;;  %1985 = vmatmul.bf16.gmra.mxu3 %v1759_v7  ;;  %2274 = vmatmul.bf16.gmra.mxu0 %v1759_v7 }
 0x291   : > { %2622 = vst [vmem:[%s4483_s23 + $0x1e0] sm:$0xff] %v2510_v22 }
 0x292   : > { %v1544_v49 = vpop.f32.mrf.mxu2 }
 0x293   : > { %v1946_v17 = vpop.f32.mrf.mxu3  ;;  %v1545_v12 = vadd.f32 %v1544_v49, %v4461_v62 }
 0x294   : > { %v1947_v61 = vadd.f32 %v1946_v17, %v4649_v56  ;;  %v1252_v38 = vpop.f32.mrf.mxu1 }
 0x295   : > { %v1253_v57 = vadd.f32 %v1252_v38, %v4464_v32  ;;  %v2237_v21 = vpop.f32.mrf.mxu0 }
 0x296   : > { %v2718_v60 = vpack.c.bf16 %v2236_v31, %v1947_v61  ;;  %v2238_v5 = vadd.f32 %v2237_v21, %v4647_v8  ;;  %v972_v21 = vadd.f32 %v4165_v53, %v4470_v36 }
 0x297   : > { %v2511_v63 = vpack.c.bf16 %v1253_v57, %v964_v50 }
 0x298   : > { %2830 = vst [vmem:[%s4483_s23 + $0xe8] sm:$0xff] %v2718_v60 }
 0x299   : > { %2623 = vst [vmem:[%s4483_s23 + $0x1f0] sm:$0xff] %v2511_v63 }
 0x29a   : > { %v1546_v16 = vpop.f32.mrf.mxu2 }
 0x29b   : > { %v1547_v23 = vadd.f32 %v1546_v16, %v4461_v62  ;;  %v1948_v18 = vpop.f32.mrf.mxu3 }
 0x29c   : > { %v1949_v34 = vadd.f32 %v1948_v18, %v4649_v56  ;;  %v1255_v51 = vpop.f32.mrf.mxu1  ;;  %v3700_v18 = vld [vmem:[%s4063_s13 + $0xd0] sm:$0xff] }
 0x29d   : > { %v1760_v14 = vpack.c.bf16 %v1547_v23, %v1545_v12  ;;  %v1256_v59 = vadd.f32 %v1255_v51, %v4464_v32  ;;  %v2240_v24 = vpop.f32.mrf.mxu0 }
 0x29e   : > { %v2719_v25 = vpack.c.bf16 %v2238_v5, %v1949_v34  ;;  %v2241_v42 = vadd.f32 %v2240_v24, %v4647_v8 }
 0x29f   : > { %v2512_v0 = vpack.c.bf16 %v1256_v59, %v967_v47  ;;  %3365 = vmatmul.msk.bf16.gmra.mxu1 %vm698_vm1, %v3698_v10  ;;  %3422 = vmatmul.msk.bf16.gmra.mxu2 %vm698_vm1, %v3699_v30 }
 0x2a0   : > { %2831 = vst [vmem:[%s4483_s23 + $0xf8] sm:$0xff] %v2719_v25  ;;  %1990 = vmatmul.bf16.gmra.mxu3 %v1760_v14  ;;  %2279 = vmatmul.bf16.gmra.mxu0 %v1760_v14  ;;  %v974_v14 = vadd.f32 %v4176_v58, %v4470_v36 }
 0x2a1   : > { %2624 = vst [vmem:[%s4483_s23 + $0x200] sm:$0xff] %v2512_v0 }
 0x2a2   : > { %v1549_v9 = vpop.f32.mrf.mxu2 }
 0x2a3   : > { %v1951_v28 = vpop.f32.mrf.mxu3  ;;  %v1550_v31 = vadd.f32 %v1549_v9, %v4461_v62 }
 0x2a4   : > { %v1952_v7 = vadd.f32 %v1951_v28, %v4649_v56  ;;  %v1257_v20 = vpop.f32.mrf.mxu1 }
 0x2a5   : > { %v1258_v11 = vadd.f32 %v1257_v20, %v4464_v32  ;;  %v2242_v22 = vpop.f32.mrf.mxu0 }
 0x2a6   : > { %v2720_v10 = vpack.c.bf16 %v2241_v42, %v1952_v7  ;;  %v2243_v50 = vadd.f32 %v2242_v22, %v4647_v8 }
 0x2a7   : > { %v2513_v49 = vpack.c.bf16 %v1258_v11, %v969_v54  ;;  %v977_v54 = vadd.f32 %v4187_v3, %v4470_v36 }
 0x2a8   : > { %2832 = vst [vmem:[%s4483_s23 + $0x108] sm:$0xff] %v2720_v10 }
 0x2a9   : > { %2625 = vst [vmem:[%s4483_s23 + $0x210] sm:$0xff] %v2513_v49 }
 0x2aa   : > { %v1551_v17 = vpop.f32.mrf.mxu2 }
 0x2ab   : > { %v1552_v61 = vadd.f32 %v1551_v17, %v4461_v62  ;;  %v1953_v38 = vpop.f32.mrf.mxu3 }
 0x2ac   : > { %v1954_v48 = vadd.f32 %v1953_v38, %v4649_v56  ;;  %v1260_v57 = vpop.f32.mrf.mxu1 }
 0x2ad   : > { %v1761_v60 = vpack.c.bf16 %v1552_v61, %v1550_v31  ;;  %v1261_v63 = vadd.f32 %v1260_v57, %v4464_v32  ;;  %v2245_v16 = vpop.f32.mrf.mxu0  ;;  %v3701_v31 = vld [vmem:[%s4063_s13 + $0xd8] sm:$0xff]  ;;  %v979_v57 = vadd.f32 %v4198_v6, %v4470_v36 }
 0x2ae   : > { %v2721_v12 = vpack.c.bf16 %v2243_v50, %v1954_v48  ;;  %v2246_v53 = vadd.f32 %v2245_v16, %v4647_v8 }
 0x2af   : > { %v2514_v23 = vpack.c.bf16 %v1261_v63, %v972_v21  ;;  %3366 = vmatmul.msk.bf16.gmra.mxu1 %vm698_vm1, %v3699_v30  ;;  %3423 = vmatmul.msk.bf16.gmra.mxu2 %vm698_vm1, %v3700_v18 }
 0x2b0   : > { %2833 = vst [vmem:[%s4483_s23 + $0x118] sm:$0xff] %v2721_v12  ;;  %1995 = vmatmul.bf16.gmra.mxu3 %v1761_v60  ;;  %2284 = vmatmul.bf16.gmra.mxu0 %v1761_v60 }
 0x2b1   : > { %2626 = vst [vmem:[%s4483_s23 + $0x220] sm:$0xff] %v2514_v23 }
 0x2b2   : > { %v1554_v5 = vpop.f32.mrf.mxu2 }
 0x2b3   : > { %v1956_v34 = vpop.f32.mrf.mxu3  ;;  %v1555_v9 = vadd.f32 %v1554_v5, %v4461_v62 }
 0x2b4   : > { %v1957_v51 = vadd.f32 %v1956_v34, %v4649_v56  ;;  %v1262_v47 = vpop.f32.mrf.mxu1 }
 0x2b5   : > { %v1263_v59 = vadd.f32 %v1262_v47, %v4464_v32  ;;  %v2247_v24 = vpop.f32.mrf.mxu0 }
 0x2b6   : > { %v2722_v25 = vpack.c.bf16 %v2246_v53, %v1957_v51  ;;  %v2248_v7 = vadd.f32 %v2247_v24, %v4647_v8  ;;  %v982_v51 = vadd.f32 %v4206_v15, %v4470_v36 }
 0x2b7   : > { %v2515_v0 = vpack.c.bf16 %v1263_v59, %v974_v14 }
 0x2b8   : > { %2834 = vst [vmem:[%s4483_s23 + $0x128] sm:$0xff] %v2722_v25 }
 0x2b9   : > { %2627 = vst [vmem:[%s4483_s23 + $0x230] sm:$0xff] %v2515_v0  ;;  %v3702_v0 = vld [vmem:[%s4063_s13 + $0xe0] sm:$0xff] }
 0x2ba   : > { %v1556_v30 = vpop.f32.mrf.mxu2 }
 0x2bb   : > { %v1557_v28 = vadd.f32 %v1556_v30, %v4461_v62  ;;  %v1958_v42 = vpop.f32.mrf.mxu3 }
 0x2bc   : > { %v1959_v58 = vadd.f32 %v1958_v42, %v4649_v56  ;;  %v1265_v20 = vpop.f32.mrf.mxu1 }
 0x2bd   : > { %v1762_v11 = vpack.c.bf16 %v1557_v28, %v1555_v9  ;;  %v1266_v22 = vadd.f32 %v1265_v20, %v4464_v32  ;;  %v2250_v10 = vpop.f32.mrf.mxu0 }
 0x2be   : > { %v2723_v49 = vpack.c.bf16 %v2248_v7, %v1959_v58  ;;  %v2251_v3 = vadd.f32 %v2250_v10, %v4647_v8  ;;  %v984_v7 = vadd.f32 %v4220_v26, %v4470_v36 }
 0x2bf   : > { %v2516_v17 = vpack.c.bf16 %v1266_v22, %v977_v54  ;;  %3367 = vmatmul.msk.bf16.gmra.mxu1 %vm698_vm1, %v3700_v18  ;;  %3424 = vmatmul.msk.bf16.gmra.mxu2 %vm698_vm1, %v3701_v31 }
 0x2c0   : > { %2835 = vst [vmem:[%s4483_s23 + $0x138] sm:$0xff] %v2723_v49  ;;  %2000 = vmatmul.bf16.gmra.mxu3 %v1762_v11  ;;  %2289 = vmatmul.bf16.gmra.mxu0 %v1762_v11 }
 0x2c1   : > { %2628 = vst [vmem:[%s4483_s23 + $0x240] sm:$0xff] %v2516_v17 }
 0x2c2   : > { %v1559_v61 = vpop.f32.mrf.mxu2 }
 0x2c3   : > { %v1961_v38 = vpop.f32.mrf.mxu3  ;;  %v1560_v23 = vadd.f32 %v1559_v61, %v4461_v62 }
 0x2c4   : > { %v1962_v50 = vadd.f32 %v1961_v38, %v4649_v56  ;;  %v1267_v48 = vpop.f32.mrf.mxu1  ;;  %v987_v38 = vadd.f32 %v4228_v35, %v4470_v36 }
 0x2c5   : > { %v1268_v21 = vadd.f32 %v1267_v48, %v4464_v32  ;;  %v2252_v60 = vpop.f32.mrf.mxu0 }
 0x2c6   : > { %v2724_v63 = vpack.c.bf16 %v2251_v3, %v1962_v50  ;;  %v2253_v34 = vadd.f32 %v2252_v60, %v4647_v8  ;;  %v3703_v60 = vld [vmem:[%s4063_s13 + $0xe8] sm:$0xff] }
 0x2c7   : > { %v2517_v16 = vpack.c.bf16 %v1268_v21, %v979_v57 }
 0x2c8   : > { %2836 = vst [vmem:[%s4483_s23 + $0x148] sm:$0xff] %v2724_v63 }
 0x2c9   : > { %2629 = vst [vmem:[%s4483_s23 + $0x250] sm:$0xff] %v2517_v16 }
 0x2ca   : > { %v1561_v12 = vpop.f32.mrf.mxu2 }
 0x2cb   : > { %v1562_v18 = vadd.f32 %v1561_v12, %v4461_v62  ;;  %v1963_v5 = vpop.f32.mrf.mxu3 }
 0x2cc   : > { %v1964_v6 = vadd.f32 %v1963_v5, %v4649_v56  ;;  %v1270_v53 = vpop.f32.mrf.mxu1 }
 0x2cd   : > { %v1763_v47 = vpack.c.bf16 %v1562_v18, %v1560_v23  ;;  %v1271_v14 = vadd.f32 %v1270_v53, %v4464_v32  ;;  %v2255_v59 = vpop.f32.mrf.mxu0  ;;  %v989_v18 = vadd.f32 %v4239_v40, %v4470_v36 }
 0x2ce   : > { %v2725_v24 = vpack.c.bf16 %v2253_v34, %v1964_v6  ;;  %v2256_v15 = vadd.f32 %v2255_v59, %v4647_v8 }
 0x2cf   : > { %v2518_v25 = vpack.c.bf16 %v1271_v14, %v982_v51  ;;  %3368 = vmatmul.msk.bf16.gmra.mxu1 %vm698_vm1, %v3701_v31  ;;  %3425 = vmatmul.msk.bf16.gmra.mxu2 %vm698_vm1, %v3702_v0 }
 0x2d0   : > { %2837 = vst [vmem:[%s4483_s23 + $0x158] sm:$0xff] %v2725_v24  ;;  %2005 = vmatmul.bf16.gmra.mxu3 %v1763_v47  ;;  %2294 = vmatmul.bf16.gmra.mxu0 %v1763_v47 }
 0x2d1   : > { %2630 = vst [vmem:[%s4483_s23 + $0x260] sm:$0xff] %v2518_v25 }
 0x2d2   : > { %v1564_v30 = vpop.f32.mrf.mxu2 }
 0x2d3   : > { %v1966_v9 = vpop.f32.mrf.mxu3  ;;  %v1565_v10 = vadd.f32 %v1564_v30, %v4461_v62 }
 0x2d4   : > { %v1967_v28 = vadd.f32 %v1966_v9, %v4649_v56  ;;  %v1272_v42 = vpop.f32.mrf.mxu1 }
 0x2d5   : > { %v1273_v58 = vadd.f32 %v1272_v42, %v4464_v32  ;;  %v2257_v20 = vpop.f32.mrf.mxu0 }
 0x2d6   : > { %v2726_v54 = vpack.c.bf16 %v2256_v15, %v1967_v28  ;;  %v2258_v31 = vadd.f32 %v2257_v20, %v4647_v8 }
 0x2d7   : > { %v2519_v11 = vpack.c.bf16 %v1273_v58, %v984_v7  ;;  %v3704_v7 = vld [vmem:[%s4063_s13 + $0xf0] sm:$0xff] }
 0x2d8   : > { %2838 = vst [vmem:[%s4483_s23 + $0x168] sm:$0xff] %v2726_v54 }
 0x2d9   : > { %2631 = vst [vmem:[%s4483_s23 + $0x270] sm:$0xff] %v2519_v11 }
 0x2da   : > { %v1566_v22 = vpop.f32.mrf.mxu2 }
 0x2db   : > { %v1567_v49 = vadd.f32 %v1566_v22, %v4461_v62  ;;  %v1968_v17 = vpop.f32.mrf.mxu3  ;;  %v994_v22 = vadd.f32 %v4263_v1, %v4470_v36 }
 0x2dc   : > { %v1969_v26 = vadd.f32 %v1968_v17, %v4649_v56  ;;  %v1275_v61 = vpop.f32.mrf.mxu1 }
 0x2dd   : > { %v1764_v3 = vpack.c.bf16 %v1567_v49, %v1565_v10  ;;  %v1276_v50 = vadd.f32 %v1275_v61, %v4464_v32  ;;  %v2260_v48 = vpop.f32.mrf.mxu0 }
 0x2de   : > { %v2727_v57 = vpack.c.bf16 %v2258_v31, %v1969_v26  ;;  %v2261_v35 = vadd.f32 %v2260_v48, %v4647_v8 }
 0x2df   : > { %v2520_v21 = vpack.c.bf16 %v1276_v50, %v987_v38  ;;  %3369 = vmatmul.msk.bf16.gmra.mxu1 %vm698_vm1, %v3702_v0  ;;  %3426 = vmatmul.msk.bf16.gmra.mxu2 %vm698_vm1, %v3703_v60  ;;  %v992_v0 = vadd.f32 %v4246_v52, %v4470_v36 }
 0x2e0   : > { %2839 = vst [vmem:[%s4483_s23 + $0x178] sm:$0xff] %v2727_v57  ;;  %2010 = vmatmul.bf16.gmra.mxu3 %v1764_v3  ;;  %2299 = vmatmul.bf16.gmra.mxu0 %v1764_v3  ;;  %v997_v57 = vadd.f32 %v4271_v13, %v4470_v36 }
 0x2e1   : > { %2632 = vst [vmem:[%s4483_s23 + $0x280] sm:$0xff] %v2520_v21 }
 0x2e2   : > { %v1569_v63 = vpop.f32.mrf.mxu2 }
 0x2e3   : > { %v1971_v16 = vpop.f32.mrf.mxu3  ;;  %v1570_v47 = vadd.f32 %v1569_v63, %v4461_v62 }
 0x2e4   : > { %v1972_v12 = vadd.f32 %v1971_v16, %v4649_v56  ;;  %v1277_v23 = vpop.f32.mrf.mxu1 }
 0x2e5   : > { %v1278_v5 = vadd.f32 %v1277_v23, %v4464_v32  ;;  %v2262_v34 = vpop.f32.mrf.mxu0 }
 0x2e6   : > { %v2728_v6 = vpack.c.bf16 %v2261_v35, %v1972_v12  ;;  %v2263_v24 = vadd.f32 %v2262_v34, %v4647_v8  ;;  %v3705_v12 = vld [vmem:[%s4063_s13 + $0xf8] sm:$0xff] }
 0x2e7   : > { %v2521_v53 = vpack.c.bf16 %v1278_v5, %v989_v18 }
 0x2e8   : > { %2840 = vst [vmem:[%s4483_s23 + $0x188] sm:$0xff] %v2728_v6  ;;  %v999_v6 = vadd.f32 %v4286_v29, %v4470_v36 }
 0x2e9   : > { %2633 = vst [vmem:[%s4483_s23 + $0x290] sm:$0xff] %v2521_v53 }
 0x2ea   : > { %v1571_v51 = vpop.f32.mrf.mxu2 }
 0x2eb   : > { %v1572_v14 = vadd.f32 %v1571_v51, %v4461_v62  ;;  %v1973_v59 = vpop.f32.mrf.mxu3 }
 0x2ec   : > { %v1974_v40 = vadd.f32 %v1973_v59, %v4649_v56  ;;  %v1280_v25 = vpop.f32.mrf.mxu1 }
 0x2ed   : > { %v1765_v30 = vpack.c.bf16 %v1572_v14, %v1570_v47  ;;  %v1281_v9 = vadd.f32 %v1280_v25, %v4464_v32  ;;  %v2265_v15 = vpop.f32.mrf.mxu0 }
 0x2ee   : > { %v2729_v28 = vpack.c.bf16 %v2263_v24, %v1974_v40  ;;  %v2266_v52 = vadd.f32 %v2265_v15, %v4647_v8 }
 0x2ef   : > { %v2522_v42 = vpack.c.bf16 %v1281_v9, %v992_v0  ;;  %3370 = vmatmul.msk.bf16.gmra.mxu1 %vm698_vm1, %v3703_v60  ;;  %3427 = vmatmul.msk.bf16.gmra.mxu2 %vm698_vm1, %v3704_v7  ;;  %v1002_v9 = vadd.f32 %v4294_v44, %v4470_v36 }
 0x2f0   : > { %2841 = vst [vmem:[%s4483_s23 + $0x198] sm:$0xff] %v2729_v28  ;;  %2015 = vmatmul.bf16.gmra.mxu3 %v1765_v30  ;;  %2304 = vmatmul.bf16.gmra.mxu0 %v1765_v30 }
 0x2f1   : > { %2634 = vst [vmem:[%s4483_s23 + $0x2a0] sm:$0xff] %v2522_v42 }
 0x2f2   : > { %v1574_v58 = vpop.f32.mrf.mxu2 }
 0x2f3   : > { %v1976_v20 = vpop.f32.mrf.mxu3  ;;  %v1575_v61 = vadd.f32 %v1574_v58, %v4461_v62 }
 0x2f4   : > { %v1977_v54 = vadd.f32 %v1976_v20, %v4649_v56  ;;  %v1282_v11 = vpop.f32.mrf.mxu1  ;;  %v3706_v20 = vld [vmem:[%s4063_s13 + $0x100] sm:$0xff] }
 0x2f5   : > { %v1283_v10 = vadd.f32 %v1282_v11, %v4464_v32  ;;  %v2267_v49 = vpop.f32.mrf.mxu0 }
 0x2f6   : > { %v2730_v17 = vpack.c.bf16 %v2266_v52, %v1977_v54  ;;  %v2268_v50 = vadd.f32 %v2267_v49, %v4647_v8 }
 0x2f7   : > { %v2523_v31 = vpack.c.bf16 %v1283_v10, %v994_v22  ;;  %v1004_v10 = vadd.f32 %v4312_v19, %v4470_v36 }
 0x2f8   : > { %2842 = vst [vmem:[%s4483_s23 + $0x1a8] sm:$0xff] %v2730_v17 }
 0x2f9   : > { %2635 = vst [vmem:[%s4483_s23 + $0x2b0] sm:$0xff] %v2523_v31 }
 0x2fa   : > { %v1576_v26 = vpop.f32.mrf.mxu2 }
 0x2fb   : > { %v1577_v38 = vadd.f32 %v1576_v26, %v4461_v62  ;;  %v1978_v3 = vpop.f32.mrf.mxu3 }
 0x2fc   : > { %v1979_v1 = vadd.f32 %v1978_v3, %v4649_v56  ;;  %v1285_v48 = vpop.f32.mrf.mxu1 }
 0x2fd   : > { %v1766_v21 = vpack.c.bf16 %v1577_v38, %v1575_v61  ;;  %v1286_v60 = vadd.f32 %v1285_v48, %v4464_v32  ;;  %v2270_v63 = vpop.f32.mrf.mxu0 }
 0x2fe   : > { %v2731_v16 = vpack.c.bf16 %v2268_v50, %v1979_v1  ;;  %v2271_v13 = vadd.f32 %v2270_v63, %v4647_v8 }
 0x2ff   : > { %v2524_v35 = vpack.c.bf16 %v1286_v60, %v997_v57  ;;  %3371 = vmatmul.msk.bf16.gmra.mxu1 %vm698_vm1, %v3704_v7  ;;  %3428 = vmatmul.msk.bf16.gmra.mxu2 %vm698_vm1, %v3705_v12  ;;  %v1007_v57 = vadd.f32 %v4322_v27, %v4470_v36 }
 0x300   : > { %2843 = vst [vmem:[%s4483_s23 + $0x1b8] sm:$0xff] %v2731_v16  ;;  %2020 = vmatmul.bf16.gmra.mxu3 %v1766_v21  ;;  %2309 = vmatmul.bf16.gmra.mxu0 %v1766_v21 }
 0x301   : > { %2636 = vst [vmem:[%s4483_s23 + $0x2c0] sm:$0xff] %v2524_v35 }
 0x302   : > { %v1579_v23 = vpop.f32.mrf.mxu2 }
 0x303   : > { %v1981_v18 = vpop.f32.mrf.mxu3  ;;  %v1580_v24 = vadd.f32 %v1579_v23, %v4461_v62 }
 0x304   : > { %v1982_v5 = vadd.f32 %v1981_v18, %v4649_v56  ;;  %v1287_v34 = vpop.f32.mrf.mxu1 }
 0x305   : > { %v1288_v53 = vadd.f32 %v1287_v34, %v4464_v32  ;;  %v2272_v51 = vpop.f32.mrf.mxu0  ;;  %v1009_v34 = vadd.f32 %v4339_v46, %v4470_v36 }
 0x306   : > { %v2732_v47 = vpack.c.bf16 %v2271_v13, %v1982_v5  ;;  %v2273_v0 = vadd.f32 %v2272_v51, %v4647_v8 }
 0x307   : > { %v2525_v14 = vpack.c.bf16 %v1288_v53, %v999_v6 }
 0x308   : > { %2844 = vst [vmem:[%s4483_s23 + $0x1c8] sm:$0xff] %v2732_v47 }
 0x309   : > { %2637 = vst [vmem:[%s4483_s23 + $0x2d0] sm:$0xff] %v2525_v14 }
 0x30a   : > { %v1581_v59 = vpop.f32.mrf.mxu2 }
 0x30b   : > { %v1582_v40 = vadd.f32 %v1581_v59, %v4461_v62  ;;  %v1983_v25 = vpop.f32.mrf.mxu3 }
 0x30c   : > { %v1984_v29 = vadd.f32 %v1983_v25, %v4649_v56  ;;  %v1290_v30 = vpop.f32.mrf.mxu1 }
 0x30d   : > { %v1767_v15 = vpack.c.bf16 %v1582_v40, %v1580_v24  ;;  %v1291_v28 = vadd.f32 %v1290_v30, %v4464_v32  ;;  %v2275_v42 = vpop.f32.mrf.mxu0 }
 0x30e   : > { %v2733_v7 = vpack.c.bf16 %v2273_v0, %v1984_v29  ;;  %v2276_v44 = vadd.f32 %v2275_v42, %v4647_v8  ;;  %v1012_v29 = vadd.f32 %v4349_v37, %v4470_v36 }
 0x30f   : > { %v2526_v58 = vpack.c.bf16 %v1291_v28, %v1002_v9  ;;  %3372 = vmatmul.msk.bf16.gmra.mxu1 %vm698_vm1, %v3705_v12  ;;  %3429 = vmatmul.msk.bf16.gmra.mxu2 %vm698_vm1, %v3706_v20  ;;  %v3707_v12 = vld [vmem:[%s4063_s13 + $0x108] sm:$0xff] }
 0x310   : > { %2845 = vst [vmem:[%s4483_s23 + $0x1d8] sm:$0xff] %v2733_v7  ;;  %2025 = vmatmul.bf16.gmra.mxu3 %v1767_v15  ;;  %2314 = vmatmul.bf16.gmra.mxu0 %v1767_v15  ;;  %v3708_v7 = vld [vmem:[%s4063_s13 + $0x110] sm:$0xff] }
 0x311   : > { %2638 = vst [vmem:[%s4483_s23 + $0x2e0] sm:$0xff] %v2526_v58 }
 0x312   : > { %v1584_v52 = vpop.f32.mrf.mxu2 }
 0x313   : > { %v1986_v54 = vpop.f32.mrf.mxu3  ;;  %v1585_v38 = vadd.f32 %v1584_v52, %v4461_v62 }
 0x314   : > { %v1987_v11 = vadd.f32 %v1986_v54, %v4649_v56  ;;  %v1292_v22 = vpop.f32.mrf.mxu1 }
 0x315   : > { %v1293_v49 = vadd.f32 %v1292_v22, %v4464_v32  ;;  %v2277_v17 = vpop.f32.mrf.mxu0 }
 0x316   : > { %v2734_v31 = vpack.c.bf16 %v2276_v44, %v1987_v11  ;;  %v2278_v1 = vadd.f32 %v2277_v17, %v4647_v8  ;;  %v5678_v44 = vld [vmem:[#allocation40_spill] sm:$0xff] }
 0x317   : > { %v2527_v26 = vpack.c.bf16 %v1293_v49, %v1004_v10  ;;  %v1014_v11 = vadd.f32 %v5678_v44, %v4470_v36 }
 0x318   : > { %2846 = vst [vmem:[%s4483_s23 + $0x1e8] sm:$0xff] %v2734_v31 }
 0x319   : > { %2639 = vst [vmem:[%s4483_s23 + $0x2f0] sm:$0xff] %v2527_v26 }
 0x31a   : > { %v1586_v61 = vpop.f32.mrf.mxu2 }
 0x31b   : > { %v1587_v3 = vadd.f32 %v1586_v61, %v4461_v62  ;;  %v1988_v50 = vpop.f32.mrf.mxu3 }
 0x31c   : > { %v1989_v19 = vadd.f32 %v1988_v50, %v4649_v56  ;;  %v1295_v48 = vpop.f32.mrf.mxu1 }
 0x31d   : > { %v1768_v21 = vpack.c.bf16 %v1587_v3, %v1585_v38  ;;  %v1296_v60 = vadd.f32 %v1295_v48, %v4464_v32  ;;  %v2280_v63 = vpop.f32.mrf.mxu0 }
 0x31e   : > { %v2735_v16 = vpack.c.bf16 %v2278_v1, %v1989_v19  ;;  %v2281_v27 = vadd.f32 %v2280_v63, %v4647_v8  ;;  %v5679_v19 = vld [vmem:[#allocation42_spill] sm:$0xff] }
 0x31f   : > { %v2528_v35 = vpack.c.bf16 %v1296_v60, %v1007_v57  ;;  %3373 = vmatmul.msk.bf16.gmra.mxu1 %vm698_vm1, %v3706_v20  ;;  %3430 = vmatmul.msk.bf16.gmra.mxu2 %vm698_vm1, %v3707_v12  ;;  %v1017_v48 = vadd.f32 %v5679_v19, %v4470_v36 }
 0x320   : > { %2847 = vst [vmem:[%s4483_s23 + $0x1f8] sm:$0xff] %v2735_v16  ;;  %2030 = vmatmul.bf16.gmra.mxu3 %v1768_v21  ;;  %2319 = vmatmul.bf16.gmra.mxu0 %v1768_v21 }
 0x321   : > { %2640 = vst [vmem:[%s4483_s23 + $0x300] sm:$0xff] %v2528_v35  ;;  %v3709_v35 = vld [vmem:[%s4063_s13 + $0x118] sm:$0xff] }
 0x322   : > { %v1589_v23 = vpop.f32.mrf.mxu2 }
 0x323   : > { %v1991_v18 = vpop.f32.mrf.mxu3  ;;  %v1590_v59 = vadd.f32 %v1589_v23, %v4461_v62 }
 0x324   : > { %v1992_v13 = vadd.f32 %v1991_v18, %v4649_v56  ;;  %v1297_v5 = vpop.f32.mrf.mxu1 }
 0x325   : > { %v1298_v6 = vadd.f32 %v1297_v5, %v4464_v32  ;;  %v2282_v53 = vpop.f32.mrf.mxu0  ;;  %v5680_v5 = vld [vmem:[#allocation45_spill] sm:$0xff] }
 0x326   : > { %v2736_v51 = vpack.c.bf16 %v2281_v27, %v1992_v13  ;;  %v2283_v25 = vadd.f32 %v2282_v53, %v4647_v8 }
 0x327   : > { %v2529_v47 = vpack.c.bf16 %v1298_v6, %v1009_v34  ;;  %v1019_v34 = vadd.f32 %v5680_v5, %v4470_v36 }
 0x328   : > { %2848 = vst [vmem:[%s4483_s23 + $0x208] sm:$0xff] %v2736_v51 }
 0x329   : > { %2641 = vst [vmem:[%s4483_s23 + $0x310] sm:$0xff] %v2529_v47 }
 0x32a   : > { %v1591_v14 = vpop.f32.mrf.mxu2 }
 0x32b   : > { %v1592_v24 = vadd.f32 %v1591_v14, %v4461_v62  ;;  %v1993_v40 = vpop.f32.mrf.mxu3 }
 0x32c   : > { %v1994_v46 = vadd.f32 %v1993_v40, %v4649_v56  ;;  %v1300_v0 = vpop.f32.mrf.mxu1 }
 0x32d   : > { %v1769_v30 = vpack.c.bf16 %v1592_v24, %v1590_v59  ;;  %v1301_v9 = vadd.f32 %v1300_v0, %v4464_v32  ;;  %v2285_v15 = vpop.f32.mrf.mxu0 }
 0x32e   : > { %v2737_v28 = vpack.c.bf16 %v2283_v25, %v1994_v46  ;;  %v2286_v37 = vadd.f32 %v2285_v15, %v4647_v8 }
 0x32f   : > { %v2530_v42 = vpack.c.bf16 %v1301_v9, %v1012_v29  ;;  %3374 = vmatmul.msk.bf16.gmra.mxu1 %vm698_vm1, %v3707_v12  ;;  %3431 = vmatmul.msk.bf16.gmra.mxu2 %vm698_vm1, %v3708_v7  ;;  %v5681_v29 = vld [vmem:[#allocation48_spill] sm:$0xff] }
 0x330   : > { %2849 = vst [vmem:[%s4483_s23 + $0x218] sm:$0xff] %v2737_v28  ;;  %2035 = vmatmul.bf16.gmra.mxu3 %v1769_v30  ;;  %2324 = vmatmul.bf16.gmra.mxu0 %v1769_v30  ;;  %v1022_v30 = vadd.f32 %v5681_v29, %v4470_v36 }
 0x331   : > { %2642 = vst [vmem:[%s4483_s23 + $0x320] sm:$0xff] %v2530_v42 }
 0x332   : > { %v1594_v58 = vpop.f32.mrf.mxu2 }
 0x333   : > { %v1996_v20 = vpop.f32.mrf.mxu3  ;;  %v1595_v26 = vadd.f32 %v1594_v58, %v4461_v62  ;;  %v3710_v58 = vld [vmem:[%s4063_s13 + $0x120] sm:$0xff] }
 0x334   : > { %v1997_v52 = vadd.f32 %v1996_v20, %v4649_v56  ;;  %v1302_v54 = vpop.f32.mrf.mxu1 }
 0x335   : > { %v1303_v22 = vadd.f32 %v1302_v54, %v4464_v32  ;;  %v2287_v10 = vpop.f32.mrf.mxu0 }
 0x336   : > { %v2738_v49 = vpack.c.bf16 %v2286_v37, %v1997_v52  ;;  %v2288_v3 = vadd.f32 %v2287_v10, %v4647_v8 }
 0x337   : > { %v2531_v17 = vpack.c.bf16 %v1303_v22, %v1014_v11  ;;  %v5682_v11 = vld [vmem:[#allocation51_spill] sm:$0xff] }
 0x338   : > { %2850 = vst [vmem:[%s4483_s23 + $0x228] sm:$0xff] %v2738_v49  ;;  %v1024_v22 = vadd.f32 %v5682_v11, %v4470_v36 }
 0x339   : > { %2643 = vst [vmem:[%s4483_s23 + $0x330] sm:$0xff] %v2531_v17 }
 0x33a   : > { %v1596_v31 = vpop.f32.mrf.mxu2 }
 0x33b   : > { %v1597_v61 = vadd.f32 %v1596_v31, %v4461_v62  ;;  %v1998_v38 = vpop.f32.mrf.mxu3 }
 0x33c   : > { %v1999_v50 = vadd.f32 %v1998_v38, %v4649_v56  ;;  %v1305_v1 = vpop.f32.mrf.mxu1 }
 0x33d   : > { %v1770_v57 = vpack.c.bf16 %v1597_v61, %v1595_v26  ;;  %v1306_v21 = vadd.f32 %v1305_v1, %v4464_v32  ;;  %v2290_v60 = vpop.f32.mrf.mxu0 }
 0x33e   : > { %v2739_v63 = vpack.c.bf16 %v2288_v3, %v1999_v50  ;;  %v2291_v18 = vadd.f32 %v2290_v60, %v4647_v8 }
 0x33f   : > { %v2532_v16 = vpack.c.bf16 %v1306_v21, %v1017_v48  ;;  %3375 = vmatmul.msk.bf16.gmra.mxu1 %vm698_vm1, %v3708_v7  ;;  %3432 = vmatmul.msk.bf16.gmra.mxu2 %vm698_vm1, %v3709_v35  ;;  %v5683_v48 = vld [vmem:[#allocation54_spill] sm:$0xff] }
 0x340   : > { %2851 = vst [vmem:[%s4483_s23 + $0x238] sm:$0xff] %v2739_v63  ;;  %2040 = vmatmul.bf16.gmra.mxu3 %v1770_v57  ;;  %2329 = vmatmul.bf16.gmra.mxu0 %v1770_v57  ;;  %v1027_v57 = vadd.f32 %v5683_v48, %v4470_v36 }
 0x341   : > { %2644 = vst [vmem:[%s4483_s23 + $0x340] sm:$0xff] %v2532_v16 }
 0x342   : > { %v1599_v12 = vpop.f32.mrf.mxu2 }
 0x343   : > { %v2001_v23 = vpop.f32.mrf.mxu3  ;;  %v1600_v59 = vadd.f32 %v1599_v12, %v4461_v62  ;;  %v3711_v12 = vld [vmem:[%s4063_s13 + $0x128] sm:$0xff] }
 0x344   : > { %v2002_v27 = vadd.f32 %v2001_v23, %v4649_v56  ;;  %v1307_v13 = vpop.f32.mrf.mxu1 }
 0x345   : > { %v1308_v6 = vadd.f32 %v1307_v13, %v4464_v32  ;;  %v2292_v53 = vpop.f32.mrf.mxu0 }
 0x346   : > { %v2740_v51 = vpack.c.bf16 %v2291_v18, %v2002_v27  ;;  %v2293_v25 = vadd.f32 %v2292_v53, %v4647_v8 }
 0x347   : > { %v2533_v47 = vpack.c.bf16 %v1308_v6, %v1019_v34  ;;  %v5684_v34 = vld [vmem:[#allocation56_spill] sm:$0xff] }
 0x348   : > { %2852 = vst [vmem:[%s4483_s23 + $0x248] sm:$0xff] %v2740_v51  ;;  %v1029_v6 = vadd.f32 %v5684_v34, %v4470_v36 }
 0x349   : > { %2645 = vst [vmem:[%s4483_s23 + $0x350] sm:$0xff] %v2533_v47 }
 0x34a   : > { %v1601_v14 = vpop.f32.mrf.mxu2 }
 0x34b   : > { %v1602_v24 = vadd.f32 %v1601_v14, %v4461_v62  ;;  %v2003_v40 = vpop.f32.mrf.mxu3 }
 0x34c   : > { %v2004_v46 = vadd.f32 %v2003_v40, %v4649_v56  ;;  %v1310_v0 = vpop.f32.mrf.mxu1 }
 0x34d   : > { %v1771_v9 = vpack.c.bf16 %v1602_v24, %v1600_v59  ;;  %v1311_v15 = vadd.f32 %v1310_v0, %v4464_v32  ;;  %v2295_v28 = vpop.f32.mrf.mxu0 }
 0x34e   : > { %v2741_v42 = vpack.c.bf16 %v2293_v25, %v2004_v46  ;;  %v2296_v52 = vadd.f32 %v2295_v28, %v4647_v8 }
 0x34f   : > { %v2534_v7 = vpack.c.bf16 %v1311_v15, %v1022_v30  ;;  %3376 = vmatmul.msk.bf16.gmra.mxu1 %vm698_vm1, %v3709_v35  ;;  %3433 = vmatmul.msk.bf16.gmra.mxu2 %vm698_vm1, %v3710_v58  ;;  %v5685_v30 = vld [vmem:[#allocation59_spill] sm:$0xff] }
 0x350   : > { %2853 = vst [vmem:[%s4483_s23 + $0x258] sm:$0xff] %v2741_v42  ;;  %2045 = vmatmul.bf16.gmra.mxu3 %v1771_v9  ;;  %2334 = vmatmul.bf16.gmra.mxu0 %v1771_v9  ;;  %v1032_v9 = vadd.f32 %v5685_v30, %v4470_v36 }
 0x351   : > { %2646 = vst [vmem:[%s4483_s23 + $0x360] sm:$0xff] %v2534_v7 }
 0x352   : > { %v1604_v20 = vpop.f32.mrf.mxu2 }
 0x353   : > { %v2006_v37 = vpop.f32.mrf.mxu3  ;;  %v1605_v61 = vadd.f32 %v1604_v20, %v4461_v62  ;;  %v3712_v20 = vld [vmem:[%s4063_s13 + $0x130] sm:$0xff] }
 0x354   : > { %v2007_v54 = vadd.f32 %v2006_v37, %v4649_v56  ;;  %v1312_v44 = vpop.f32.mrf.mxu1 }
 0x355   : > { %v1313_v10 = vadd.f32 %v1312_v44, %v4464_v32  ;;  %v2297_v49 = vpop.f32.mrf.mxu0 }
 0x356   : > { %v2742_v17 = vpack.c.bf16 %v2296_v52, %v2007_v54  ;;  %v2298_v50 = vadd.f32 %v2297_v49, %v4647_v8 }
 0x357   : > { %v2535_v31 = vpack.c.bf16 %v1313_v10, %v1024_v22  ;;  %v5686_v22 = vld [vmem:[#allocation61_spill] sm:$0xff] }
 0x358   : > { %2854 = vst [vmem:[%s4483_s23 + $0x268] sm:$0xff] %v2742_v17  ;;  %v1034_v10 = vadd.f32 %v5686_v22, %v4470_v36 }
 0x359   : > { %2647 = vst [vmem:[%s4483_s23 + $0x370] sm:$0xff] %v2535_v31 }
 0x35a   : > { %v1606_v26 = vpop.f32.mrf.mxu2 }
 0x35b   : > { %v1607_v38 = vadd.f32 %v1606_v26, %v4461_v62  ;;  %v2008_v3 = vpop.f32.mrf.mxu3 }
 0x35c   : > { %v2009_v1 = vadd.f32 %v2008_v3, %v4649_v56  ;;  %v1315_v19 = vpop.f32.mrf.mxu1 }
 0x35d   : > { %v1772_v21 = vpack.c.bf16 %v1607_v38, %v1605_v61  ;;  %v1316_v60 = vadd.f32 %v1315_v19, %v4464_v32  ;;  %v2300_v63 = vpop.f32.mrf.mxu0 }
 0x35e   : > { %v2743_v16 = vpack.c.bf16 %v2298_v50, %v2009_v1  ;;  %v2301_v27 = vadd.f32 %v2300_v63, %v4647_v8 }
 0x35f   : > { %v2536_v35 = vpack.c.bf16 %v1316_v60, %v1027_v57  ;;  %3377 = vmatmul.msk.bf16.gmra.mxu1 %vm698_vm1, %v3710_v58  ;;  %3434 = vmatmul.msk.bf16.gmra.mxu2 %vm698_vm1, %v3711_v12  ;;  %v5687_v57 = vld [vmem:[#allocation15_spill] sm:$0xff] }
 0x360   : > { %2855 = vst [vmem:[%s4483_s23 + $0x278] sm:$0xff] %v2743_v16  ;;  %2050 = vmatmul.bf16.gmra.mxu3 %v1772_v21  ;;  %2339 = vmatmul.bf16.gmra.mxu0 %v1772_v21  ;;  %v1037_v21 = vadd.f32 %v5687_v57, %v4470_v36 }
 0x361   : > { %2648 = vst [vmem:[%s4483_s23 + $0x380] sm:$0xff] %v2536_v35 }
 0x362   : > { %v1609_v23 = vpop.f32.mrf.mxu2 }
 0x363   : > { %v2011_v18 = vpop.f32.mrf.mxu3  ;;  %v1610_v24 = vadd.f32 %v1609_v23, %v4461_v62  ;;  %v3713_v23 = vld [vmem:[%s4063_s13 + $0x138] sm:$0xff] }
 0x364   : > { %v2012_v13 = vadd.f32 %v2011_v18, %v4649_v56  ;;  %v1317_v5 = vpop.f32.mrf.mxu1 }
 0x365   : > { %v1318_v53 = vadd.f32 %v1317_v5, %v4464_v32  ;;  %v2302_v51 = vpop.f32.mrf.mxu0 }
 0x366   : > { %v2744_v47 = vpack.c.bf16 %v2301_v27, %v2012_v13  ;;  %v2303_v46 = vadd.f32 %v2302_v51, %v4647_v8 }
 0x367   : > { %v2537_v14 = vpack.c.bf16 %v1318_v53, %v1029_v6  ;;  %v5688_v6 = vld [vmem:[#allocation16_spill] sm:$0xff] }
 0x368   : > { %2856 = vst [vmem:[%s4483_s23 + $0x288] sm:$0xff] %v2744_v47  ;;  %v1039_v53 = vadd.f32 %v5688_v6, %v4470_v36 }
 0x369   : > { %2649 = vst [vmem:[%s4483_s23 + $0x390] sm:$0xff] %v2537_v14 }
 0x36a   : > { %v1611_v59 = vpop.f32.mrf.mxu2 }
 0x36b   : > { %v1612_v40 = vadd.f32 %v1611_v59, %v4461_v62  ;;  %v2013_v25 = vpop.f32.mrf.mxu3 }
 0x36c   : > { %v2014_v0 = vadd.f32 %v2013_v25, %v4649_v56  ;;  %v1320_v29 = vpop.f32.mrf.mxu1 }
 0x36d   : > { %v1773_v15 = vpack.c.bf16 %v1612_v40, %v1610_v24  ;;  %v1321_v28 = vadd.f32 %v1320_v29, %v4464_v32  ;;  %v2305_v42 = vpop.f32.mrf.mxu0 }
 0x36e   : > { %v2745_v7 = vpack.c.bf16 %v2303_v46, %v2014_v0  ;;  %v2306_v54 = vadd.f32 %v2305_v42, %v4647_v8 }
 0x36f   : > { %v2538_v58 = vpack.c.bf16 %v1321_v28, %v1032_v9  ;;  %3378 = vmatmul.msk.bf16.gmra.mxu1 %vm698_vm1, %v3711_v12  ;;  %3435 = vmatmul.msk.bf16.gmra.mxu2 %vm698_vm1, %v3712_v20  ;;  %v5689_v9 = vld [vmem:[#allocation17_spill] sm:$0xff] }
 0x370   : > { %2857 = vst [vmem:[%s4483_s23 + $0x298] sm:$0xff] %v2745_v7  ;;  %2055 = vmatmul.bf16.gmra.mxu3 %v1773_v15  ;;  %2344 = vmatmul.bf16.gmra.mxu0 %v1773_v15  ;;  %v1042_v15 = vadd.f32 %v5689_v9, %v4470_v36 }
 0x371   : > { %2650 = vst [vmem:[%s4483_s23 + $0x3a0] sm:$0xff] %v2538_v58 }
 0x372   : > { %v1614_v37 = vpop.f32.mrf.mxu2 }
 0x373   : > { %v2016_v52 = vpop.f32.mrf.mxu3  ;;  %v1615_v38 = vadd.f32 %v1614_v37, %v4461_v62  ;;  %v3714_v37 = vld [vmem:[%s4063_s13 + $0x140] sm:$0xff] }
 0x374   : > { %v2017_v44 = vadd.f32 %v2016_v52, %v4649_v56  ;;  %v1322_v11 = vpop.f32.mrf.mxu1 }
 0x375   : > { %v1323_v49 = vadd.f32 %v1322_v11, %v4464_v32  ;;  %v2307_v17 = vpop.f32.mrf.mxu0 }
 0x376   : > { %v2746_v31 = vpack.c.bf16 %v2306_v54, %v2017_v44  ;;  %v2308_v1 = vadd.f32 %v2307_v17, %v4647_v8 }
 0x377   : > { %v2539_v26 = vpack.c.bf16 %v1323_v49, %v1034_v10  ;;  %v5690_v10 = vld [vmem:[#allocation18_spill] sm:$0xff] }
 0x378   : > { %2858 = vst [vmem:[%s4483_s23 + $0x2a8] sm:$0xff] %v2746_v31  ;;  %v1044_v49 = vadd.f32 %v5690_v10, %v4470_v36 }
 0x379   : > { %2651 = vst [vmem:[%s4483_s23 + $0x3b0] sm:$0xff] %v2539_v26 }
 0x37a   : > { %v1616_v61 = vpop.f32.mrf.mxu2 }
 0x37b   : > { %v1617_v3 = vadd.f32 %v1616_v61, %v4461_v62  ;;  %v2018_v50 = vpop.f32.mrf.mxu3 }
 0x37c   : > { %v2019_v19 = vadd.f32 %v2018_v50, %v4649_v56  ;;  %v1325_v48 = vpop.f32.mrf.mxu1 }
 0x37d   : > { %v1774_v60 = vpack.c.bf16 %v1617_v3, %v1615_v38  ;;  %v1326_v63 = vadd.f32 %v1325_v48, %v4464_v32  ;;  %v2310_v16 = vpop.f32.mrf.mxu0 }
 0x37e   : > { %v2747_v35 = vpack.c.bf16 %v2308_v1, %v2019_v19  ;;  %v2311_v13 = vadd.f32 %v2310_v16, %v4647_v8 }
 0x37f   : > { %v2540_v12 = vpack.c.bf16 %v1326_v63, %v1037_v21  ;;  %3379 = vmatmul.msk.bf16.gmra.mxu1 %vm698_vm1, %v3712_v20  ;;  %3436 = vmatmul.msk.bf16.gmra.mxu2 %vm698_vm1, %v3713_v23  ;;  %v5691_v21 = vld [vmem:[#allocation19_spill] sm:$0xff] }
 0x380   : > { %2859 = vst [vmem:[%s4483_s23 + $0x2b8] sm:$0xff] %v2747_v35  ;;  %2060 = vmatmul.bf16.gmra.mxu3 %v1774_v60  ;;  %2349 = vmatmul.bf16.gmra.mxu0 %v1774_v60  ;;  %v1047_v60 = vadd.f32 %v5691_v21, %v4470_v36 }
 0x381   : > { %2652 = vst [vmem:[%s4483_s23 + $0x3c0] sm:$0xff] %v2540_v12 }
 0x382   : > { %v1619_v18 = vpop.f32.mrf.mxu2 }
 0x383   : > { %v2021_v27 = vpop.f32.mrf.mxu3  ;;  %v1620_v40 = vadd.f32 %v1619_v18, %v4461_v62  ;;  %v3715_v18 = vld [vmem:[%s4063_s13 + $0x148] sm:$0xff] }
 0x384   : > { %v2022_v5 = vadd.f32 %v2021_v27, %v4649_v56  ;;  %v1327_v34 = vpop.f32.mrf.mxu1 }
 0x385   : > { %v1328_v51 = vadd.f32 %v1327_v34, %v4464_v32  ;;  %v2312_v47 = vpop.f32.mrf.mxu0 }
 0x386   : > { %v2748_v14 = vpack.c.bf16 %v2311_v13, %v2022_v5  ;;  %v2313_v0 = vadd.f32 %v2312_v47, %v4647_v8 }
 0x387   : > { %v2541_v59 = vpack.c.bf16 %v1328_v51, %v1039_v53  ;;  %v5692_v53 = vld [vmem:[#allocation20_spill] sm:$0xff] }
 0x388   : > { %2860 = vst [vmem:[%s4483_s23 + $0x2c8] sm:$0xff] %v2748_v14  ;;  %v1049_v51 = vadd.f32 %v5692_v53, %v4470_v36 }
 0x389   : > { %2653 = vst [vmem:[%s4483_s23 + $0x3d0] sm:$0xff] %v2541_v59 }
 0x38a   : > { %v1621_v24 = vpop.f32.mrf.mxu2 }
 0x38b   : > { %v1622_v25 = vadd.f32 %v1621_v24, %v4461_v62  ;;  %v2023_v46 = vpop.f32.mrf.mxu3 }
 0x38c   : > { %v2024_v29 = vadd.f32 %v2023_v46, %v4649_v56  ;;  %v1330_v30 = vpop.f32.mrf.mxu1 }
 0x38d   : > { %v1775_v28 = vpack.c.bf16 %v1622_v25, %v1620_v40  ;;  %v1331_v42 = vadd.f32 %v1330_v30, %v4464_v32  ;;  %v2315_v7 = vpop.f32.mrf.mxu0 }
 0x38e   : > { %v2749_v58 = vpack.c.bf16 %v2313_v0, %v2024_v29  ;;  %v2316_v44 = vadd.f32 %v2315_v7, %v4647_v8 }
 0x38f   : > { %v2542_v20 = vpack.c.bf16 %v1331_v42, %v1042_v15  ;;  %3380 = vmatmul.msk.bf16.gmra.mxu1 %vm698_vm1, %v3713_v23  ;;  %3437 = vmatmul.msk.bf16.gmra.mxu2 %vm698_vm1, %v3714_v37  ;;  %v5693_v15 = vld [vmem:[#allocation21_spill] sm:$0xff] }
 0x390   : > { %2861 = vst [vmem:[%s4483_s23 + $0x2d8] sm:$0xff] %v2749_v58  ;;  %2065 = vmatmul.bf16.gmra.mxu3 %v1775_v28  ;;  %2354 = vmatmul.bf16.gmra.mxu0 %v1775_v28  ;;  %v1052_v28 = vadd.f32 %v5693_v15, %v4470_v36 }
 0x391   : > { %2654 = vst [vmem:[%s4483_s23 + $0x3e0] sm:$0xff] %v2542_v20 }
 0x392   : > { %v1624_v52 = vpop.f32.mrf.mxu2 }
 0x393   : > { %v2026_v54 = vpop.f32.mrf.mxu3  ;;  %v1625_v3 = vadd.f32 %v1624_v52, %v4461_v62  ;;  %v3716_v52 = vld [vmem:[%s4063_s13 + $0x150] sm:$0xff] }
 0x394   : > { %v2027_v11 = vadd.f32 %v2026_v54, %v4649_v56  ;;  %v1332_v22 = vpop.f32.mrf.mxu1 }
 0x395   : > { %v1333_v17 = vadd.f32 %v1332_v22, %v4464_v32  ;;  %v2317_v31 = vpop.f32.mrf.mxu0 }
 0x396   : > { %v2750_v26 = vpack.c.bf16 %v2316_v44, %v2027_v11  ;;  %v2318_v19 = vadd.f32 %v2317_v31, %v4647_v8 }
 0x397   : > { %v2543_v61 = vpack.c.bf16 %v1333_v17, %v1044_v49  ;;  %v5694_v49 = vld [vmem:[#allocation22_spill] sm:$0xff] }
 0x398   : > { %2862 = vst [vmem:[%s4483_s23 + $0x2e8] sm:$0xff] %v2750_v26  ;;  %v1054_v17 = vadd.f32 %v5694_v49, %v4470_v36 }
 0x399   : > { %2655 = vst [vmem:[%s4483_s23 + $0x3f0] sm:$0xff] %v2543_v61 }
 0x39a   : > { %v1626_v38 = vpop.f32.mrf.mxu2 }
 0x39b   : > { %v1627_v50 = vadd.f32 %v1626_v38, %v4461_v62  ;;  %v2028_v1 = vpop.f32.mrf.mxu3 }
 0x39c   : > { %v2029_v48 = vadd.f32 %v2028_v1, %v4649_v56  ;;  %v1335_v57 = vpop.f32.mrf.mxu1 }
 0x39d   : > { %v1776_v63 = vpack.c.bf16 %v1627_v50, %v1625_v3  ;;  %v1336_v16 = vadd.f32 %v1335_v57, %v4464_v32  ;;  %v2320_v35 = vpop.f32.mrf.mxu0 }
 0x39e   : > { %v2751_v12 = vpack.c.bf16 %v2318_v19, %v2029_v48  ;;  %v2321_v5 = vadd.f32 %v2320_v35, %v4647_v8 }
 0x39f   : > { %v2544_v23 = vpack.c.bf16 %v1336_v16, %v1047_v60  ;;  %3381 = vmatmul.msk.bf16.gmra.mxu1 %vm698_vm1, %v3714_v37  ;;  %3438 = vmatmul.msk.bf16.gmra.mxu2 %vm698_vm1, %v3715_v18  ;;  %v5695_v60 = vld [vmem:[#allocation23_spill] sm:$0xff] }
 0x3a0   : > { %2863 = vst [vmem:[%s4483_s23 + $0x2f8] sm:$0xff] %v2751_v12  ;;  %2070 = vmatmul.bf16.gmra.mxu3 %v1776_v63  ;;  %2359 = vmatmul.bf16.gmra.mxu0 %v1776_v63  ;;  %v1057_v63 = vadd.f32 %v5695_v60, %v4470_v36 }
 0x3a1   : > { %2656 = vst [vmem:[%s4483_s23 + $0x400] sm:$0xff] %v2544_v23 }
 0x3a2   : > { %v1629_v27 = vpop.f32.mrf.mxu2 }
 0x3a3   : > { %v2031_v13 = vpop.f32.mrf.mxu3  ;;  %v1630_v25 = vadd.f32 %v1629_v27, %v4461_v62  ;;  %v3717_v27 = vld [vmem:[%s4063_s13 + $0x158] sm:$0xff] }
 0x3a4   : > { %v2032_v34 = vadd.f32 %v2031_v13, %v4649_v56  ;;  %v1337_v6 = vpop.f32.mrf.mxu1 }
 0x3a5   : > { %v1338_v47 = vadd.f32 %v1337_v6, %v4464_v32  ;;  %v2322_v14 = vpop.f32.mrf.mxu0 }
 0x3a6   : > { %v2752_v59 = vpack.c.bf16 %v2321_v5, %v2032_v34  ;;  %v2323_v29 = vadd.f32 %v2322_v14, %v4647_v8 }
 0x3a7   : > { %v2545_v24 = vpack.c.bf16 %v1338_v47, %v1049_v51  ;;  %v5696_v51 = vld [vmem:[#allocation24_spill] sm:$0xff] }
 0x3a8   : > { %2864 = vst [vmem:[%s4483_s23 + $0x308] sm:$0xff] %v2752_v59  ;;  %v1059_v47 = vadd.f32 %v5696_v51, %v4470_v36 }
 0x3a9   : > { %2657 = vst [vmem:[%s4483_s23 + $0x410] sm:$0xff] %v2545_v24 }
 0x3aa   : > { %v1631_v40 = vpop.f32.mrf.mxu2 }
 0x3ab   : > { %v1632_v46 = vadd.f32 %v1631_v40, %v4461_v62  ;;  %v2033_v0 = vpop.f32.mrf.mxu3 }
 0x3ac   : > { %v2034_v30 = vadd.f32 %v2033_v0, %v4649_v56  ;;  %v1340_v9 = vpop.f32.mrf.mxu1 }
 0x3ad   : > { %v1777_v42 = vpack.c.bf16 %v1632_v46, %v1630_v25  ;;  %v1341_v7 = vadd.f32 %v1340_v9, %v4464_v32  ;;  %v2325_v58 = vpop.f32.mrf.mxu0 }
 0x3ae   : > { %v2753_v20 = vpack.c.bf16 %v2323_v29, %v2034_v30  ;;  %v2326_v11 = vadd.f32 %v2325_v58, %v4647_v8 }
 0x3af   : > { %v2546_v37 = vpack.c.bf16 %v1341_v7, %v1052_v28  ;;  %3382 = vmatmul.msk.bf16.gmra.mxu1 %vm698_vm1, %v3715_v18  ;;  %3439 = vmatmul.msk.bf16.gmra.mxu2 %vm698_vm1, %v3716_v52  ;;  %v5697_v28 = vld [vmem:[#allocation25_spill] sm:$0xff] }
 0x3b0   : > { %2865 = vst [vmem:[%s4483_s23 + $0x318] sm:$0xff] %v2753_v20  ;;  %2075 = vmatmul.bf16.gmra.mxu3 %v1777_v42  ;;  %2364 = vmatmul.bf16.gmra.mxu0 %v1777_v42  ;;  %v1062_v42 = vadd.f32 %v5697_v28, %v4470_v36 }
 0x3b1   : > { %2658 = vst [vmem:[%s4483_s23 + $0x420] sm:$0xff] %v2546_v37 }
 0x3b2   : > { %v1634_v54 = vpop.f32.mrf.mxu2 }
 0x3b3   : > { %v2036_v44 = vpop.f32.mrf.mxu3  ;;  %v1635_v50 = vadd.f32 %v1634_v54, %v4461_v62  ;;  %v3718_v54 = vld [vmem:[%s4063_s13 + $0x160] sm:$0xff] }
 0x3b4   : > { %v2037_v22 = vadd.f32 %v2036_v44, %v4649_v56  ;;  %v1342_v10 = vpop.f32.mrf.mxu1 }
 0x3b5   : > { %v1343_v31 = vadd.f32 %v1342_v10, %v4464_v32  ;;  %v2327_v26 = vpop.f32.mrf.mxu0 }
 0x3b6   : > { %v2754_v61 = vpack.c.bf16 %v2326_v11, %v2037_v22  ;;  %v2328_v48 = vadd.f32 %v2327_v26, %v4647_v8 }
 0x3b7   : > { %v2547_v38 = vpack.c.bf16 %v1343_v31, %v1054_v17  ;;  %v5698_v17 = vld [vmem:[#allocation26_spill] sm:$0xff] }
 0x3b8   : > { %2866 = vst [vmem:[%s4483_s23 + $0x328] sm:$0xff] %v2754_v61  ;;  %v1064_v31 = vadd.f32 %v5698_v17, %v4470_v36 }
 0x3b9   : > { %2659 = vst [vmem:[%s4483_s23 + $0x430] sm:$0xff] %v2547_v38 }
 0x3ba   : > { %v1636_v3 = vpop.f32.mrf.mxu2 }
 0x3bb   : > { %v1637_v1 = vadd.f32 %v1636_v3, %v4461_v62  ;;  %v2038_v19 = vpop.f32.mrf.mxu3 }
 0x3bc   : > { %v2039_v57 = vadd.f32 %v2038_v19, %v4649_v56  ;;  %v1345_v21 = vpop.f32.mrf.mxu1 }
 0x3bd   : > { %v1778_v16 = vpack.c.bf16 %v1637_v1, %v1635_v50  ;;  %v1346_v35 = vadd.f32 %v1345_v21, %v4464_v32  ;;  %v2330_v12 = vpop.f32.mrf.mxu0 }
 0x3be   : > { %v2755_v23 = vpack.c.bf16 %v2328_v48, %v2039_v57  ;;  %v2331_v34 = vadd.f32 %v2330_v12, %v4647_v8 }
 0x3bf   : > { %v2548_v18 = vpack.c.bf16 %v1346_v35, %v1057_v63  ;;  %3383 = vmatmul.msk.bf16.gmra.mxu1 %vm698_vm1, %v3716_v52  ;;  %3440 = vmatmul.msk.bf16.gmra.mxu2 %vm698_vm1, %v3717_v27  ;;  %v5699_v63 = vld [vmem:[#allocation27_spill] sm:$0xff] }
 0x3c0   : > { %2867 = vst [vmem:[%s4483_s23 + $0x338] sm:$0xff] %v2755_v23  ;;  %2080 = vmatmul.bf16.gmra.mxu3 %v1778_v16  ;;  %2369 = vmatmul.bf16.gmra.mxu0 %v1778_v16  ;;  %v1067_v16 = vadd.f32 %v5699_v63, %v4470_v36 }
 0x3c1   : > { %2660 = vst [vmem:[%s4483_s23 + $0x440] sm:$0xff] %v2548_v18 }
 0x3c2   : > { %v1639_v13 = vpop.f32.mrf.mxu2 }
 0x3c3   : > { %v2041_v5 = vpop.f32.mrf.mxu3  ;;  %v1640_v46 = vadd.f32 %v1639_v13, %v4461_v62  ;;  %v3719_v13 = vld [vmem:[%s4063_s13 + $0x168] sm:$0xff] }
 0x3c4   : > { %v2042_v6 = vadd.f32 %v2041_v5, %v4649_v56  ;;  %v1347_v53 = vpop.f32.mrf.mxu1 }
 0x3c5   : > { %v1348_v14 = vadd.f32 %v1347_v53, %v4464_v32  ;;  %v2332_v59 = vpop.f32.mrf.mxu0 }
 0x3c6   : > { %v2756_v24 = vpack.c.bf16 %v2331_v34, %v2042_v6  ;;  %v2333_v30 = vadd.f32 %v2332_v59, %v4647_v8 }
 0x3c7   : > { %v2549_v40 = vpack.c.bf16 %v1348_v14, %v1059_v47  ;;  %v5700_v47 = vld [vmem:[#allocation28_spill] sm:$0xff] }
 0x3c8   : > { %2868 = vst [vmem:[%s4483_s23 + $0x348] sm:$0xff] %v2756_v24  ;;  %v1069_v14 = vadd.f32 %v5700_v47, %v4470_v36 }
 0x3c9   : > { %2661 = vst [vmem:[%s4483_s23 + $0x450] sm:$0xff] %v2549_v40 }
 0x3ca   : > { %v1641_v25 = vpop.f32.mrf.mxu2 }
 0x3cb   : > { %v1642_v0 = vadd.f32 %v1641_v25, %v4461_v62  ;;  %v2043_v29 = vpop.f32.mrf.mxu3 }
 0x3cc   : > { %v2044_v9 = vadd.f32 %v2043_v29, %v4649_v56  ;;  %v1350_v15 = vpop.f32.mrf.mxu1 }
 0x3cd   : > { %v1779_v7 = vpack.c.bf16 %v1642_v0, %v1640_v46  ;;  %v1351_v58 = vadd.f32 %v1350_v15, %v4464_v32  ;;  %v2335_v20 = vpop.f32.mrf.mxu0 }
 0x3ce   : > { %v2757_v37 = vpack.c.bf16 %v2333_v30, %v2044_v9  ;;  %v2336_v22 = vadd.f32 %v2335_v20, %v4647_v8 }
 0x3cf   : > { %v2550_v52 = vpack.c.bf16 %v1351_v58, %v1062_v42  ;;  %3384 = vmatmul.msk.bf16.gmra.mxu1 %vm698_vm1, %v3717_v27  ;;  %3441 = vmatmul.msk.bf16.gmra.mxu2 %vm698_vm1, %v3718_v54  ;;  %v5701_v42 = vld [vmem:[#allocation29_spill] sm:$0xff] }
 0x3d0   : > { %2869 = vst [vmem:[%s4483_s23 + $0x358] sm:$0xff] %v2757_v37  ;;  %2085 = vmatmul.bf16.gmra.mxu3 %v1779_v7  ;;  %2374 = vmatmul.bf16.gmra.mxu0 %v1779_v7  ;;  %v1072_v7 = vadd.f32 %v5701_v42, %v4470_v36 }
 0x3d1   : > { %2662 = vst [vmem:[%s4483_s23 + $0x460] sm:$0xff] %v2550_v52 }
 0x3d2   : > { %v1644_v44 = vpop.f32.mrf.mxu2 }
 0x3d3   : > { %v2046_v11 = vpop.f32.mrf.mxu3  ;;  %v1645_v1 = vadd.f32 %v1644_v44, %v4461_v62  ;;  %v3720_v44 = vld [vmem:[%s4063_s13 + $0x170] sm:$0xff] }
 0x3d4   : > { %v2047_v10 = vadd.f32 %v2046_v11, %v4649_v56  ;;  %v1352_v49 = vpop.f32.mrf.mxu1 }
 0x3d5   : > { %v1353_v26 = vadd.f32 %v1352_v49, %v4464_v32  ;;  %v2337_v61 = vpop.f32.mrf.mxu0 }
 0x3d6   : > { %v2758_v38 = vpack.c.bf16 %v2336_v22, %v2047_v10  ;;  %v2338_v57 = vadd.f32 %v2337_v61, %v4647_v8 }
 0x3d7   : > { %v2551_v3 = vpack.c.bf16 %v1353_v26, %v1064_v31  ;;  %v5702_v31 = vld [vmem:[#allocation30_spill] sm:$0xff] }
 0x3d8   : > { %2870 = vst [vmem:[%s4483_s23 + $0x368] sm:$0xff] %v2758_v38  ;;  %v1074_v26 = vadd.f32 %v5702_v31, %v4470_v36 }
 0x3d9   : > { %2663 = vst [vmem:[%s4483_s23 + $0x470] sm:$0xff] %v2551_v3 }
 0x3da   : > { %v1646_v50 = vpop.f32.mrf.mxu2 }
 0x3db   : > { %v1647_v19 = vadd.f32 %v1646_v50, %v4461_v62  ;;  %v2048_v48 = vpop.f32.mrf.mxu3 }
 0x3dc   : > { %v2049_v21 = vadd.f32 %v2048_v48, %v4649_v56  ;;  %v1355_v60 = vpop.f32.mrf.mxu1 }
 0x3dd   : > { %v1780_v35 = vpack.c.bf16 %v1647_v19, %v1645_v1  ;;  %v1356_v12 = vadd.f32 %v1355_v60, %v4464_v32  ;;  %v2340_v23 = vpop.f32.mrf.mxu0 }
 0x3de   : > { %v2759_v18 = vpack.c.bf16 %v2338_v57, %v2049_v21  ;;  %v2341_v6 = vadd.f32 %v2340_v23, %v4647_v8 }
 0x3df   : > { %v2552_v27 = vpack.c.bf16 %v1356_v12, %v1067_v16  ;;  %3385 = vmatmul.msk.bf16.gmra.mxu1 %vm698_vm1, %v3718_v54  ;;  %3442 = vmatmul.msk.bf16.gmra.mxu2 %vm698_vm1, %v3719_v13  ;;  %v5703_v16 = vld [vmem:[#allocation31_spill] sm:$0xff] }
 0x3e0   : > { %2871 = vst [vmem:[%s4483_s23 + $0x378] sm:$0xff] %v2759_v18  ;;  %2090 = vmatmul.bf16.gmra.mxu3 %v1780_v35  ;;  %2379 = vmatmul.bf16.gmra.mxu0 %v1780_v35  ;;  %v1077_v35 = vadd.f32 %v5703_v16, %v4470_v36 }
 0x3e1   : > { %2664 = vst [vmem:[%s4483_s23 + $0x480] sm:$0xff] %v2552_v27 }
 0x3e2   : > { %v1649_v5 = vpop.f32.mrf.mxu2 }
 0x3e3   : > { %v2051_v34 = vpop.f32.mrf.mxu3  ;;  %v1650_v0 = vadd.f32 %v1649_v5, %v4461_v62  ;;  %v3721_v5 = vld [vmem:[%s4063_s13 + $0x178] sm:$0xff] }
 0x3e4   : > { %v2052_v53 = vadd.f32 %v2051_v34, %v4649_v56  ;;  %v1357_v51 = vpop.f32.mrf.mxu1 }
 0x3e5   : > { %v1358_v59 = vadd.f32 %v1357_v51, %v4464_v32  ;;  %v2342_v24 = vpop.f32.mrf.mxu0 }
 0x3e6   : > { %v2760_v40 = vpack.c.bf16 %v2341_v6, %v2052_v53  ;;  %v2343_v9 = vadd.f32 %v2342_v24, %v4647_v8 }
 0x3e7   : > { %v2553_v25 = vpack.c.bf16 %v1358_v59, %v1069_v14  ;;  %v5704_v14 = vld [vmem:[#allocation32_spill] sm:$0xff] }
 0x3e8   : > { %2872 = vst [vmem:[%s4483_s23 + $0x388] sm:$0xff] %v2760_v40  ;;  %v1079_v59 = vadd.f32 %v5704_v14, %v4470_v36 }
 0x3e9   : > { %2665 = vst [vmem:[%s4483_s23 + $0x490] sm:$0xff] %v2553_v25 }
 0x3ea   : > { %v1651_v46 = vpop.f32.mrf.mxu2 }
 0x3eb   : > { %v1652_v29 = vadd.f32 %v1651_v46, %v4461_v62  ;;  %v2053_v30 = vpop.f32.mrf.mxu3 }
 0x3ec   : > { %v2054_v15 = vadd.f32 %v2053_v30, %v4649_v56  ;;  %v1360_v28 = vpop.f32.mrf.mxu1 }
 0x3ed   : > { %v1781_v58 = vpack.c.bf16 %v1652_v29, %v1650_v0  ;;  %v1361_v20 = vadd.f32 %v1360_v28, %v4464_v32  ;;  %v2345_v37 = vpop.f32.mrf.mxu0 }
 0x3ee   : > { %v2761_v52 = vpack.c.bf16 %v2343_v9, %v2054_v15  ;;  %v2346_v10 = vadd.f32 %v2345_v37, %v4647_v8 }
 0x3ef   : > { %v2554_v54 = vpack.c.bf16 %v1361_v20, %v1072_v7  ;;  %3386 = vmatmul.msk.bf16.gmra.mxu1 %vm698_vm1, %v3719_v13  ;;  %3443 = vmatmul.msk.bf16.gmra.mxu2 %vm698_vm1, %v3720_v44  ;;  %v5705_v7 = vld [vmem:[#allocation34_spill] sm:$0xff] }
 0x3f0   : > { %2873 = vst [vmem:[%s4483_s23 + $0x398] sm:$0xff] %v2761_v52  ;;  %2095 = vmatmul.bf16.gmra.mxu3 %v1781_v58  ;;  %2384 = vmatmul.bf16.gmra.mxu0 %v1781_v58  ;;  %v1082_v58 = vadd.f32 %v5705_v7, %v4470_v36 }
 0x3f1   : > { %2666 = vst [vmem:[%s4483_s23 + $0x4a0] sm:$0xff] %v2554_v54 }
 0x3f2   : > { %v1654_v11 = vpop.f32.mrf.mxu2 }
 0x3f3   : > { %v2056_v22 = vpop.f32.mrf.mxu3  ;;  %v1655_v19 = vadd.f32 %v1654_v11, %v4461_v62  ;;  %v3722_v11 = vld [vmem:[%s4063_s13 + $0x180] sm:$0xff] }
 0x3f4   : > { %v2057_v49 = vadd.f32 %v2056_v22, %v4649_v56  ;;  %v1362_v17 = vpop.f32.mrf.mxu1 }
 0x3f5   : > { %v1363_v61 = vadd.f32 %v1362_v17, %v4464_v32  ;;  %v2347_v38 = vpop.f32.mrf.mxu0 }
 0x3f6   : > { %v2762_v3 = vpack.c.bf16 %v2346_v10, %v2057_v49  ;;  %v2348_v21 = vadd.f32 %v2347_v38, %v4647_v8 }
 0x3f7   : > { %v2555_v50 = vpack.c.bf16 %v1363_v61, %v1074_v26  ;;  %v5706_v26 = vld [vmem:[#allocation36_spill] sm:$0xff] }
 0x3f8   : > { %2874 = vst [vmem:[%s4483_s23 + $0x3a8] sm:$0xff] %v2762_v3  ;;  %v1084_v61 = vadd.f32 %v5706_v26, %v4470_v36 }
 0x3f9   : > { %2667 = vst [vmem:[%s4483_s23 + $0x4b0] sm:$0xff] %v2555_v50 }
 0x3fa   : > { %v1656_v1 = vpop.f32.mrf.mxu2 }
 0x3fb   : > { %v1657_v48 = vadd.f32 %v1656_v1, %v4461_v62  ;;  %v2058_v57 = vpop.f32.mrf.mxu3 }
 0x3fc   : > { %v2059_v60 = vadd.f32 %v2058_v57, %v4649_v56  ;;  %v1365_v63 = vpop.f32.mrf.mxu1 }
 0x3fd   : > { %v1782_v12 = vpack.c.bf16 %v1657_v48, %v1655_v19  ;;  %v1366_v23 = vadd.f32 %v1365_v63, %v4464_v32  ;;  %v2350_v18 = vpop.f32.mrf.mxu0 }
 0x3fe   : > { %v2763_v27 = vpack.c.bf16 %v2348_v21, %v2059_v60  ;;  %v2351_v53 = vadd.f32 %v2350_v18, %v4647_v8 }
 0x3ff   : > { %v2556_v13 = vpack.c.bf16 %v1366_v23, %v1077_v35  ;;  %3387 = vmatmul.msk.bf16.gmra.mxu1 %vm698_vm1, %v3720_v44  ;;  %3444 = vmatmul.msk.bf16.gmra.mxu2 %vm698_vm1, %v3721_v5  ;;  %v5707_v35 = vld [vmem:[#allocation38_spill] sm:$0xff] }
 0x400   : > { %2875 = vst [vmem:[%s4483_s23 + $0x3b8] sm:$0xff] %v2763_v27  ;;  %2100 = vmatmul.bf16.gmra.mxu3 %v1782_v12  ;;  %2389 = vmatmul.bf16.gmra.mxu0 %v1782_v12  ;;  %v1087_v12 = vadd.f32 %v5707_v35, %v4470_v36 }
 0x401   : > { %2668 = vst [vmem:[%s4483_s23 + $0x4c0] sm:$0xff] %v2556_v13 }
 0x402   : > { %v1659_v34 = vpop.f32.mrf.mxu2 }
 0x403   : > { %v2061_v6 = vpop.f32.mrf.mxu3  ;;  %v1660_v29 = vadd.f32 %v1659_v34, %v4461_v62  ;;  %v3723_v34 = vld [vmem:[%s4063_s13 + $0x188] sm:$0xff] }
 0x404   : > { %v2062_v51 = vadd.f32 %v2061_v6, %v4649_v56  ;;  %v1367_v47 = vpop.f32.mrf.mxu1 }
 0x405   : > { %v1368_v24 = vadd.f32 %v1367_v47, %v4464_v32  ;;  %v2352_v40 = vpop.f32.mrf.mxu0 }
 0x406   : > { %v2764_v25 = vpack.c.bf16 %v2351_v53, %v2062_v51  ;;  %v2353_v15 = vadd.f32 %v2352_v40, %v4647_v8 }
 0x407   : > { %v2557_v46 = vpack.c.bf16 %v1368_v24, %v1079_v59  ;;  %v5708_v59 = vld [vmem:[#allocation41_spill] sm:$0xff] }
 0x408   : > { %2876 = vst [vmem:[%s4483_s23 + $0x3c8] sm:$0xff] %v2764_v25  ;;  %v1089_v24 = vadd.f32 %v5708_v59, %v4470_v36 }
 0x409   : > { %2669 = vst [vmem:[%s4483_s23 + $0x4d0] sm:$0xff] %v2557_v46 }
 0x40a   : > { %v1661_v0 = vpop.f32.mrf.mxu2 }
 0x40b   : > { %v1662_v30 = vadd.f32 %v1661_v0, %v4461_v62  ;;  %v2063_v9 = vpop.f32.mrf.mxu3 }
 0x40c   : > { %v2064_v28 = vadd.f32 %v2063_v9, %v4649_v56  ;;  %v1370_v42 = vpop.f32.mrf.mxu1 }
 0x40d   : > { %v1783_v20 = vpack.c.bf16 %v1662_v30, %v1660_v29  ;;  %v1371_v37 = vadd.f32 %v1370_v42, %v4464_v32  ;;  %v2355_v52 = vpop.f32.mrf.mxu0 }
 0x40e   : > { %v2765_v54 = vpack.c.bf16 %v2353_v15, %v2064_v28  ;;  %v2356_v49 = vadd.f32 %v2355_v52, %v4647_v8 }
 0x40f   : > { %v2558_v44 = vpack.c.bf16 %v1371_v37, %v1082_v58  ;;  %3388 = vmatmul.msk.bf16.gmra.mxu1 %vm698_vm1, %v3721_v5  ;;  %3445 = vmatmul.msk.bf16.gmra.mxu2 %vm698_vm1, %v3722_v11  ;;  %v5709_v58 = vld [vmem:[#allocation44_spill] sm:$0xff] }
 0x410   : > { %2877 = vst [vmem:[%s4483_s23 + $0x3d8] sm:$0xff] %v2765_v54  ;;  %2105 = vmatmul.bf16.gmra.mxu3 %v1783_v20  ;;  %2394 = vmatmul.bf16.gmra.mxu0 %v1783_v20  ;;  %v1092_v20 = vadd.f32 %v5709_v58, %v4470_v36 }
 0x411   : > { %2670 = vst [vmem:[%s4483_s23 + $0x4e0] sm:$0xff] %v2558_v44 }
 0x412   : > { %v1664_v22 = vpop.f32.mrf.mxu2 }
 0x413   : > { %v2066_v10 = vpop.f32.mrf.mxu3  ;;  %v1665_v48 = vadd.f32 %v1664_v22, %v4461_v62  ;;  %v3724_v22 = vld [vmem:[%s4063_s13 + $0x190] sm:$0xff] }
 0x414   : > { %v2067_v17 = vadd.f32 %v2066_v10, %v4649_v56  ;;  %v1372_v31 = vpop.f32.mrf.mxu1 }
 0x415   : > { %v1373_v38 = vadd.f32 %v1372_v31, %v4464_v32  ;;  %v2357_v3 = vpop.f32.mrf.mxu0 }
 0x416   : > { %v2766_v50 = vpack.c.bf16 %v2356_v49, %v2067_v17  ;;  %v2358_v60 = vadd.f32 %v2357_v3, %v4647_v8 }
 0x417   : > { %v2559_v1 = vpack.c.bf16 %v1373_v38, %v1084_v61  ;;  %v5710_v61 = vld [vmem:[#allocation47_spill] sm:$0xff] }
 0x418   : > { %2878 = vst [vmem:[%s4483_s23 + $0x3e8] sm:$0xff] %v2766_v50  ;;  %v1094_v38 = vadd.f32 %v5710_v61, %v4470_v36 }
 0x419   : > { %2671 = vst [vmem:[%s4483_s23 + $0x4f0] sm:$0xff] %v2559_v1 }
 0x41a   : > { %v1666_v19 = vpop.f32.mrf.mxu2 }
 0x41b   : > { %v1667_v57 = vadd.f32 %v1666_v19, %v4461_v62  ;;  %v2068_v21 = vpop.f32.mrf.mxu3 }
 0x41c   : > { %v2069_v63 = vadd.f32 %v2068_v21, %v4649_v56  ;;  %v1375_v16 = vpop.f32.mrf.mxu1 }
 0x41d   : > { %v1784_v23 = vpack.c.bf16 %v1667_v57, %v1665_v48  ;;  %v1376_v18 = vadd.f32 %v1375_v16, %v4464_v32  ;;  %v2360_v27 = vpop.f32.mrf.mxu0 }
 0x41e   : > { %v2767_v13 = vpack.c.bf16 %v2358_v60, %v2069_v63  ;;  %v2361_v51 = vadd.f32 %v2360_v27, %v4647_v8 }
 0x41f   : > { %v2560_v5 = vpack.c.bf16 %v1376_v18, %v1087_v12  ;;  %3389 = vmatmul.msk.bf16.gmra.mxu1 %vm698_vm1, %v3722_v11  ;;  %3446 = vmatmul.msk.bf16.gmra.mxu2 %vm698_vm1, %v3723_v34  ;;  %v5711_v12 = vld [vmem:[#allocation50_spill] sm:$0xff] }
 0x420   : > { %2879 = vst [vmem:[%s4483_s23 + $0x3f8] sm:$0xff] %v2767_v13  ;;  %2110 = vmatmul.bf16.gmra.mxu3 %v1784_v23  ;;  %2399 = vmatmul.bf16.gmra.mxu0 %v1784_v23  ;;  %v1097_v23 = vadd.f32 %v5711_v12, %v4470_v36 }
 0x421   : > { %2672 = vst [vmem:[%s4483_s23 + $0x500] sm:$0xff] %v2560_v5 }
 0x422   : > { %v1669_v6 = vpop.f32.mrf.mxu2 }
 0x423   : > { %v2071_v53 = vpop.f32.mrf.mxu3  ;;  %v1670_v30 = vadd.f32 %v1669_v6, %v4461_v62  ;;  %v3725_v6 = vld [vmem:[%s4063_s13 + $0x198] sm:$0xff] }
 0x424   : > { %v2072_v47 = vadd.f32 %v2071_v53, %v4649_v56  ;;  %v1377_v14 = vpop.f32.mrf.mxu1 }
 0x425   : > { %v1378_v40 = vadd.f32 %v1377_v14, %v4464_v32  ;;  %v2362_v25 = vpop.f32.mrf.mxu0 }
 0x426   : > { %v2768_v46 = vpack.c.bf16 %v2361_v51, %v2072_v47  ;;  %v2363_v28 = vadd.f32 %v2362_v25, %v4647_v8 }
 0x427   : > { %v2561_v0 = vpack.c.bf16 %v1378_v40, %v1089_v24  ;;  %v5712_v24 = vld [vmem:[#allocation52_spill] sm:$0xff] }
 0x428   : > { %2880 = vst [vmem:[%s4483_s23 + $0x408] sm:$0xff] %v2768_v46  ;;  %v1099_v40 = vadd.f32 %v5712_v24, %v4470_v36 }
 0x429   : > { %2673 = vst [vmem:[%s4483_s23 + $0x510] sm:$0xff] %v2561_v0 }
 0x42a   : > { %v1671_v29 = vpop.f32.mrf.mxu2 }
 0x42b   : > { %v1672_v9 = vadd.f32 %v1671_v29, %v4461_v62  ;;  %v2073_v15 = vpop.f32.mrf.mxu3 }
 0x42c   : > { %v2074_v42 = vadd.f32 %v2073_v15, %v4649_v56  ;;  %v1380_v7 = vpop.f32.mrf.mxu1 }
 0x42d   : > { %v1785_v37 = vpack.c.bf16 %v1672_v9, %v1670_v30  ;;  %v1381_v52 = vadd.f32 %v1380_v7, %v4464_v32  ;;  %v2365_v54 = vpop.f32.mrf.mxu0 }
 0x42e   : > { %v2769_v44 = vpack.c.bf16 %v2363_v28, %v2074_v42  ;;  %v2366_v17 = vadd.f32 %v2365_v54, %v4647_v8 }
 0x42f   : > { %v2562_v11 = vpack.c.bf16 %v1381_v52, %v1092_v20  ;;  %3390 = vmatmul.msk.bf16.gmra.mxu1 %vm698_vm1, %v3723_v34  ;;  %3447 = vmatmul.msk.bf16.gmra.mxu2 %vm698_vm1, %v3724_v22  ;;  %v5713_v20 = vld [vmem:[#allocation55_spill] sm:$0xff] }
 0x430   : > { %2881 = vst [vmem:[%s4483_s23 + $0x418] sm:$0xff] %v2769_v44  ;;  %2115 = vmatmul.bf16.gmra.mxu3 %v1785_v37  ;;  %2404 = vmatmul.bf16.gmra.mxu0 %v1785_v37  ;;  %v1102_v37 = vadd.f32 %v5713_v20, %v4470_v36 }
 0x431   : > { %2674 = vst [vmem:[%s4483_s23 + $0x520] sm:$0xff] %v2562_v11 }
 0x432   : > { %v1674_v10 = vpop.f32.mrf.mxu2 }
 0x433   : > { %v2076_v49 = vpop.f32.mrf.mxu3  ;;  %v1675_v57 = vadd.f32 %v1674_v10, %v4461_v62  ;;  %v3726_v10 = vld [vmem:[%s4063_s13 + $0x1a0] sm:$0xff] }
 0x434   : > { %v2077_v31 = vadd.f32 %v2076_v49, %v4649_v56  ;;  %v1382_v26 = vpop.f32.mrf.mxu1 }
 0x435   : > { %v1383_v3 = vadd.f32 %v1382_v26, %v4464_v32  ;;  %v2367_v50 = vpop.f32.mrf.mxu0 }
 0x436   : > { %v2770_v1 = vpack.c.bf16 %v2366_v17, %v2077_v31  ;;  %v2368_v63 = vadd.f32 %v2367_v50, %v4647_v8 }
 0x437   : > { %v2563_v19 = vpack.c.bf16 %v1383_v3, %v1094_v38  ;;  %v5714_v38 = vld [vmem:[#allocation58_spill] sm:$0xff] }
 0x438   : > { %2882 = vst [vmem:[%s4483_s23 + $0x428] sm:$0xff] %v2770_v1  ;;  %v1104_v3 = vadd.f32 %v5714_v38, %v4470_v36 }
 0x439   : > { %2675 = vst [vmem:[%s4483_s23 + $0x530] sm:$0xff] %v2563_v19 }
 0x43a   : > { %v1676_v48 = vpop.f32.mrf.mxu2 }
 0x43b   : > { %v1677_v21 = vadd.f32 %v1676_v48, %v4461_v62  ;;  %v2078_v60 = vpop.f32.mrf.mxu3 }
 0x43c   : > { %v2079_v16 = vadd.f32 %v2078_v60, %v4649_v56  ;;  %v1385_v35 = vpop.f32.mrf.mxu1 }
 0x43d   : > { %v1786_v18 = vpack.c.bf16 %v1677_v21, %v1675_v57  ;;  %v1386_v27 = vadd.f32 %v1385_v35, %v4464_v32  ;;  %v2370_v13 = vpop.f32.mrf.mxu0 }
 0x43e   : > { %v2771_v5 = vpack.c.bf16 %v2368_v63, %v2079_v16  ;;  %v2371_v47 = vadd.f32 %v2370_v13, %v4647_v8 }
 0x43f   : > { %v2564_v34 = vpack.c.bf16 %v1386_v27, %v1097_v23  ;;  %3391 = vmatmul.msk.bf16.gmra.mxu1 %vm698_vm1, %v3724_v22  ;;  %3448 = vmatmul.msk.bf16.gmra.mxu2 %vm698_vm1, %v3725_v6  ;;  %v5715_v23 = vld [vmem:[#allocation33_spill] sm:$0xff] }
 0x440   : > { %2883 = vst [vmem:[%s4483_s23 + $0x438] sm:$0xff] %v2771_v5  ;;  %2120 = vmatmul.bf16.gmra.mxu3 %v1786_v18  ;;  %2409 = vmatmul.bf16.gmra.mxu0 %v1786_v18  ;;  %v1107_v18 = vadd.f32 %v5715_v23, %v4470_v36 }
 0x441   : > { %2676 = vst [vmem:[%s4483_s23 + $0x540] sm:$0xff] %v2564_v34 }
 0x442   : > { %v1679_v53 = vpop.f32.mrf.mxu2 }
 0x443   : > { %v2081_v51 = vpop.f32.mrf.mxu3  ;;  %v1680_v9 = vadd.f32 %v1679_v53, %v4461_v62  ;;  %v3727_v53 = vld [vmem:[%s4063_s13 + $0x1a8] sm:$0xff] }
 0x444   : > { %v2082_v14 = vadd.f32 %v2081_v51, %v4649_v56  ;;  %v1387_v59 = vpop.f32.mrf.mxu1 }
 0x445   : > { %v1388_v25 = vadd.f32 %v1387_v59, %v4464_v32  ;;  %v2372_v46 = vpop.f32.mrf.mxu0 }
 0x446   : > { %v2772_v0 = vpack.c.bf16 %v2371_v47, %v2082_v14  ;;  %v2373_v42 = vadd.f32 %v2372_v46, %v4647_v8 }
 0x447   : > { %v2565_v29 = vpack.c.bf16 %v1388_v25, %v1099_v40  ;;  %v5716_v40 = vld [vmem:[#allocation35_spill] sm:$0xff] }
 0x448   : > { %2884 = vst [vmem:[%s4483_s23 + $0x448] sm:$0xff] %v2772_v0  ;;  %v1109_v25 = vadd.f32 %v5716_v40, %v4470_v36 }
 0x449   : > { %2677 = vst [vmem:[%s4483_s23 + $0x550] sm:$0xff] %v2565_v29 }
 0x44a   : > { %v1681_v30 = vpop.f32.mrf.mxu2 }
 0x44b   : > { %v1682_v15 = vadd.f32 %v1681_v30, %v4461_v62  ;;  %v2083_v28 = vpop.f32.mrf.mxu3 }
 0x44c   : > { %v2084_v7 = vadd.f32 %v2083_v28, %v4649_v56  ;;  %v1390_v58 = vpop.f32.mrf.mxu1 }
 0x44d   : > { %v1787_v52 = vpack.c.bf16 %v1682_v15, %v1680_v9  ;;  %v1391_v54 = vadd.f32 %v1390_v58, %v4464_v32  ;;  %v2375_v44 = vpop.f32.mrf.mxu0 }
 0x44e   : > { %v2773_v11 = vpack.c.bf16 %v2373_v42, %v2084_v7  ;;  %v2376_v31 = vadd.f32 %v2375_v44, %v4647_v8 }
 0x44f   : > { %v2566_v22 = vpack.c.bf16 %v1391_v54, %v1102_v37  ;;  %3392 = vmatmul.msk.bf16.gmra.mxu1 %vm698_vm1, %v3725_v6  ;;  %3449 = vmatmul.msk.bf16.gmra.mxu2 %vm698_vm1, %v3726_v10  ;;  %v5717_v37 = vld [vmem:[#allocation37_spill] sm:$0xff] }
 0x450   : > { %2885 = vst [vmem:[%s4483_s23 + $0x458] sm:$0xff] %v2773_v11  ;;  %2125 = vmatmul.bf16.gmra.mxu3 %v1787_v52  ;;  %2414 = vmatmul.bf16.gmra.mxu0 %v1787_v52  ;;  %v1112_v52 = vadd.f32 %v5717_v37, %v4470_v36 }
 0x451   : > { %2678 = vst [vmem:[%s4483_s23 + $0x560] sm:$0xff] %v2566_v22 }
 0x452   : > { %v1684_v49 = vpop.f32.mrf.mxu2 }
 0x453   : > { %v2086_v17 = vpop.f32.mrf.mxu3  ;;  %v1685_v21 = vadd.f32 %v1684_v49, %v4461_v62  ;;  %v3728_v49 = vld [vmem:[%s4063_s13 + $0x1b0] sm:$0xff] }
 0x454   : > { %v2087_v26 = vadd.f32 %v2086_v17, %v4649_v56  ;;  %v1392_v61 = vpop.f32.mrf.mxu1 }
 0x455   : > { %v1393_v50 = vadd.f32 %v1392_v61, %v4464_v32  ;;  %v2377_v1 = vpop.f32.mrf.mxu0 }
 0x456   : > { %v2774_v19 = vpack.c.bf16 %v2376_v31, %v2087_v26  ;;  %v2378_v16 = vadd.f32 %v2377_v1, %v4647_v8 }
 0x457   : > { %v2567_v48 = vpack.c.bf16 %v1393_v50, %v1104_v3  ;;  %v5718_v3 = vld [vmem:[#allocation39_spill] sm:$0xff] }
 0x458   : > { %2886 = vst [vmem:[%s4483_s23 + $0x468] sm:$0xff] %v2774_v19  ;;  %v1114_v50 = vadd.f32 %v5718_v3, %v4470_v36  ;;  %v5722_v3 = vld [vmem:[#allocation53_spill] sm:$0xff] }
 0x459   : > { %2679 = vst [vmem:[%s4483_s23 + $0x570] sm:$0xff] %v2567_v48 }
 0x45a   : > { %v1686_v57 = vpop.f32.mrf.mxu2 }
 0x45b   : > { %v1687_v60 = vadd.f32 %v1686_v57, %v4461_v62  ;;  %v2088_v63 = vpop.f32.mrf.mxu3 }
 0x45c   : > { %v2089_v35 = vadd.f32 %v2088_v63, %v4649_v56  ;;  %v1395_v12 = vpop.f32.mrf.mxu1 }
 0x45d   : > { %v1788_v27 = vpack.c.bf16 %v1687_v60, %v1685_v21  ;;  %v1396_v13 = vadd.f32 %v1395_v12, %v4464_v32  ;;  %v2380_v5 = vpop.f32.mrf.mxu0 }
 0x45e   : > { %v2775_v34 = vpack.c.bf16 %v2378_v16, %v2089_v35  ;;  %v2381_v14 = vadd.f32 %v2380_v5, %v4647_v8 }
 0x45f   : > { %v2568_v6 = vpack.c.bf16 %v1396_v13, %v1107_v18  ;;  %3393 = vmatmul.msk.bf16.gmra.mxu1 %vm698_vm1, %v3726_v10  ;;  %3450 = vmatmul.msk.bf16.gmra.mxu2 %vm698_vm1, %v3727_v53  ;;  %v5719_v18 = vld [vmem:[#allocation43_spill] sm:$0xff] }
 0x460   : > { %2887 = vst [vmem:[%s4483_s23 + $0x478] sm:$0xff] %v2775_v34  ;;  %2130 = vmatmul.bf16.gmra.mxu3 %v1788_v27  ;;  %2419 = vmatmul.bf16.gmra.mxu0 %v1788_v27  ;;  %v1117_v27 = vadd.f32 %v5719_v18, %v4470_v36  ;;  %v5723_v18 = vld [vmem:[#allocation57_spill] sm:$0xff] }
 0x461   : > { %2680 = vst [vmem:[%s4483_s23 + $0x580] sm:$0xff] %v2568_v6 }
 0x462   : > { %v1689_v51 = vpop.f32.mrf.mxu2 }
 0x463   : > { %v2091_v47 = vpop.f32.mrf.mxu3  ;;  %v1690_v15 = vadd.f32 %v1689_v51, %v4461_v62  ;;  %v3729_v51 = vld [vmem:[%s4063_s13 + $0x1b8] sm:$0xff] }
 0x464   : > { %v2092_v59 = vadd.f32 %v2091_v47, %v4649_v56  ;;  %v1397_v24 = vpop.f32.mrf.mxu1 }
 0x465   : > { %v1398_v46 = vadd.f32 %v1397_v24, %v4464_v32  ;;  %v2382_v0 = vpop.f32.mrf.mxu0 }
 0x466   : > { %v2776_v29 = vpack.c.bf16 %v2381_v14, %v2092_v59  ;;  %v2383_v7 = vadd.f32 %v2382_v0, %v4647_v8 }
 0x467   : > { %v2569_v30 = vpack.c.bf16 %v1398_v46, %v1109_v25  ;;  %v5720_v25 = vld [vmem:[#allocation46_spill] sm:$0xff] }
 0x468   : > { %2888 = vst [vmem:[%s4483_s23 + $0x488] sm:$0xff] %v2776_v29  ;;  %v1119_v46 = vadd.f32 %v5720_v25, %v4470_v36 }
 0x469   : > { %2681 = vst [vmem:[%s4483_s23 + $0x590] sm:$0xff] %v2569_v30 }
 0x46a   : > { %v1691_v9 = vpop.f32.mrf.mxu2 }
 0x46b   : > { %v1692_v28 = vadd.f32 %v1691_v9, %v4461_v62  ;;  %v2093_v42 = vpop.f32.mrf.mxu3 }
 0x46c   : > { %v2094_v58 = vadd.f32 %v2093_v42, %v4649_v56  ;;  %v1400_v20 = vpop.f32.mrf.mxu1 }
 0x46d   : > { %v1789_v54 = vpack.c.bf16 %v1692_v28, %v1690_v15  ;;  %v1401_v44 = vadd.f32 %v1400_v20, %v4464_v32  ;;  %v2385_v11 = vpop.f32.mrf.mxu0 }
 0x46e   : > { %v2777_v22 = vpack.c.bf16 %v2383_v7, %v2094_v58  ;;  %v2386_v26 = vadd.f32 %v2385_v11, %v4647_v8 }
 0x46f   : > { %v2570_v10 = vpack.c.bf16 %v1401_v44, %v1112_v52  ;;  %3394 = vmatmul.msk.bf16.gmra.mxu1 %vm698_vm1, %v3727_v53  ;;  %3451 = vmatmul.msk.bf16.gmra.mxu2 %vm698_vm1, %v3728_v49  ;;  %v5721_v52 = vld [vmem:[#allocation49_spill] sm:$0xff] }
 0x470   : > { %2889 = vst [vmem:[%s4483_s23 + $0x498] sm:$0xff] %v2777_v22  ;;  %2135 = vmatmul.bf16.gmra.mxu3 %v1789_v54  ;;  %2424 = vmatmul.bf16.gmra.mxu0 %v1789_v54  ;;  %v1122_v54 = vadd.f32 %v5721_v52, %v4470_v36 }
 0x471   : > { %2682 = vst [vmem:[%s4483_s23 + $0x5a0] sm:$0xff] %v2570_v10 }
 0x472   : > { %v1694_v17 = vpop.f32.mrf.mxu2 }
 0x473   : > { %v2096_v31 = vpop.f32.mrf.mxu3  ;;  %v1695_v60 = vadd.f32 %v1694_v17, %v4461_v62 }
 0x474   : > { %v2097_v61 = vadd.f32 %v2096_v31, %v4649_v56  ;;  %v1402_v38 = vpop.f32.mrf.mxu1 }
 0x475   : > { %v1403_v1 = vadd.f32 %v1402_v38, %v4464_v32  ;;  %v2387_v19 = vpop.f32.mrf.mxu0 }
 0x476   : > { %v2778_v48 = vpack.c.bf16 %v2386_v26, %v2097_v61  ;;  %v2388_v35 = vadd.f32 %v2387_v19, %v4647_v8 }
 0x477   : > { %v2571_v57 = vpack.c.bf16 %v1403_v1, %v1114_v50  ;;  %v1124_v50 = vadd.f32 %v5722_v3, %v4470_v36 }
 0x478   : > { %2890 = vst [vmem:[%s4483_s23 + $0x4a8] sm:$0xff] %v2778_v48 }
 0x479   : > { %2683 = vst [vmem:[%s4483_s23 + $0x5b0] sm:$0xff] %v2571_v57 }
 0x47a   : > { %v1696_v21 = vpop.f32.mrf.mxu2 }
 0x47b   : > { %v1697_v63 = vadd.f32 %v1696_v21, %v4461_v62  ;;  %v2098_v16 = vpop.f32.mrf.mxu3 }
 0x47c   : > { %v2099_v12 = vadd.f32 %v2098_v16, %v4649_v56  ;;  %v1405_v23 = vpop.f32.mrf.mxu1 }
 0x47d   : > { %v1790_v13 = vpack.c.bf16 %v1697_v63, %v1695_v60  ;;  %v1406_v5 = vadd.f32 %v1405_v23, %v4464_v32  ;;  %v2390_v34 = vpop.f32.mrf.mxu0 }
 0x47e   : > { %v2779_v6 = vpack.c.bf16 %v2388_v35, %v2099_v12  ;;  %v2391_v59 = vadd.f32 %v2390_v34, %v4647_v8 }
 0x47f   : > { %v2572_v53 = vpack.c.bf16 %v1406_v5, %v1117_v27  ;;  %3395 = vmatmul.msk.bf16.gmra.mxu1 %vm698_vm1, %v3728_v49  ;;  %3452 = vmatmul.msk.bf16.gmra.mxu2 %vm698_vm1, %v3729_v51  ;;  %v1127_v27 = vadd.f32 %v5723_v18, %v4470_v36 }
 0x480   : > { %2891 = vst [vmem:[%s4483_s23 + $0x4b8] sm:$0xff] %v2779_v6  ;;  %2140 = vmatmul.bf16.gmra.mxu3 %v1790_v13  ;;  %2429 = vmatmul.bf16.gmra.mxu0 %v1790_v13 }
 0x481   : > { %2684 = vst [vmem:[%s4483_s23 + $0x5c0] sm:$0xff] %v2572_v53 }
 0x482   : > { %v1699_v47 = vpop.f32.mrf.mxu2 }
 0x483   : > { %v2101_v14 = vpop.f32.mrf.mxu3  ;;  %v1700_v28 = vadd.f32 %v1699_v47, %v4461_v62 }
 0x484   : > { %v2102_v24 = vadd.f32 %v2101_v14, %v4649_v56  ;;  %v1407_v40 = vpop.f32.mrf.mxu1 }
 0x485   : > { %v1408_v0 = vadd.f32 %v1407_v40, %v4464_v32  ;;  %v2392_v29 = vpop.f32.mrf.mxu0  ;;  %v5724_v40 = vld [vmem:[#allocation60_spill] sm:$0xff] }
 0x486   : > { %v2780_v30 = vpack.c.bf16 %v2391_v59, %v2102_v24  ;;  %v2393_v58 = vadd.f32 %v2392_v29, %v4647_v8  ;;  %v1129_v25 = vadd.f32 %v5724_v40, %v4470_v36 }
 0x487   : > { %v2573_v9 = vpack.c.bf16 %v1408_v0, %v1119_v46 }
 0x488   : > { %2892 = vst [vmem:[%s4483_s23 + $0x4c8] sm:$0xff] %v2780_v30 }
 0x489   : > { %2685 = vst [vmem:[%s4483_s23 + $0x5d0] sm:$0xff] %v2573_v9 }
 0x48a   : > { %v1701_v15 = vpop.f32.mrf.mxu2 }
 0x48b   : > { %v1702_v42 = vadd.f32 %v1701_v15, %v4461_v62  ;;  %v2103_v7 = vpop.f32.mrf.mxu3 }
 0x48c   : > { %v2104_v20 = vadd.f32 %v2103_v7, %v4649_v56  ;;  %v1410_v37 = vpop.f32.mrf.mxu1 }
 0x48d   : > { %v1791_v44 = vpack.c.bf16 %v1702_v42, %v1700_v28  ;;  %v1411_v11 = vadd.f32 %v1410_v37, %v4464_v32  ;;  %v2395_v22 = vpop.f32.mrf.mxu0  ;;  %v5725_v37 = vld [vmem:[#allocation62_spill] sm:$0xff] }
 0x48e   : > { %v2781_v10 = vpack.c.bf16 %v2393_v58, %v2104_v20  ;;  %v2396_v26 = vadd.f32 %v2395_v22, %v4647_v8  ;;  %v1132_v52 = vadd.f32 %v5725_v37, %v4470_v36 }
 0x48f   : > { %v2574_v49 = vpack.c.bf16 %v1411_v11, %v1122_v54  ;;  %3396 = vmatmul.msk.bf16.gmra.mxu1 %vm698_vm1, %v3729_v51 }
 0x490   : > { %2893 = vst [vmem:[%s4483_s23 + $0x4d8] sm:$0xff] %v2781_v10  ;;  %2145 = vmatmul.bf16.gmra.mxu3 %v1791_v44  ;;  %2434 = vmatmul.bf16.gmra.mxu0 %v1791_v44 }
 0x491   : > { %2686 = vst [vmem:[%s4483_s23 + $0x5e0] sm:$0xff] %v2574_v49 }
 0x492   : > { %v1704_v17 = vpop.f32.mrf.mxu2 }
 0x493   : > { %v2106_v31 = vpop.f32.mrf.mxu3  ;;  %v1705_v60 = vadd.f32 %v1704_v17, %v4461_v62 }
 0x494   : > { %v2107_v61 = vadd.f32 %v2106_v31, %v4649_v56  ;;  %v1412_v38 = vpop.f32.mrf.mxu1 }
 0x495   : > { %v1413_v1 = vadd.f32 %v1412_v38, %v4464_v32  ;;  %v2397_v19 = vpop.f32.mrf.mxu0  ;;  %v5726_v38 = vld [vmem:[#allocation63_spill] sm:$0xff] }
 0x496   : > { %v2782_v48 = vpack.c.bf16 %v2396_v26, %v2107_v61  ;;  %v2398_v35 = vadd.f32 %v2397_v19, %v4647_v8  ;;  %v1134_v3 = vadd.f32 %v5726_v38, %v4470_v36 }
 0x497   : > { %v2575_v57 = vpack.c.bf16 %v1413_v1, %v1124_v50 }
 0x498   : > { %2894 = vst [vmem:[%s4483_s23 + $0x4e8] sm:$0xff] %v2782_v48 }
 0x499   : > { %2687 = vst [vmem:[%s4483_s23 + $0x5f0] sm:$0xff] %v2575_v57 }
 0x49a   : > { %v1706_v21 = vpop.f32.mrf.mxu2 }
 0x49b   : > { %v1707_v63 = vadd.f32 %v1706_v21, %v4461_v62  ;;  %v2108_v16 = vpop.f32.mrf.mxu3 }
 0x49c   : > { %v2109_v12 = vadd.f32 %v2108_v16, %v4649_v56  ;;  %v1415_v23 = vpop.f32.mrf.mxu1 }
 0x49d   : > { %v1792_v13 = vpack.c.bf16 %v1707_v63, %v1705_v60  ;;  %v1416_v5 = vadd.f32 %v1415_v23, %v4464_v32  ;;  %v2400_v34 = vpop.f32.mrf.mxu0  ;;  %v1137_v23 = vadd.f32 %v4499_v4, %v4470_v36  ;;  %v1139_v4 = vadd.f32 %v4511_v55, %v4470_v36 }
 0x49e   : > { %v2783_v6 = vpack.c.bf16 %v2398_v35, %v2109_v12  ;;  %v2401_v14 = vadd.f32 %v2400_v34, %v4647_v8 }
 0x49f   : > { %v2576_v53 = vpack.c.bf16 %v1416_v5, %v1127_v27 }
 0x4a0   : > { %2895 = vst [vmem:[%s4483_s23 + $0x4f8] sm:$0xff] %v2783_v6  ;;  %2150 = vmatmul.bf16.gmra.mxu3 %v1792_v13  ;;  %2439 = vmatmul.bf16.gmra.mxu0 %v1792_v13 }
 0x4a1   : > { %2688 = vst [vmem:[%s4483_s23 + $0x600] sm:$0xff] %v2576_v53 }
 0x4a2   : > { %v1709_v51 = vpop.f32.mrf.mxu2 }
 0x4a3   : > { %v2111_v47 = vpop.f32.mrf.mxu3  ;;  %v1710_v15 = vadd.f32 %v1709_v51, %v4461_v62 }
 0x4a4   : > { %v2112_v59 = vadd.f32 %v2111_v47, %v4649_v56  ;;  %v1417_v24 = vpop.f32.mrf.mxu1 }
 0x4a5   : > { %v1418_v46 = vadd.f32 %v1417_v24, %v4464_v32  ;;  %v2402_v0 = vpop.f32.mrf.mxu0 }
 0x4a6   : > { %v2784_v29 = vpack.c.bf16 %v2401_v14, %v2112_v59  ;;  %v2403_v7 = vadd.f32 %v2402_v0, %v4647_v8 }
 0x4a7   : > { %v2577_v30 = vpack.c.bf16 %v1418_v46, %v1129_v25 }
 0x4a8   : > { %2896 = vst [vmem:[%s4483_s23 + $0x508] sm:$0xff] %v2784_v29 }
 0x4a9   : > { %2689 = vst [vmem:[%s4483_s23 + $0x610] sm:$0xff] %v2577_v30 }
 0x4aa   : > { %v1711_v9 = vpop.f32.mrf.mxu2 }
 0x4ab   : > { %v1712_v28 = vadd.f32 %v1711_v9, %v4461_v62  ;;  %v2113_v42 = vpop.f32.mrf.mxu3 }
 0x4ac   : > { %v2114_v58 = vadd.f32 %v2113_v42, %v4649_v56  ;;  %v1420_v20 = vpop.f32.mrf.mxu1 }
 0x4ad   : > { %v1793_v54 = vpack.c.bf16 %v1712_v28, %v1710_v15  ;;  %v1421_v44 = vadd.f32 %v1420_v20, %v4464_v32  ;;  %v2405_v11 = vpop.f32.mrf.mxu0  ;;  %v5727_v28 = vld [vmem:[#allocation64_spill] sm:$0xff] }
 0x4ae   : > { %v2785_v22 = vpack.c.bf16 %v2403_v7, %v2114_v58  ;;  %v2406_v31 = vadd.f32 %v2405_v11, %v4647_v8  ;;  %v1142_v42 = vadd.f32 %v5727_v28, %v4470_v36 }
 0x4af   : > { %v2578_v10 = vpack.c.bf16 %v1421_v44, %v1132_v52 }
 0x4b0   : > { %2897 = vst [vmem:[%s4483_s23 + $0x518] sm:$0xff] %v2785_v22  ;;  %2155 = vmatmul.bf16.gmra.mxu3 %v1793_v54  ;;  %2444 = vmatmul.bf16.gmra.mxu0 %v1793_v54 }
 0x4b1   : > { %2690 = vst [vmem:[%s4483_s23 + $0x620] sm:$0xff] %v2578_v10 }
 0x4b2   : > { %v1714_v49 = vpop.f32.mrf.mxu2 }
 0x4b3   : > { %v2116_v17 = vpop.f32.mrf.mxu3  ;;  %v1715_v21 = vadd.f32 %v1714_v49, %v4461_v62  ;;  %v1144_v49 = vadd.f32 %v4536_v2, %v4470_v36 }
 0x4b4   : > { %v2117_v26 = vadd.f32 %v2116_v17, %v4649_v56  ;;  %v1422_v61 = vpop.f32.mrf.mxu1 }
 0x4b5   : > { %v1423_v50 = vadd.f32 %v1422_v61, %v4464_v32  ;;  %v2407_v1 = vpop.f32.mrf.mxu0 }
 0x4b6   : > { %v2786_v19 = vpack.c.bf16 %v2406_v31, %v2117_v26  ;;  %v2408_v16 = vadd.f32 %v2407_v1, %v4647_v8 }
 0x4b7   : > { %v2579_v48 = vpack.c.bf16 %v1423_v50, %v1134_v3 }
 0x4b8   : > { %2898 = vst [vmem:[%s4483_s23 + $0x528] sm:$0xff] %v2786_v19 }
 0x4b9   : > { %2691 = vst [vmem:[%s4483_s23 + $0x630] sm:$0xff] %v2579_v48 }
 0x4ba   : > { %v1716_v57 = vpop.f32.mrf.mxu2 }
 0x4bb   : > { %v1717_v60 = vadd.f32 %v1716_v57, %v4461_v62  ;;  %v2118_v63 = vpop.f32.mrf.mxu3  ;;  %v1147_v57 = vadd.f32 %v4551_v43, %v4470_v36  ;;  %v1149_v43 = vadd.f32 %v4565_v39, %v4470_v36 }
 0x4bc   : > { %v2119_v35 = vadd.f32 %v2118_v63, %v4649_v56  ;;  %v1425_v12 = vpop.f32.mrf.mxu1 }
 0x4bd   : > { %v1794_v18 = vpack.c.bf16 %v1717_v60, %v1715_v21  ;;  %v1426_v27 = vadd.f32 %v1425_v12, %v4464_v32  ;;  %v2410_v13 = vpop.f32.mrf.mxu0 }
 0x4be   : > { %v2787_v5 = vpack.c.bf16 %v2408_v16, %v2119_v35  ;;  %v2411_v51 = vadd.f32 %v2410_v13, %v4647_v8 }
 0x4bf   : > { %v2580_v34 = vpack.c.bf16 %v1426_v27, %v1137_v23 }
 0x4c0   : > { %2899 = vst [vmem:[%s4483_s23 + $0x538] sm:$0xff] %v2787_v5  ;;  %2160 = vmatmul.bf16.gmra.mxu3 %v1794_v18  ;;  %2449 = vmatmul.bf16.gmra.mxu0 %v1794_v18 }
 0x4c1   : > { %2692 = vst [vmem:[%s4483_s23 + $0x640] sm:$0xff] %v2580_v34 }
 0x4c2   : > { %v1719_v6 = vpop.f32.mrf.mxu2 }
 0x4c3   : > { %v2121_v53 = vpop.f32.mrf.mxu3  ;;  %v1720_v0 = vadd.f32 %v1719_v6, %v4461_v62 }
 0x4c4   : > { %v2122_v47 = vadd.f32 %v2121_v53, %v4649_v56  ;;  %v1427_v14 = vpop.f32.mrf.mxu1 }
 0x4c5   : > { %v1428_v59 = vadd.f32 %v1427_v14, %v4464_v32  ;;  %v2412_v24 = vpop.f32.mrf.mxu0 }
 0x4c6   : > { %v2788_v40 = vpack.c.bf16 %v2411_v51, %v2122_v47  ;;  %v2413_v9 = vadd.f32 %v2412_v24, %v4647_v8 }
 0x4c7   : > { %v2581_v25 = vpack.c.bf16 %v1428_v59, %v1139_v4 }
 0x4c8   : > { %2900 = vst [vmem:[%s4483_s23 + $0x548] sm:$0xff] %v2788_v40  ;;  %v1152_v40 = vadd.f32 %v4574_v41, %v4470_v36  ;;  %v1154_v41 = vadd.f32 %v4588_v33, %v4470_v36 }
 0x4c9   : > { %2693 = vst [vmem:[%s4483_s23 + $0x650] sm:$0xff] %v2581_v25 }
 0x4ca   : > { %v1721_v46 = vpop.f32.mrf.mxu2 }
 0x4cb   : > { %v1722_v29 = vadd.f32 %v1721_v46, %v4461_v62  ;;  %v2123_v30 = vpop.f32.mrf.mxu3 }
 0x4cc   : > { %v2124_v15 = vadd.f32 %v2123_v30, %v4649_v56  ;;  %v1430_v55 = vpop.f32.mrf.mxu1 }
 0x4cd   : > { %v1795_v7 = vpack.c.bf16 %v1722_v29, %v1720_v0  ;;  %v1431_v58 = vadd.f32 %v1430_v55, %v4464_v32  ;;  %v2415_v20 = vpop.f32.mrf.mxu0 }
 0x4ce   : > { %v2789_v37 = vpack.c.bf16 %v2413_v9, %v2124_v15  ;;  %v2416_v11 = vadd.f32 %v2415_v20, %v4647_v8 }
 0x4cf   : > { %v2582_v52 = vpack.c.bf16 %v1431_v58, %v1142_v42 }
 0x4d0   : > { %2901 = vst [vmem:[%s4483_s23 + $0x558] sm:$0xff] %v2789_v37  ;;  %2165 = vmatmul.bf16.gmra.mxu3 %v1795_v7  ;;  %2454 = vmatmul.bf16.gmra.mxu0 %v1795_v7 }
 0x4d1   : > { %2694 = vst [vmem:[%s4483_s23 + $0x660] sm:$0xff] %v2582_v52 }
 0x4d2   : > { %v1724_v54 = vpop.f32.mrf.mxu2 }
 0x4d3   : > { %v2126_v44 = vpop.f32.mrf.mxu3  ;;  %v1725_v3 = vadd.f32 %v1724_v54, %v4461_v62 }
 0x4d4   : > { %v2127_v22 = vadd.f32 %v2126_v44, %v4649_v56  ;;  %v1432_v10 = vpop.f32.mrf.mxu1 }
 0x4d5   : > { %v1433_v17 = vadd.f32 %v1432_v10, %v4464_v32  ;;  %v2417_v31 = vpop.f32.mrf.mxu0 }
 0x4d6   : > { %v2790_v26 = vpack.c.bf16 %v2416_v11, %v2127_v22  ;;  %v2418_v19 = vadd.f32 %v2417_v31, %v4647_v8 }
 0x4d7   : > { %v2583_v61 = vpack.c.bf16 %v1433_v17, %v1144_v49  ;;  %v1157_v49 = vadd.f32 %v4600_v45, %v4470_v36  ;;  %v5728_v45 = vld [vmem:[#allocation65_spill] sm:$0xff] }
 0x4d8   : > { %2902 = vst [vmem:[%s4483_s23 + $0x568] sm:$0xff] %v2790_v26 }
 0x4d9   : > { %2695 = vst [vmem:[%s4483_s23 + $0x670] sm:$0xff] %v2583_v61 }
 0x4da   : > { %v1726_v38 = vpop.f32.mrf.mxu2 }
 0x4db   : > { %v1727_v50 = vadd.f32 %v1726_v38, %v4461_v62  ;;  %v2128_v1 = vpop.f32.mrf.mxu3 }
 0x4dc   : > { %v2129_v48 = vadd.f32 %v2128_v1, %v4649_v56  ;;  %v1435_v2 = vpop.f32.mrf.mxu1 }
 0x4dd   : > { %v1796_v21 = vpack.c.bf16 %v1727_v50, %v1725_v3  ;;  %v1436_v60 = vadd.f32 %v1435_v2, %v4464_v32  ;;  %v2420_v63 = vpop.f32.mrf.mxu0  ;;  %v1159_v2 = vadd.f32 %v5728_v45, %v4470_v36 }
 0x4de   : > { %v2791_v16 = vpack.c.bf16 %v2418_v19, %v2129_v48  ;;  %v2421_v18 = vadd.f32 %v2420_v63, %v4647_v8 }
 0x4df   : > { %v2584_v35 = vpack.c.bf16 %v1436_v60, %v1147_v57 }
 0x4e0   : > { %2903 = vst [vmem:[%s4483_s23 + $0x578] sm:$0xff] %v2791_v16  ;;  %2170 = vmatmul.bf16.gmra.mxu3 %v1796_v21  ;;  %2459 = vmatmul.bf16.gmra.mxu0 %v1796_v21 }
 0x4e1   : > { %2696 = vst [vmem:[%s4483_s23 + $0x680] sm:$0xff] %v2584_v35 }
 0x4e2   : > { %v1729_v12 = vpop.f32.mrf.mxu2 }
 0x4e3   : > { %v2131_v23 = vpop.f32.mrf.mxu3  ;;  %v1730_v47 = vadd.f32 %v1729_v12, %v4461_v62 }
 0x4e4   : > { %v2132_v27 = vadd.f32 %v2131_v23, %v4649_v56  ;;  %v1437_v13 = vpop.f32.mrf.mxu1 }
 0x4e5   : > { %v1438_v5 = vadd.f32 %v1437_v13, %v4464_v32  ;;  %v2422_v34 = vpop.f32.mrf.mxu0 }
 0x4e6   : > { %v2792_v6 = vpack.c.bf16 %v2421_v18, %v2132_v27  ;;  %v2423_v59 = vadd.f32 %v2422_v34, %v4647_v8 }
 0x4e7   : > { %v2585_v53 = vpack.c.bf16 %v1438_v5, %v1149_v43  ;;  %v5729_v43 = vld [vmem:[#allocation66_spill] sm:$0xff] }
 0x4e8   : > { %2904 = vst [vmem:[%s4483_s23 + $0x588] sm:$0xff] %v2792_v6  ;;  %v1162_v5 = vadd.f32 %v5729_v43, %v4470_v36 }
 0x4e9   : > { %2697 = vst [vmem:[%s4483_s23 + $0x690] sm:$0xff] %v2585_v53 }
 0x4ea   : > { %v1731_v51 = vpop.f32.mrf.mxu2 }
 0x4eb   : > { %v1732_v14 = vadd.f32 %v1731_v51, %v4461_v62  ;;  %v2133_v4 = vpop.f32.mrf.mxu3 }
 0x4ec   : > { %v2134_v24 = vadd.f32 %v2133_v4, %v4649_v56  ;;  %v1440_v39 = vpop.f32.mrf.mxu1 }
 0x4ed   : > { %v1797_v25 = vpack.c.bf16 %v1732_v14, %v1730_v47  ;;  %v1441_v46 = vadd.f32 %v1440_v39, %v4464_v32  ;;  %v2425_v0 = vpop.f32.mrf.mxu0 }
 0x4ee   : > { %v2793_v29 = vpack.c.bf16 %v2423_v59, %v2134_v24  ;;  %v2426_v55 = vadd.f32 %v2425_v0, %v4647_v8  ;;  %v5730_v24 = vld [vmem:[#allocation67_spill] sm:$0xff] }
 0x4ef   : > { %v2586_v30 = vpack.c.bf16 %v1441_v46, %v1152_v40  ;;  %v1164_v39 = vadd.f32 %v5730_v24, %v4470_v36 }
 0x4f0   : > { %2905 = vst [vmem:[%s4483_s23 + $0x598] sm:$0xff] %v2793_v29  ;;  %2175 = vmatmul.bf16.gmra.mxu3 %v1797_v25  ;;  %2464 = vmatmul.bf16.gmra.mxu0 %v1797_v25 }
 0x4f1   : > { %2698 = vst [vmem:[%s4483_s23 + $0x6a0] sm:$0xff] %v2586_v30 }
 0x4f2   : > { %v1734_v9 = vpop.f32.mrf.mxu2 }
 0x4f3   : > { %v2136_v15 = vpop.f32.mrf.mxu3  ;;  %v1735_v54 = vadd.f32 %v1734_v9, %v4461_v62 }
 0x4f4   : > { %v2137_v28 = vadd.f32 %v2136_v15, %v4649_v56  ;;  %v1442_v42 = vpop.f32.mrf.mxu1 }
 0x4f5   : > { %v1443_v7 = vadd.f32 %v1442_v42, %v4464_v32  ;;  %v2427_v58 = vpop.f32.mrf.mxu0 }
 0x4f6   : > { %v2794_v20 = vpack.c.bf16 %v2426_v55, %v2137_v28  ;;  %v2428_v22 = vadd.f32 %v2427_v58, %v4647_v8 }
 0x4f7   : > { %v2587_v37 = vpack.c.bf16 %v1443_v7, %v1154_v41 }
 0x4f8   : > { %2906 = vst [vmem:[%s4483_s23 + $0x5a8] sm:$0xff] %v2794_v20 }
 0x4f9   : > { %2699 = vst [vmem:[%s4483_s23 + $0x6b0] sm:$0xff] %v2587_v37 }
 0x4fa   : > { %v1736_v52 = vpop.f32.mrf.mxu2 }
 0x4fb   : > { %v1737_v44 = vadd.f32 %v1736_v52, %v4461_v62  ;;  %v2138_v11 = vpop.f32.mrf.mxu3 }
 0x4fc   : > { %v2139_v10 = vadd.f32 %v2138_v11, %v4649_v56  ;;  %v1445_v33 = vpop.f32.mrf.mxu1 }
 0x4fd   : > { %v1798_v17 = vpack.c.bf16 %v1737_v44, %v1735_v54  ;;  %v1446_v31 = vadd.f32 %v1445_v33, %v4464_v32  ;;  %v2430_v26 = vpop.f32.mrf.mxu0 }
 0x4fe   : > { %v2795_v61 = vpack.c.bf16 %v2428_v22, %v2139_v10  ;;  %v2431_v1 = vadd.f32 %v2430_v26, %v4647_v8 }
 0x4ff   : > { %v2588_v38 = vpack.c.bf16 %v1446_v31, %v1157_v49 }
 0x500   : > { %2907 = vst [vmem:[%s4483_s23 + $0x5b8] sm:$0xff] %v2795_v61  ;;  %2180 = vmatmul.bf16.gmra.mxu3 %v1798_v17  ;;  %2469 = vmatmul.bf16.gmra.mxu0 %v1798_v17 }
 0x501   : > { %2700 = vst [vmem:[%s4483_s23 + $0x6c0] sm:$0xff] %v2588_v38 }
 0x502   : > { %v1739_v3 = vpop.f32.mrf.mxu2 }
 0x503   : > { %v2141_v50 = vpop.f32.mrf.mxu3  ;;  %v1740_v35 = vadd.f32 %v1739_v3, %v4461_v62 }
 0x504   : > { %v2142_v19 = vadd.f32 %v2141_v50, %v4649_v56  ;;  %v1447_v48 = vpop.f32.mrf.mxu1 }
 0x505   : > { %v1448_v57 = vadd.f32 %v1447_v48, %v4464_v32  ;;  %v2432_v21 = vpop.f32.mrf.mxu0 }
 0x506   : > { %v2796_v60 = vpack.c.bf16 %v2431_v1, %v2142_v19  ;;  %v2433_v18 = vadd.f32 %v2432_v21, %v4647_v8 }
 0x507   : > { %v2589_v63 = vpack.c.bf16 %v1448_v57, %v1159_v2 }
 0x508   : > { %2908 = vst [vmem:[%s4483_s23 + $0x5c8] sm:$0xff] %v2796_v60 }
 0x509   : > { %2701 = vst [vmem:[%s4483_s23 + $0x6d0] sm:$0xff] %v2589_v63 }
 0x50a   : > { %v1741_v16 = vpop.f32.mrf.mxu2 }
 0x50b   : > { %v1742_v12 = vadd.f32 %v1741_v16, %v4461_v62  ;;  %v2143_v23 = vpop.f32.mrf.mxu3 }
 0x50c   : > { %v2144_v27 = vadd.f32 %v2143_v23, %v4649_v56  ;;  %v1450_v13 = vpop.f32.mrf.mxu1 }
 0x50d   : > { %v1799_v34 = vpack.c.bf16 %v1742_v12, %v1740_v35  ;;  %v1451_v6 = vadd.f32 %v1450_v13, %v4464_v32  ;;  %v2435_v53 = vpop.f32.mrf.mxu0 }
 0x50e   : > { %v2797_v51 = vpack.c.bf16 %v2433_v18, %v2144_v27  ;;  %v2436_v14 = vadd.f32 %v2435_v53, %v4647_v8 }
 0x50f   : > { %v2590_v47 = vpack.c.bf16 %v1451_v6, %v1162_v5 }
 0x510   : > { %2909 = vst [vmem:[%s4483_s23 + $0x5d8] sm:$0xff] %v2797_v51  ;;  %2185 = vmatmul.bf16.gmra.mxu3 %v1799_v34 }
 0x511   : > { %2702 = vst [vmem:[%s4483_s23 + $0x6e0] sm:$0xff] %v2590_v47 }
 0x513   : > { %v2146_v62 = vpop.f32.mrf.mxu3 }
 0x514   : > { %v2147_v4 = vadd.f32 %v2146_v62, %v4649_v56  ;;  %v1452_v59 = vpop.f32.mrf.mxu1 }
 0x515   : > { %v1453_v40 = vadd.f32 %v1452_v59, %v4464_v32  ;;  %v2437_v25 = vpop.f32.mrf.mxu0 }
 0x516   : > { %v2798_v46 = vpack.c.bf16 %v2436_v14, %v2147_v4  ;;  %v2438_v30 = vadd.f32 %v2437_v25, %v4647_v8 }
 0x517   : > { %v2591_v0 = vpack.c.bf16 %v1453_v40, %v1164_v39 }
 0x518   : > { %2910 = vst [vmem:[%s4483_s23 + $0x5e8] sm:$0xff] %v2798_v46 }
 0x519   : > { %2703 = vst [vmem:[%s4483_s23 + $0x6f0] sm:$0xff] %v2591_v0 }
 0x51b   : > { %v2148_v29 = vpop.f32.mrf.mxu3 }
 0x51c   : > { %v2149_v9 = vadd.f32 %v2148_v29, %v4649_v56 }
 0x51d   : > { %v2440_v15 = vpop.f32.mrf.mxu0 }
 0x51e   : > { %v2799_v55 = vpack.c.bf16 %v2438_v30, %v2149_v9  ;;  %v2441_v36 = vadd.f32 %v2440_v15, %v4647_v8 }
 0x520   : > { %2911 = vst [vmem:[%s4483_s23 + $0x5f8] sm:$0xff] %v2799_v55  ;;  %2474 = vmatmul.bf16.vlgmr.msra.gmra.mxu3 %v1799_v34 }
 0x523   : > { %v2151_v28 = vpop.f32.mrf.mxu3 }
 0x524   : > { %v2152_v32 = vadd.f32 %v2151_v28, %v4649_v56 }
 0x525   : > { %v2442_v42 = vpop.f32.mrf.mxu0 }
 0x526   : > { %v2800_v41 = vpack.c.bf16 %v2441_v36, %v2152_v32  ;;  %v2443_v58 = vadd.f32 %v2442_v42, %v4647_v8 }
 0x528   : > { %2912 = vst [vmem:[%s4483_s23 + $0x608] sm:$0xff] %v2800_v41 }
 0x52b   : > { %v2153_v7 = vpop.f32.mrf.mxu3 }
 0x52c   : > { %v2154_v20 = vadd.f32 %v2153_v7, %v4649_v56 }
 0x52d   : > { %v2445_v37 = vpop.f32.mrf.mxu0 }
 0x52e   : > { %v2801_v52 = vpack.c.bf16 %v2443_v58, %v2154_v20  ;;  %v2446_v44 = vadd.f32 %v2445_v37, %v4647_v8 }
 0x530   : > { %2913 = vst [vmem:[%s4483_s23 + $0x618] sm:$0xff] %v2801_v52 }
 0x533   : > { %v2156_v54 = vpop.f32.mrf.mxu3 }
 0x534   : > { %v2157_v11 = vadd.f32 %v2156_v54, %v4649_v56 }
 0x535   : > { %v2447_v22 = vpop.f32.mrf.mxu0 }
 0x536   : > { %v2802_v10 = vpack.c.bf16 %v2446_v44, %v2157_v11  ;;  %v2448_v49 = vadd.f32 %v2447_v22, %v4647_v8 }
 0x538   : > { %2914 = vst [vmem:[%s4483_s23 + $0x628] sm:$0xff] %v2802_v10 }
 0x53b   : > { %v2158_v33 = vpop.f32.mrf.mxu3 }
 0x53c   : > { %v2159_v17 = vadd.f32 %v2158_v33, %v4649_v56 }
 0x53d   : > { %v2450_v31 = vpop.f32.mrf.mxu0 }
 0x53e   : > { %v2803_v26 = vpack.c.bf16 %v2448_v49, %v2159_v17  ;;  %v2451_v38 = vadd.f32 %v2450_v31, %v4647_v8 }
 0x540   : > { %2915 = vst [vmem:[%s4483_s23 + $0x638] sm:$0xff] %v2803_v26 }
 0x543   : > { %v2161_v61 = vpop.f32.mrf.mxu3 }
 0x544   : > { %v2162_v3 = vadd.f32 %v2161_v61, %v4649_v56 }
 0x545   : > { %v2452_v50 = vpop.f32.mrf.mxu0 }
 0x546   : > { %v2804_v1 = vpack.c.bf16 %v2451_v38, %v2162_v3  ;;  %v2453_v48 = vadd.f32 %v2452_v50, %v4647_v8 }
 0x548   : > { %2916 = vst [vmem:[%s4483_s23 + $0x648] sm:$0xff] %v2804_v1 }
 0x54b   : > { %v2163_v19 = vpop.f32.mrf.mxu3 }
 0x54c   : > { %v2164_v45 = vadd.f32 %v2163_v19, %v4649_v56 }
 0x54d   : > { %v2455_v2 = vpop.f32.mrf.mxu0 }
 0x54e   : > { %v2805_v57 = vpack.c.bf16 %v2453_v48, %v2164_v45  ;;  %v2456_v60 = vadd.f32 %v2455_v2, %v4647_v8 }
 0x550   : > { %2917 = vst [vmem:[%s4483_s23 + $0x658] sm:$0xff] %v2805_v57 }
 0x553   : > { %v2166_v21 = vpop.f32.mrf.mxu3 }
 0x554   : > { %v2167_v63 = vadd.f32 %v2166_v21, %v4649_v56 }
 0x555   : > { %v2457_v16 = vpop.f32.mrf.mxu0 }
 0x556   : > { %v2806_v35 = vpack.c.bf16 %v2456_v60, %v2167_v63  ;;  %v2458_v23 = vadd.f32 %v2457_v16, %v4647_v8 }
 0x558   : > { %2918 = vst [vmem:[%s4483_s23 + $0x668] sm:$0xff] %v2806_v35 }
 0x55b   : > { %v2168_v12 = vpop.f32.mrf.mxu3 }
 0x55c   : > { %v2169_v18 = vadd.f32 %v2168_v12, %v4649_v56 }
 0x55d   : > { %v2460_v27 = vpop.f32.mrf.mxu0 }
 0x55e   : > { %v2807_v13 = vpack.c.bf16 %v2458_v23, %v2169_v18  ;;  %v2461_v5 = vadd.f32 %v2460_v27, %v4647_v8 }
 0x560   : > { %2919 = vst [vmem:[%s4483_s23 + $0x678] sm:$0xff] %v2807_v13 }
 0x563   : > { %v2171_v43 = vpop.f32.mrf.mxu3 }
 0x564   : > { %v2172_v34 = vadd.f32 %v2171_v43, %v4649_v56 }
 0x565   : > { %v2462_v6 = vpop.f32.mrf.mxu0 }
 0x566   : > { %v2808_v53 = vpack.c.bf16 %v2461_v5, %v2172_v34  ;;  %v2463_v47 = vadd.f32 %v2462_v6, %v4647_v8 }
 0x568   : > { %2920 = vst [vmem:[%s4483_s23 + $0x688] sm:$0xff] %v2808_v53 }
 0x56b   : > { %v2173_v51 = vpop.f32.mrf.mxu3 }
 0x56c   : > { %v2174_v62 = vadd.f32 %v2173_v51, %v4649_v56 }
 0x56d   : > { %v2465_v14 = vpop.f32.mrf.mxu0 }
 0x56e   : > { %v2809_v4 = vpack.c.bf16 %v2463_v47, %v2174_v62  ;;  %v2466_v24 = vadd.f32 %v2465_v14, %v4647_v8 }
 0x570   : > { %2921 = vst [vmem:[%s4483_s23 + $0x698] sm:$0xff] %v2809_v4 }
 0x573   : > { %v2176_v59 = vpop.f32.mrf.mxu3 }
 0x574   : > { %v2177_v39 = vadd.f32 %v2176_v59, %v4649_v56 }
 0x575   : > { %v2467_v40 = vpop.f32.mrf.mxu0 }
 0x576   : > { %v2810_v25 = vpack.c.bf16 %v2466_v24, %v2177_v39  ;;  %v2468_v0 = vadd.f32 %v2467_v40, %v4647_v8 }
 0x578   : > { %2922 = vst [vmem:[%s4483_s23 + $0x6a8] sm:$0xff] %v2810_v25 }
 0x57b   : > { %v2178_v46 = vpop.f32.mrf.mxu3 }
 0x57c   : > { %v2179_v29 = vadd.f32 %v2178_v46, %v4649_v56 }
 0x57d   : > { %v2470_v9 = vpop.f32.mrf.mxu0 }
 0x57e   : > { %v2811_v30 = vpack.c.bf16 %v2468_v0, %v2179_v29  ;;  %v2471_v55 = vadd.f32 %v2470_v9, %v4647_v8 }
 0x580   : > { %2923 = vst [vmem:[%s4483_s23 + $0x6b8] sm:$0xff] %v2811_v30 }
 0x583   : > { %v2181_v15 = vpop.f32.mrf.mxu3 }
 0x584   : > { %v2182_v28 = vadd.f32 %v2181_v15, %v4649_v56 }
 0x585   : > { %v2472_v32 = vpop.f32.mrf.mxu0 }
 0x586   : > { %v2812_v36 = vpack.c.bf16 %v2471_v55, %v2182_v28  ;;  %v2473_v41 = vadd.f32 %v2472_v32, %v4647_v8 }
 0x588   : > { %2924 = vst [vmem:[%s4483_s23 + $0x6c8] sm:$0xff] %v2812_v36 }
 0x58b   : > { %v2183_v42 = vpop.f32.mrf.mxu3 }
 0x58c   : > { %v2184_v7 = vadd.f32 %v2183_v42, %v4649_v56 }
 0x58e   : > { %v2813_v58 = vpack.c.bf16 %v2473_v41, %v2184_v7 }
 0x590   : > { %2925 = vst [vmem:[%s4483_s23 + $0x6d8] sm:$0xff] %v2813_v58 }
 0x593   : > { %v2186_v20 = vpop.f32.mrf.mxu3 }
 0x594   : > { %v2187_v54 = vadd.f32 %v2186_v20, %v4649_v56 }
 0x59b   : > { %v2188_v37 = vpop.f32.mrf.mxu3 }
 0x59c   : > { %v2189_v10 = vadd.f32 %v2188_v37, %v4649_v56 }
 0x5a3   : > { %v2475_v52 = vpop.f32.mrf.mxu3 }
 0x5a4   : > { %v2476_v44 = vadd.f32 %v2475_v52, %v4647_v8 }
 0x5a6   : > { %v2814_v11 = vpack.c.bf16 %v2476_v44, %v2187_v54 }
 0x5a8   : > { %2926 = vst [vmem:[%s4483_s23 + $0x6e8] sm:$0xff] %v2814_v11 }
 0x5ab   : > { %v2477_v22 = vpop.f32.mrf.mxu3 }
 0x5ac   : > { %v2478_v33 = vadd.f32 %v2477_v22, %v4647_v8 }
 0x5ae   : > { %v2815_v49 = vpack.c.bf16 %v2478_v33, %v2189_v10 }
 0x5b0   : > { %2927 = vst [vmem:[%s4483_s23 + $0x6f8] sm:$0xff] %v2815_v49 }
 0x5b1   : > { %3877 = shalt.err (!%p3874_p8)
}
 0x5b2   : > { %s3932_s13 = smov 256   ;;  %s3933_s14 = smov 16  }
 0x5b3   : > { %3624 = dma.vmem_to_hbm [thread:$0]  (%p4002_p5), %s2943_s9, 28672, %s2945_s11, %s2929_s22, %s3932_s13, %s3932_s13, %s3933_s14  }
 0x5b4 PF: > { %p3651_p9 = scmp.ge.s32.totalorder %s3924_s21, 2  ;;  %s2959_s17 = sand.u32 1, %s3912_s18  }
 0x5b5   : > { %s2960_s23 = scalar_lea.sflag [#allocation4], %s2959_s17 }
 0x5b6   : > { %p3640_p10 = pnand %p3651_p9, %p4006_p6 }
 0x5b8   : > { %p3641_p11 = pneg %p3640_p10 }
 0x5ba   : > { %3907 = dma.done.wait (%p3641_p11), %s2960_s23, 28672  }
 0x5bb   : > { %3909 = vsyncadd (%p3641_p11), %s2960_s23, 4294938624  ;;  %p18_p12 = scmp.ge.s32.totalorder %s3989_s24, 6   ;;  %s5731_s18 = smov %s3916_s19 }
 0x5bc   : > { %s5732_s19 = smov %s3920_s20  ;;  %s5733_s20 = smov %s4000_s27 }
 0x5bd   : > { %s5734_s21 = smov %s3989_s24  ;;  %20 = sbr.rel (!%p18_p12) target bundleno = 8 (0x8), region = 92 }
 0x5c2   :  { %2966 = vsyncpa [#allocation3], 1 }
 0x5c3   :  { %2968 = vsyncpa [#allocation3 + $0x1], 1 }
 0x5c4   :  { %2969 = vsyncpa [#allocation6], 1 }
 0x5c5   :  { %2970 = vsyncpa [#allocation9], 1 }
 0x5c6   :  { %2971 = vsyncpa [#allocation4], 1 }
 0x5c7   :  { %2973 = vsyncpa [#allocation4 + $0x1], 1 }

</bundles_post_ra>
